<compile_context>
chip_gen: v7x
topology: tpu7x:2x2x1
jax: 0.10.0
libtpu: 0.0.40
codegen_flags: <defaults>
</compile_context>

<pallas_src>
import functools

import jax
import jax.numpy as jnp
from jax.experimental import pallas as pl
from jax.experimental.pallas import tpu as pltpu


def _fused_autoencoder_kernel(x_ref, *refs, bias_offsets, bias_sizes):
    """Fused forward pass over one M-tile: 7x (Linear+ReLU) + (Linear+Tanh).

    refs = (w0, w1, ..., w7, bias_concat, o_ref); weights are bf16 and fully
    VMEM-resident (constant index_map), the concatenated bias is f32, the
    intermediate activations stay f32 in vregs/VMEM.
    """
    o_ref = refs[-1]
    bias_ref = refs[-2]
    w_refs = refs[:-2]
    n_layers = len(w_refs)

    h = x_ref[...]  # f32 activations
    for i, w_ref in enumerate(w_refs):
        off = bias_offsets[i]
        sz = bias_sizes[i]
        b = bias_ref[:, off:off + sz]                       # static, 128-aligned
        h = jnp.dot(h.astype(jnp.bfloat16), w_ref[...],     # bf16 x bf16 -> f32
                    preferred_element_type=jnp.float32) + b
        if i == n_layers - 1:
            h = jnp.tanh(h)          # final layer: Tanh
        else:
            h = jnp.maximum(h, 0.0)  # hidden layers: ReLU
    o_ref[...] = h.astype(o_ref.dtype)


def autoencoder_forward(x, params):
    """Forward pass of the autoencoder via one fused Pallas kernel.

    x: [M, input_dim] float32; params: list of (w [in, out] f32, b [1, out] f32).
    """
    M, d_in = x.shape
    out_dim = params[-1][0].shape[1]

    # --- operand preparation -------------------------------------------------
    # bf16 weights (halves HBM traffic; native MXU input dtype on v6e/v7x).
    weights_bf16 = [w.astype(jnp.bfloat16) for (w, _) in params]
    # One concatenated f32 bias buffer; all offsets are multiples of 128.
    bias_sizes = tuple(int(b.shape[1]) for (_, b) in params)
    bias_offsets = []
    acc = 0
    for s in bias_sizes:
        bias_offsets.append(acc)
        acc += s
    bias_offsets = tuple(bias_offsets)
    bias_concat = jnp.concatenate([b for (_, b) in params], axis=1)  # (1, total)

    # --- M tiling ------------------------------------------------------------
    TILE_M = 256 if M > 256 else M          # TILE_M == M is always legal
    M_pad = pl.cdiv(M, TILE_M) * TILE_M
    x_in = x if M_pad == M else jnp.pad(x, ((0, M_pad - M), (0, 0)))
    grid = (M_pad // TILE_M,)

    kernel = functools.partial(
        _fused_autoencoder_kernel,
        bias_offsets=bias_offsets,
        bias_sizes=bias_sizes,
    )

    in_specs = [pl.BlockSpec((TILE_M, d_in), lambda i: (i, 0))]
    # Weights / biases: full block, constant index_map -> DMA'd once, resident
    # across all M-tiles.
    for w in weights_bf16:
        in_specs.append(pl.BlockSpec(w.shape, lambda i: (0, 0)))
    in_specs.append(pl.BlockSpec(bias_concat.shape, lambda i: (0, 0)))

    out = pl.pallas_call(
        kernel,
        out_shape=jax.ShapeDtypeStruct((M_pad, out_dim), x.dtype),
        grid=grid,
        in_specs=in_specs,
        out_specs=pl.BlockSpec((TILE_M, out_dim), lambda i: (i, 0)),
        compiler_params=pltpu.CompilerParams(
            dimension_semantics=("parallel",),   # v7x: split M-tiles across TCs
        ),
    )(x_in, *weights_bf16, bias_concat)

    return out[:M] if M_pad != M else out


def init_autoencoder_params(key, input_dim):
    """Deterministic parameter init matching the PyTorch module's shapes."""
    dims = [
        # encoder
        (input_dim, 1024),
        (1024, 512),
        (512, 256),
        (256, 128),
        # decoder
        (128, 256),
        (256, 512),
        (512, 1024),
        (1024, input_dim),
    ]
    params = []
    for (d_in, d_out) in dims:
        key, kw, kb = jax.random.split(key, 3)
        bound = 1.0 / jnp.sqrt(d_in)  # same scale as nn.Linear default init
        w = jax.random.uniform(
            kw, (d_in, d_out), jnp.float32, minval=-bound, maxval=bound
        )
        b = jax.random.uniform(
            kb, (1, d_out), jnp.float32, minval=-bound, maxval=bound
        )
        params.append((w, b))
    return params


def autoencoder_reference(x, params):
    """Pure-JAX reference using the same bf16 weight precision as the kernel."""
    h = x
    n_layers = len(params)
    for i, (w, b) in enumerate(params):
        h = jnp.dot(h.astype(jnp.bfloat16), w.astype(jnp.bfloat16),
                    preferred_element_type=jnp.float32) + b
        h = jnp.tanh(h) if i == n_layers - 1 else jnp.maximum(h, 0.0)
    return h


if __name__ == "__main__":
    input_dim = 256   # audio feature dimension (audio_tensor.shape[1])
    batch = 8

    key = jax.random.PRNGKey(0)
    key, kx = jax.random.split(key)
    # mimic `audio_tensor * 2 - 1` -> inputs in [-1, 1]
    x = jax.random.uniform(kx, (batch, input_dim), jnp.float32) * 2.0 - 1.0

    params = init_autoencoder_params(key, input_dim)

    out = autoencoder_forward(x, params)
    out = jax.block_until_ready(out)

    ref = autoencoder_reference(x, params)
    assert out.shape == (batch, input_dim)
    # bf16 weight path -> relaxed tolerance (output is post-tanh, in [-1, 1]).
    assert jnp.allclose(out, ref, atol=3e-2, rtol=3e-2)

    print("KERNEL_OK")
</pallas_src>

<mosaic_0001>
module attributes {stable_mosaic.version = 11 : i64} {
  func.func @_fused_autoencoder_kernel(%arg0: i32, %arg1: memref<8x256xf32, #tpu.memory_space<vmem>>, %arg2: memref<256x1024xbf16, #tpu.memory_space<vmem>>, %arg3: memref<1024x512xbf16, #tpu.memory_space<vmem>>, %arg4: memref<512x256xbf16, #tpu.memory_space<vmem>>, %arg5: memref<256x128xbf16, #tpu.memory_space<vmem>>, %arg6: memref<128x256xbf16, #tpu.memory_space<vmem>>, %arg7: memref<256x512xbf16, #tpu.memory_space<vmem>>, %arg8: memref<512x1024xbf16, #tpu.memory_space<vmem>>, %arg9: memref<1024x256xbf16, #tpu.memory_space<vmem>>, %arg10: memref<1x3968xf32, #tpu.memory_space<vmem>>, %arg11: memref<8x256xf32, #tpu.memory_space<vmem>>) attributes {dimension_semantics = [#tpu.dimension_semantics<parallel>], iteration_bounds = array<i64: 1>, scalar_prefetch = 0 : i64, scratch_operands = 0 : i64, tpu.core_type = #tpu.core_type<tc>, window_params = [{transform_indices = @transform_0, window_bounds = array<i64: 8, 256>}, {pipeline_mode = #tpu.pipeline_mode<synchronous>, transform_indices = @transform_1, window_bounds = array<i64: 256, 1024>}, {pipeline_mode = #tpu.pipeline_mode<synchronous>, transform_indices = @transform_2, window_bounds = array<i64: 1024, 512>}, {pipeline_mode = #tpu.pipeline_mode<synchronous>, transform_indices = @transform_3, window_bounds = array<i64: 512, 256>}, {pipeline_mode = #tpu.pipeline_mode<synchronous>, transform_indices = @transform_4, window_bounds = array<i64: 256, 128>}, {pipeline_mode = #tpu.pipeline_mode<synchronous>, transform_indices = @transform_5, window_bounds = array<i64: 128, 256>}, {pipeline_mode = #tpu.pipeline_mode<synchronous>, transform_indices = @transform_6, window_bounds = array<i64: 256, 512>}, {pipeline_mode = #tpu.pipeline_mode<synchronous>, transform_indices = @transform_7, window_bounds = array<i64: 512, 1024>}, {pipeline_mode = #tpu.pipeline_mode<synchronous>, transform_indices = @transform_8, window_bounds = array<i64: 1024, 256>}, {pipeline_mode = #tpu.pipeline_mode<synchronous>, transform_indices = @transform_9, window_bounds = array<i64: 1, 3968>}, {transform_indices = @transform_10, window_bounds = array<i64: 8, 256>}]} {
    %c0 = arith.constant 0 : index
    %c0_0 = arith.constant 0 : index
    %0 = vector.load %arg1[%c0, %c0_0] : memref<8x256xf32, #tpu.memory_space<vmem>>, vector<8x256xf32>
    %c0_1 = arith.constant 0 : index
    %c0_2 = arith.constant 0 : index
    %1 = vector.load %arg10[%c0_1, %c0_2] : memref<1x3968xf32, #tpu.memory_space<vmem>>, vector<1x1024xf32>
    %2 = arith.truncf %0 : vector<8x256xf32> to vector<8x256xbf16>
    %c0_3 = arith.constant 0 : index
    %c0_4 = arith.constant 0 : index
    %3 = vector.load %arg2[%c0_3, %c0_4] : memref<256x1024xbf16, #tpu.memory_space<vmem>>, vector<256x1024xbf16>
    %cst = arith.constant dense<0.000000e+00> : vector<8x1024xf32>
    %4 = tpu.matmul %2, %3, %cst {dimension_numbers = #tpu.dot_dimension_numbers<[1], [0], [0], [1], [0, 0, 1, 1], [], []>} : vector<8x256xbf16>, vector<256x1024xbf16>, vector<8x1024xf32> -> vector<8x1024xf32>
    %5 = vector.broadcast %1 : vector<1x1024xf32> to vector<8x1024xf32>
    %6 = arith.addf %4, %5 : vector<8x1024xf32>
    %cst_5 = arith.constant 0.000000e+00 : f32
    %7 = vector.broadcast %cst_5 : f32 to vector<8x1024xf32>
    %8 = arith.maximumf %6, %7 : vector<8x1024xf32>
    %c0_6 = arith.constant 0 : index
    %c1024 = arith.constant 1024 : index
    %9 = vector.load %arg10[%c0_6, %c1024] : memref<1x3968xf32, #tpu.memory_space<vmem>>, vector<1x512xf32>
    %10 = arith.truncf %8 : vector<8x1024xf32> to vector<8x1024xbf16>
    %c0_7 = arith.constant 0 : index
    %c0_8 = arith.constant 0 : index
    %11 = vector.load %arg3[%c0_7, %c0_8] : memref<1024x512xbf16, #tpu.memory_space<vmem>>, vector<1024x512xbf16>
    %cst_9 = arith.constant dense<0.000000e+00> : vector<8x512xf32>
    %12 = tpu.matmul %10, %11, %cst_9 {dimension_numbers = #tpu.dot_dimension_numbers<[1], [0], [0], [1], [0, 0, 1, 1], [], []>} : vector<8x1024xbf16>, vector<1024x512xbf16>, vector<8x512xf32> -> vector<8x512xf32>
    %13 = vector.broadcast %9 : vector<1x512xf32> to vector<8x512xf32>
    %14 = arith.addf %12, %13 : vector<8x512xf32>
    %cst_10 = arith.constant 0.000000e+00 : f32
    %15 = vector.broadcast %cst_10 : f32 to vector<8x512xf32>
    %16 = arith.maximumf %14, %15 : vector<8x512xf32>
    %c0_11 = arith.constant 0 : index
    %c1536 = arith.constant 1536 : index
    %17 = vector.load %arg10[%c0_11, %c1536] : memref<1x3968xf32, #tpu.memory_space<vmem>>, vector<1x256xf32>
    %18 = arith.truncf %16 : vector<8x512xf32> to vector<8x512xbf16>
    %c0_12 = arith.constant 0 : index
    %c0_13 = arith.constant 0 : index
    %19 = vector.load %arg4[%c0_12, %c0_13] : memref<512x256xbf16, #tpu.memory_space<vmem>>, vector<512x256xbf16>
    %cst_14 = arith.constant dense<0.000000e+00> : vector<8x256xf32>
    %20 = tpu.matmul %18, %19, %cst_14 {dimension_numbers = #tpu.dot_dimension_numbers<[1], [0], [0], [1], [0, 0, 1, 1], [], []>} : vector<8x512xbf16>, vector<512x256xbf16>, vector<8x256xf32> -> vector<8x256xf32>
    %21 = vector.broadcast %17 : vector<1x256xf32> to vector<8x256xf32>
    %22 = arith.addf %20, %21 : vector<8x256xf32>
    %cst_15 = arith.constant 0.000000e+00 : f32
    %23 = vector.broadcast %cst_15 : f32 to vector<8x256xf32>
    %24 = arith.maximumf %22, %23 : vector<8x256xf32>
    %c0_16 = arith.constant 0 : index
    %c1792 = arith.constant 1792 : index
    %25 = vector.load %arg10[%c0_16, %c1792] : memref<1x3968xf32, #tpu.memory_space<vmem>>, vector<1x128xf32>
    %26 = arith.truncf %24 : vector<8x256xf32> to vector<8x256xbf16>
    %c0_17 = arith.constant 0 : index
    %c0_18 = arith.constant 0 : index
    %27 = vector.load %arg5[%c0_17, %c0_18] : memref<256x128xbf16, #tpu.memory_space<vmem>>, vector<256x128xbf16>
    %cst_19 = arith.constant dense<0.000000e+00> : vector<8x128xf32>
    %28 = tpu.matmul %26, %27, %cst_19 {dimension_numbers = #tpu.dot_dimension_numbers<[1], [0], [0], [1], [0, 0, 1, 1], [], []>} : vector<8x256xbf16>, vector<256x128xbf16>, vector<8x128xf32> -> vector<8x128xf32>
    %29 = vector.broadcast %25 : vector<1x128xf32> to vector<8x128xf32>
    %30 = arith.addf %28, %29 : vector<8x128xf32>
    %cst_20 = arith.constant 0.000000e+00 : f32
    %31 = vector.broadcast %cst_20 : f32 to vector<8x128xf32>
    %32 = arith.maximumf %30, %31 : vector<8x128xf32>
    %c0_21 = arith.constant 0 : index
    %c1920 = arith.constant 1920 : index
    %33 = vector.load %arg10[%c0_21, %c1920] : memref<1x3968xf32, #tpu.memory_space<vmem>>, vector<1x256xf32>
    %34 = arith.truncf %32 : vector<8x128xf32> to vector<8x128xbf16>
    %c0_22 = arith.constant 0 : index
    %c0_23 = arith.constant 0 : index
    %35 = vector.load %arg6[%c0_22, %c0_23] : memref<128x256xbf16, #tpu.memory_space<vmem>>, vector<128x256xbf16>
    %cst_24 = arith.constant dense<0.000000e+00> : vector<8x256xf32>
    %36 = tpu.matmul %34, %35, %cst_24 {dimension_numbers = #tpu.dot_dimension_numbers<[1], [0], [0], [1], [0, 0, 1, 1], [], []>} : vector<8x128xbf16>, vector<128x256xbf16>, vector<8x256xf32> -> vector<8x256xf32>
    %37 = vector.broadcast %33 : vector<1x256xf32> to vector<8x256xf32>
    %38 = arith.addf %36, %37 : vector<8x256xf32>
    %cst_25 = arith.constant 0.000000e+00 : f32
    %39 = vector.broadcast %cst_25 : f32 to vector<8x256xf32>
    %40 = arith.maximumf %38, %39 : vector<8x256xf32>
    %c0_26 = arith.constant 0 : index
    %c2176 = arith.constant 2176 : index
    %41 = vector.load %arg10[%c0_26, %c2176] : memref<1x3968xf32, #tpu.memory_space<vmem>>, vector<1x512xf32>
    %42 = arith.truncf %40 : vector<8x256xf32> to vector<8x256xbf16>
    %c0_27 = arith.constant 0 : index
    %c0_28 = arith.constant 0 : index
    %43 = vector.load %arg7[%c0_27, %c0_28] : memref<256x512xbf16, #tpu.memory_space<vmem>>, vector<256x512xbf16>
    %cst_29 = arith.constant dense<0.000000e+00> : vector<8x512xf32>
    %44 = tpu.matmul %42, %43, %cst_29 {dimension_numbers = #tpu.dot_dimension_numbers<[1], [0], [0], [1], [0, 0, 1, 1], [], []>} : vector<8x256xbf16>, vector<256x512xbf16>, vector<8x512xf32> -> vector<8x512xf32>
    %45 = vector.broadcast %41 : vector<1x512xf32> to vector<8x512xf32>
    %46 = arith.addf %44, %45 : vector<8x512xf32>
    %cst_30 = arith.constant 0.000000e+00 : f32
    %47 = vector.broadcast %cst_30 : f32 to vector<8x512xf32>
    %48 = arith.maximumf %46, %47 : vector<8x512xf32>
    %c0_31 = arith.constant 0 : index
    %c2688 = arith.constant 2688 : index
    %49 = vector.load %arg10[%c0_31, %c2688] : memref<1x3968xf32, #tpu.memory_space<vmem>>, vector<1x1024xf32>
    %50 = arith.truncf %48 : vector<8x512xf32> to vector<8x512xbf16>
    %c0_32 = arith.constant 0 : index
    %c0_33 = arith.constant 0 : index
    %51 = vector.load %arg8[%c0_32, %c0_33] : memref<512x1024xbf16, #tpu.memory_space<vmem>>, vector<512x1024xbf16>
    %cst_34 = arith.constant dense<0.000000e+00> : vector<8x1024xf32>
    %52 = tpu.matmul %50, %51, %cst_34 {dimension_numbers = #tpu.dot_dimension_numbers<[1], [0], [0], [1], [0, 0, 1, 1], [], []>} : vector<8x512xbf16>, vector<512x1024xbf16>, vector<8x1024xf32> -> vector<8x1024xf32>
    %53 = vector.broadcast %49 : vector<1x1024xf32> to vector<8x1024xf32>
    %54 = arith.addf %52, %53 : vector<8x1024xf32>
    %cst_35 = arith.constant 0.000000e+00 : f32
    %55 = vector.broadcast %cst_35 : f32 to vector<8x1024xf32>
    %56 = arith.maximumf %54, %55 : vector<8x1024xf32>
    %c0_36 = arith.constant 0 : index
    %c3712 = arith.constant 3712 : index
    %57 = vector.load %arg10[%c0_36, %c3712] : memref<1x3968xf32, #tpu.memory_space<vmem>>, vector<1x256xf32>
    %58 = arith.truncf %56 : vector<8x1024xf32> to vector<8x1024xbf16>
    %c0_37 = arith.constant 0 : index
    %c0_38 = arith.constant 0 : index
    %59 = vector.load %arg9[%c0_37, %c0_38] : memref<1024x256xbf16, #tpu.memory_space<vmem>>, vector<1024x256xbf16>
    %cst_39 = arith.constant dense<0.000000e+00> : vector<8x256xf32>
    %60 = tpu.matmul %58, %59, %cst_39 {dimension_numbers = #tpu.dot_dimension_numbers<[1], [0], [0], [1], [0, 0, 1, 1], [], []>} : vector<8x1024xbf16>, vector<1024x256xbf16>, vector<8x256xf32> -> vector<8x256xf32>
    %61 = vector.broadcast %57 : vector<1x256xf32> to vector<8x256xf32>
    %62 = arith.addf %60, %61 : vector<8x256xf32>
    %63 = math.tanh %62 : vector<8x256xf32>
    %c0_40 = arith.constant 0 : index
    %c0_41 = arith.constant 0 : index
    %64 = vector.load %arg11[%c0_40, %c0_41] : memref<8x256xf32, #tpu.memory_space<vmem>>, vector<8x256xf32>
    tpu.vector_store %arg11[%c0_40, %c0_41], %63 {strides = array<i32>} : memref<8x256xf32, #tpu.memory_space<vmem>>, vector<8x256xf32>,
    return
  }
  func.func @transform_0(%arg0: i32) -> (i32, i32) {
    %c0_i32 = arith.constant 0 : i32
    %c0_i32_0 = arith.constant 0 : i32
    return %arg0, %c0_i32 : i32, i32
  }
  func.func @transform_1(%arg0: i32) -> (i32, i32) {
    %c0_i32 = arith.constant 0 : i32
    %c0_i32_0 = arith.constant 0 : i32
    %c0_i32_1 = arith.constant 0 : i32
    return %c0_i32, %c0_i32_0 : i32, i32
  }
  func.func @transform_2(%arg0: i32) -> (i32, i32) {
    %c0_i32 = arith.constant 0 : i32
    %c0_i32_0 = arith.constant 0 : i32
    %c0_i32_1 = arith.constant 0 : i32
    return %c0_i32, %c0_i32_0 : i32, i32
  }
  func.func @transform_3(%arg0: i32) -> (i32, i32) {
    %c0_i32 = arith.constant 0 : i32
    %c0_i32_0 = arith.constant 0 : i32
    %c0_i32_1 = arith.constant 0 : i32
    return %c0_i32, %c0_i32_0 : i32, i32
  }
  func.func @transform_4(%arg0: i32) -> (i32, i32) {
    %c0_i32 = arith.constant 0 : i32
    %c0_i32_0 = arith.constant 0 : i32
    %c0_i32_1 = arith.constant 0 : i32
    return %c0_i32, %c0_i32_0 : i32, i32
  }
  func.func @transform_5(%arg0: i32) -> (i32, i32) {
    %c0_i32 = arith.constant 0 : i32
    %c0_i32_0 = arith.constant 0 : i32
    %c0_i32_1 = arith.constant 0 : i32
    return %c0_i32, %c0_i32_0 : i32, i32
  }
  func.func @transform_6(%arg0: i32) -> (i32, i32) {
    %c0_i32 = arith.constant 0 : i32
    %c0_i32_0 = arith.constant 0 : i32
    %c0_i32_1 = arith.constant 0 : i32
    return %c0_i32, %c0_i32_0 : i32, i32
  }
  func.func @transform_7(%arg0: i32) -> (i32, i32) {
    %c0_i32 = arith.constant 0 : i32
    %c0_i32_0 = arith.constant 0 : i32
    %c0_i32_1 = arith.constant 0 : i32
    return %c0_i32, %c0_i32_0 : i32, i32
  }
  func.func @transform_8(%arg0: i32) -> (i32, i32) {
    %c0_i32 = arith.constant 0 : i32
    %c0_i32_0 = arith.constant 0 : i32
    %c0_i32_1 = arith.constant 0 : i32
    return %c0_i32, %c0_i32_0 : i32, i32
  }
  func.func @transform_9(%arg0: i32) -> (i32, i32) {
    %c0_i32 = arith.constant 0 : i32
    %c0_i32_0 = arith.constant 0 : i32
    %c0_i32_1 = arith.constant 0 : i32
    return %c0_i32, %c0_i32_0 : i32, i32
  }
  func.func @transform_10(%arg0: i32) -> (i32, i32) {
    %c0_i32 = arith.constant 0 : i32
    %c0_i32_0 = arith.constant 0 : i32
    return %arg0, %c0_i32 : i32, i32
  }
}

</mosaic_0001>

<bundles_post_ra>
// kernel: tpu_custom_call.1
= control target key start
LH: loop header
LB: loop body
LE: loop exit
PB: predicated region body
PF: predicated region fallthrough
CT: control target
= control target key end

     0   :  { %15 = vsyncpa [#allocation3], 0  ;;  %s9723_s0 = inlined_call_operand.hbm [shape: f32[8,256], index: 0, kind: input, shape index: {}]   ;;  %s9724_s1 = inlined_call_operand.hbm [shape: bf16[256,1024], index: 1, kind: input, shape index: {}]   ;;  %s9725_s2 = inlined_call_operand.hbm [shape: bf16[1024,512], index: 2, kind: input, shape index: {}]   ;;  %s9726_s3 = inlined_call_operand.hbm [shape: bf16[512,256], index: 3, kind: input, shape index: {}]   ;;  %s9727_s4 = inlined_call_operand.hbm [shape: bf16[256,128], index: 4, kind: input, shape index: {}]   ;;  %s9728_s5 = inlined_call_operand.hbm [shape: bf16[128,256], index: 5, kind: input, shape index: {}]   ;;  %s9729_s6 = inlined_call_operand.hbm [shape: bf16[256,512], index: 6, kind: input, shape index: {}]   ;;  %s9730_s7 = inlined_call_operand.hbm [shape: bf16[512,1024], index: 7, kind: input, shape index: {}]   ;;  %s9731_s8 = inlined_call_operand.hbm [shape: bf16[1024,256], index: 8, kind: input, shape index: {}]   ;;  %s9732_s9 = inlined_call_operand.vmem [shape: f32[1,3968], index: 9, kind: input, shape index: {}]   ;;  %s9733_s10 = inlined_call_operand.hbm [shape: f32[8,256], index: 10, kind: output, shape index: {}]  }
   0x1   :  { %16 = vsyncpa [#allocation6], 0 }
   0x2   :  { %17 = vsyncpa [#allocation9], 0 }
   0x3   :  { %18 = vsyncpa [#allocation12], 0 }
   0x4   :  { %19 = vsyncpa [#allocation15], 0 }
   0x5   :  { %20 = vsyncpa [#allocation4], 0  ;;  %s9328_s13 = smov [#allocation5]   ;;  %s9096_s17 = scalar_lea.hbm %s9724_s1, 16384 }
   0x6   :  { %s36_s14 = sshll.u32 %s9328_s13, 4  ;;  %p9097_p0 = scmp.ne.s32.totalorder %s9724_s1, %s9096_s17  ;;  %s37_s14 = int_to_ptr.vmem [resolvable:$true] %s36_s14 }
   0x7   :  { %p9100_p1 = scmp.lt.u32.totalorder %s9096_s17, %s9724_s1 }
   0x9   :  { %p9102_p2 = pnand %p9100_p1, %p9097_p0 }
   0xb   :  { %9105 = shalt.err (!%p9102_p2)
}
   0xc   :  { %s9106_s22 = scalar_lea.vmem %s37_s14, 16384  ;;  %p9111_p4 = scmp.lt.s32.totalorder %s37_s14, %s37_s14 }
   0xd   :  { %p9107_p3 = scmp.ne.s32.totalorder %s37_s14, %s9106_s22  ;;  %p9112_p5 = scmp.lt.s32.totalorder %s9106_s22, %s9106_s22 }
   0xf   :  { %p9113_p6 = por %p9112_p5, %p9111_p4 }
  0x11   :  { %p9114_p7 = pnand %p9113_p6, %p9107_p3 }
  0x13   :  { %9117 = shalt.err (!%p9114_p7)
}
  0x14   :  { %s9329_s23 = smov 512   ;;  %s9330_s24 = smov 32  }
  0x15   :  { %42 = dma.hbm_to_vmem [thread:$0]  %s9724_s1, 16384, %s37_s14, [#allocation6], %s9329_s23, %s9329_s23, %s9330_s24  }
  0x16   :  { %s9331_s27 = smov [#allocation8]   ;;  %s9118_s11 = scalar_lea.hbm %s9726_s3, 8192 }
  0x17   :  { %s60_s28 = sshll.u32 %s9331_s27, 4  ;;  %p9119_p8 = scmp.ne.s32.totalorder %s9726_s3, %s9118_s11  ;;  %s61_s28 = int_to_ptr.vmem [resolvable:$true] %s60_s28 }
  0x18   :  { %p9122_p9 = scmp.lt.u32.totalorder %s9118_s11, %s9726_s3 }
  0x1a   :  { %p9124_p10 = pnand %p9122_p9, %p9119_p8 }
  0x1c   :  { %9127 = shalt.err (!%p9124_p10)
}
  0x1d   :  { %s9128_s17 = scalar_lea.vmem %s61_s28, 8192  ;;  %p9133_p12 = scmp.lt.s32.totalorder %s61_s28, %s61_s28 }
  0x1e   :  { %p9129_p11 = scmp.ne.s32.totalorder %s61_s28, %s9128_s17  ;;  %p9134_p13 = scmp.lt.s32.totalorder %s9128_s17, %s9128_s17 }
  0x20   :  { %p9135_p0 = por %p9134_p13, %p9133_p12 }
  0x22   :  { %p9136_p1 = pnand %p9135_p0, %p9129_p11 }
  0x24   :  { %9139 = shalt.err (!%p9136_p1)
}
  0x25   :  { %s9332_s1 = smov 128   ;;  %s9333_s14 = smov 8  }
  0x26   :  { %66 = dma.hbm_to_vmem [thread:$0]  %s9726_s3, 8192, %s61_s28, [#allocation9], %s9332_s1, %s9332_s1, %s9333_s14  }
  0x27   :  { %s9334_s20 = smov [#allocation11]   ;;  %s9335_s22 = smov [#allocation14]  }
  0x28   :  { %s84_s21 = sshll.u32 %s9334_s20, 4  ;;  %s108_s25 = sshll.u32 %s9335_s22, 4  ;;  %s85_s21 = int_to_ptr.vmem [resolvable:$true] %s84_s21  ;;  %s9432_s25 = int_to_ptr.vmem [resolvable:$true] %s108_s25 }
  0x29   :  { %s9140_s29 = scalar_lea.hbm %s9728_s5, 2048 }
  0x2a   :  { %p9141_p2 = scmp.ne.s32.totalorder %s9728_s5, %s9140_s29  ;;  %p9144_p3 = scmp.lt.u32.totalorder %s9140_s29, %s9728_s5 }
  0x2c   :  { %p9146_p4 = pnand %p9144_p3, %p9141_p2 }
  0x2e   :  { %9149 = shalt.err (!%p9146_p4)
}
  0x2f   :  { %s9150_s3 = scalar_lea.vmem %s85_s21, 2048  ;;  %p9155_p6 = scmp.lt.s32.totalorder %s85_s21, %s85_s21 }
  0x30   :  { %p9151_p5 = scmp.ne.s32.totalorder %s85_s21, %s9150_s3  ;;  %p9156_p7 = scmp.lt.s32.totalorder %s9150_s3, %s9150_s3 }
  0x32   :  { %p9157_p8 = por %p9156_p7, %p9155_p6 }
  0x34   :  { %p9158_p9 = pnand %p9157_p8, %p9151_p5 }
  0x36   :  { %9161 = shalt.err (!%p9158_p9)
}
  0x37   :  { %90 = dma.hbm_to_vmem [thread:$0]  %s9728_s5, 2048, %s85_s21, [#allocation12], %s9332_s1, %s9332_s1, %s9333_s14  }
  0x38   :  { %s9162_s18 = scalar_lea.hbm %s9730_s7, 32768 }
  0x39   :  { %p9163_p10 = scmp.ne.s32.totalorder %s9730_s7, %s9162_s18  ;;  %p9166_p11 = scmp.lt.u32.totalorder %s9162_s18, %s9730_s7 }
  0x3b   :  { %p9168_p12 = pnand %p9166_p11, %p9163_p10 }
  0x3d   :  { %9171 = shalt.err (!%p9168_p12)
}
  0x3e   :  { %s9172_s27 = scalar_lea.vmem %s9432_s25, 32768  ;;  %p9177_p0 = scmp.lt.s32.totalorder %s9432_s25, %s9432_s25 }
  0x3f   :  { %p9173_p13 = scmp.ne.s32.totalorder %s9432_s25, %s9172_s27  ;;  %p9178_p1 = scmp.lt.s32.totalorder %s9172_s27, %s9172_s27 }
  0x41   :  { %p9179_p2 = por %p9178_p1, %p9177_p0 }
  0x43   :  { %p9180_p3 = pnand %p9179_p2, %p9173_p13 }
  0x45   :  { %9183 = shalt.err (!%p9180_p3)
}
  0x46   :  { %114 = dma.hbm_to_vmem [thread:$0]  %s9730_s7, 32768, %s9432_s25, [#allocation15], %s9329_s23, %s9329_s23, %s9330_s24  }
  0x47   :  { %s9336_s29 = smov [#allocation2]   ;;  %s9337_s11 = smov [#allocation7]  }
  0x48   :  { %s27_s30 = sshll.u32 %s9336_s29, 4  ;;  %s48_s12 = sshll.u32 %s9337_s11, 4  ;;  %s28_s30 = int_to_ptr.vmem [resolvable:$true] %s27_s30  ;;  %s9469_s12 = int_to_ptr.vmem [resolvable:$true] %s48_s12 }
  0x49   :  { %s9184_s28 = scalar_lea.hbm %s9723_s0, 256 }
  0x4a   :  { %p9185_p4 = scmp.ne.s32.totalorder %s9723_s0, %s9184_s28  ;;  %p9188_p5 = scmp.lt.u32.totalorder %s9184_s28, %s9723_s0 }
  0x4c   :  { %p9190_p6 = pnand %p9188_p5, %p9185_p4 }
  0x4e   :  { %9193 = shalt.err (!%p9190_p6)
}
  0x4f   :  { %s9194_s7 = scalar_lea.vmem %s28_s30, 256  ;;  %p9199_p8 = scmp.lt.s32.totalorder %s28_s30, %s28_s30 }
  0x50   :  { %p9195_p7 = scmp.ne.s32.totalorder %s28_s30, %s9194_s7  ;;  %p9200_p9 = scmp.lt.s32.totalorder %s9194_s7, %s9194_s7 }
  0x52   :  { %p9201_p10 = por %p9200_p9, %p9199_p8 }
  0x54   :  { %p9202_p11 = pnand %p9201_p10, %p9195_p7 }
  0x56   :  { %9205 = shalt.err (!%p9202_p11)
}
  0x57   :  { %30 = dma.hbm_to_vmem [thread:$0]  %s9723_s0, 256, %s28_s30, [#allocation3]  }
  0x58   :  { %s9206_s20 = scalar_lea.hbm %s9725_s2, 32768 }
  0x59   :  { %p9207_p12 = scmp.ne.s32.totalorder %s9725_s2, %s9206_s20  ;;  %p9210_p13 = scmp.lt.u32.totalorder %s9206_s20, %s9725_s2 }
  0x5b   :  { %p9212_p0 = pnand %p9210_p13, %p9207_p12 }
  0x5d   :  { %9215 = shalt.err (!%p9212_p0)
}
  0x5e   :  { %s9216_s21 = scalar_lea.vmem %s9469_s12, 32768  ;;  %p9221_p2 = scmp.lt.s32.totalorder %s9469_s12, %s9469_s12 }
  0x5f   :  { %p9217_p1 = scmp.ne.s32.totalorder %s9469_s12, %s9216_s21  ;;  %p9222_p3 = scmp.lt.s32.totalorder %s9216_s21, %s9216_s21 }
  0x61   :  { %p9223_p4 = por %p9222_p3, %p9221_p2 }
  0x63   :  { %p9224_p5 = pnand %p9223_p4, %p9217_p1 }
  0x65   :  { %9227 = shalt.err (!%p9224_p5)
}
  0x66   :  { %s9338_s0 = smov 256   ;;  %s9339_s29 = smov 16  }
  0x67   :  { %54 = dma.hbm_to_vmem [thread:$0]  %s9725_s2, 32768, %s9469_s12, [#allocation6], %s9338_s0, %s9338_s0, %s9339_s29  }
  0x68   :  { %s9340_s13 = smov [#allocation10]   ;;  %s9228_s16 = scalar_lea.hbm %s9727_s4, 2048 }
  0x69   :  { %s72_s3 = sshll.u32 %s9340_s13, 4  ;;  %p9229_p6 = scmp.ne.s32.totalorder %s9727_s4, %s9228_s16  ;;  %s73_s3 = int_to_ptr.vmem [resolvable:$true] %s72_s3 }
  0x6a   :  { %p9232_p7 = scmp.lt.u32.totalorder %s9228_s16, %s9727_s4 }
  0x6c   :  { %p9234_p8 = pnand %p9232_p7, %p9229_p6 }
  0x6e   :  { %9237 = shalt.err (!%p9234_p8)
}
  0x6f   :  { %s9238_s24 = scalar_lea.vmem %s73_s3, 2048  ;;  %p9243_p10 = scmp.lt.s32.totalorder %s73_s3, %s73_s3 }
  0x70   :  { %p9239_p9 = scmp.ne.s32.totalorder %s73_s3, %s9238_s24  ;;  %p9244_p11 = scmp.lt.s32.totalorder %s9238_s24, %s9238_s24 }
  0x72   :  { %p9245_p12 = por %p9244_p11, %p9243_p10 }
  0x74   :  { %p9246_p13 = pnand %p9245_p12, %p9239_p9 }
  0x76   :  { %9249 = shalt.err (!%p9246_p13)
}
  0x77   :  { %s9341_s2 = smov 64   ;;  %s9342_s12 = smov 4  }
  0x78   :  { %78 = dma.hbm_to_vmem [thread:$0]  %s9727_s4, 2048, %s73_s3, [#allocation9], %s9341_s2, %s9341_s2, %s9342_s12  }
  0x79   :  { %s9343_s20 = smov [#allocation13]   ;;  %s9344_s26 = smov [#allocation16]  }
  0x7a   :  { %s96_s22 = sshll.u32 %s9343_s20, 4  ;;  %s120_s27 = sshll.u32 %s9344_s26, 4  ;;  %s97_s22 = int_to_ptr.vmem [resolvable:$true] %s96_s22  ;;  %s121_s27 = int_to_ptr.vmem [resolvable:$true] %s120_s27 }
  0x7b   :  { %s9250_s30 = scalar_lea.hbm %s9729_s6, 8192 }
  0x7c   :  { %p9251_p0 = scmp.ne.s32.totalorder %s9729_s6, %s9250_s30  ;;  %p9254_p1 = scmp.lt.u32.totalorder %s9250_s30, %s9729_s6 }
  0x7e   :  { %p9256_p2 = pnand %p9254_p1, %p9251_p0 }
  0x80   :  { %9259 = shalt.err (!%p9256_p2)
}
  0x81   :  { %s9260_s4 = scalar_lea.vmem %s97_s22, 8192  ;;  %p9265_p4 = scmp.lt.s32.totalorder %s97_s22, %s97_s22 }
  0x82   :  { %p9261_p3 = scmp.ne.s32.totalorder %s97_s22, %s9260_s4  ;;  %p9266_p5 = scmp.lt.s32.totalorder %s9260_s4, %s9260_s4 }
  0x84   :  { %p9267_p6 = por %p9266_p5, %p9265_p4 }
  0x86   :  { %p9268_p7 = pnand %p9267_p6, %p9261_p3 }
  0x88   :  { %9271 = shalt.err (!%p9268_p7)
}
  0x89   :  { %102 = dma.hbm_to_vmem [thread:$0]  %s9729_s6, 8192, %s97_s22, [#allocation12], %s9338_s0, %s9338_s0, %s9339_s29  }
  0x8a   :  { %s9272_s7 = scalar_lea.hbm %s9731_s8, 16384 }
  0x8b   :  { %p9273_p8 = scmp.ne.s32.totalorder %s9731_s8, %s9272_s7  ;;  %p9276_p9 = scmp.lt.u32.totalorder %s9272_s7, %s9731_s8 }
  0x8d   :  { %p9278_p10 = pnand %p9276_p9, %p9273_p8 }
  0x8f   :  { %9281 = shalt.err (!%p9278_p10)
}
  0x90   :  { %s9282_s25 = scalar_lea.vmem %s121_s27, 16384  ;;  %p9287_p12 = scmp.lt.s32.totalorder %s121_s27, %s121_s27 }
  0x91   :  { %p9283_p11 = scmp.ne.s32.totalorder %s121_s27, %s9282_s25  ;;  %p9288_p13 = scmp.lt.s32.totalorder %s9282_s25, %s9282_s25 }
  0x93   :  { %p9289_p0 = por %p9288_p13, %p9287_p12 }
  0x95   :  { %p9290_p1 = pnand %p9289_p0, %p9283_p11 }
  0x97   :  { %9293 = shalt.err (!%p9290_p1)
}
  0x98   :  { %126 = dma.hbm_to_vmem [thread:$0]  %s9731_s8, 16384, %s121_s27, [#allocation15], %s9332_s1, %s9332_s1, %s9333_s14  }
  0x99   :  { %9316 = dma.done.wait [#allocation3], 256  }
  0x9a   :  { %9317 = vsyncadd [#allocation3], 4294967040 }
  0x9b   :  { %9318 = dma.done.wait [#allocation6], 49152  }
  0x9c   :  { %9319 = vsyncadd [#allocation6], 4294918144 }
  0x9d   :  { %9320 = dma.done.wait [#allocation9], 10240  }
  0x9e   :  { %9321 = vsyncadd [#allocation9], 4294957056 }
  0x9f   :  { %9322 = dma.done.wait [#allocation12], 10240  }
  0xa0   :  { %9323 = vsyncadd [#allocation12], 4294957056 }
  0xa1   :  { %9324 = dma.done.wait [#allocation15], 49152  }
  0xa2   :  { %9325 = vsyncadd [#allocation15], 4294918144  ;;  %v162_v0 = vld [vmem:[#allocation5] sm:$0xff]  ;;  %v158_v17 = vld [vmem:[#allocation2 + $0x8] sm:$0xff]  ;;  %s9346_s4 = smov [#allocation17]  }
  0xa3   :  { %v166_v1 = vld [vmem:[#allocation5 + $0x20] sm:$0xff]  ;;  %v9545_v18 = vpack.c.bf16 %v158_v17, %v158_v17  ;;  %v165_v35 = vld [vmem:[#allocation5 + $0x18] sm:$0xff]  ;;  %s7229_s3 = sshll.u32 %s9346_s4, 4  ;;  %s7230_s3 = int_to_ptr.vmem [resolvable:$true] %s7229_s3 }
  0xa4   :  { %v170_v2 = vld [vmem:[#allocation5 + $0x40] sm:$0xff]  ;;  %v7243_v3 = vcombine.high %v162_v0, %v166_v1  ;;  %v7242_v4 = vcombine.low %v162_v0, %v166_v1  ;;  %v169_v36 = vld [vmem:[#allocation5 + $0x38] sm:$0xff]  ;;  %p9299_p3 = scmp.lt.s32.totalorder %s7230_s3, %s7230_s3 }
  0xa5   :  { %v174_v5 = vld [vmem:[#allocation5 + $0x60] sm:$0xff]  ;;  %1003 = vmatprep.mubr.bf16.mxu0 %v9545_v18  ;;  %1126 = vmatprep.mubr.bf16.mxu1 %v9545_v18  ;;  %v7249_v40 = vcombine.high %v165_v35, %v169_v36  ;;  %v7248_v42 = vcombine.low %v165_v35, %v169_v36  ;;  %v173_v43 = vld [vmem:[#allocation5 + $0x58] sm:$0xff]  ;;  %v157_v36 = vld [vmem:[#allocation2] sm:$0xff] }
  0xa6   :  { %v7251_v6 = vcombine.high %v170_v2, %v174_v5  ;;  %v178_v7 = vld [vmem:[#allocation5 + $0x80] sm:$0xff]  ;;  %971 = vmatprep.subr.bf16.mxu0 %v7243_v3  ;;  %v7250_v9 = vcombine.low %v170_v2, %v174_v5  ;;  %v177_v44 = vld [vmem:[#allocation5 + $0x78] sm:$0xff] }
  0xa7   :  { %v182_v8 = vld [vmem:[#allocation5 + $0xa0] sm:$0xff]  ;;  %972 = vmatpush1.bf16.msra.mxu0 %v7242_v4  ;;  %1094 = vmatprep.subr.bf16.mxu1 %v7249_v40  ;;  %v7257_v48 = vcombine.high %v173_v43, %v177_v44  ;;  %v7256_v50 = vcombine.low %v173_v43, %v177_v44  ;;  %v181_v51 = vld [vmem:[#allocation5 + $0x98] sm:$0xff]  ;;  %v171_v40 = vld [vmem:[#allocation5 + $0x48] sm:$0xff] }
  0xa8   :  { %973 = vmatprep.subr.bf16.mxu0 %v7251_v6  ;;  %v7259_v10 = vcombine.high %v178_v7, %v182_v8  ;;  %v186_v11 = vld [vmem:[#allocation5 + $0xc0] sm:$0xff]  ;;  %v7258_v13 = vcombine.low %v178_v7, %v182_v8  ;;  %1095 = vmatpush1.bf16.msra.mxu1 %v7248_v42  ;;  %v185_v52 = vld [vmem:[#allocation5 + $0xb8] sm:$0xff] }
  0xa9   :  { %v190_v12 = vld [vmem:[#allocation5 + $0xe0] sm:$0xff]  ;;  %1096 = vmatprep.subr.bf16.mxu1 %v7257_v48  ;;  %v7265_v56 = vcombine.high %v181_v51, %v185_v52  ;;  %v7264_v58 = vcombine.low %v181_v51, %v185_v52  ;;  %v189_v59 = vld [vmem:[#allocation5 + $0xd8] sm:$0xff] }
  0xaa   :  { %v7267_v14 = vcombine.high %v186_v11, %v190_v12  ;;  %v194_v15 = vld [vmem:[#allocation5 + $0x100] sm:$0xff]  ;;  %v7266_v19 = vcombine.low %v186_v11, %v190_v12  ;;  %v193_v60 = vld [vmem:[#allocation5 + $0xf8] sm:$0xff] }
  0xab   :  { %974 = vmatpush1.bf16.msra.mxu0 %v7250_v9  ;;  %v198_v16 = vld [vmem:[#allocation5 + $0x120] sm:$0xff]  ;;  %v7273_v0 = vcombine.high %v189_v59, %v193_v60  ;;  %v7272_v2 = vcombine.low %v189_v59, %v193_v60  ;;  %v197_v3 = vld [vmem:[#allocation5 + $0x118] sm:$0xff] }
  0xac   :  { %975 = vmatprep.subr.bf16.mxu0 %v7259_v10  ;;  %v7275_v20 = vcombine.high %v194_v15, %v198_v16  ;;  %v202_v21 = vld [vmem:[#allocation5 + $0x140] sm:$0xff]  ;;  %v7274_v23 = vcombine.low %v194_v15, %v198_v16  ;;  %1097 = vmatpush1.bf16.msra.mxu1 %v7256_v50  ;;  %v201_v4 = vld [vmem:[#allocation5 + $0x138] sm:$0xff]  ;;  %v183_v50 = vld [vmem:[#allocation5 + $0xa8] sm:$0xff] }
  0xad   :  { %v206_v22 = vld [vmem:[#allocation5 + $0x160] sm:$0xff]  ;;  %1098 = vmatprep.subr.bf16.mxu1 %v7265_v56  ;;  %v7281_v8 = vcombine.high %v197_v3, %v201_v4  ;;  %v7280_v10 = vcombine.low %v197_v3, %v201_v4  ;;  %v205_v11 = vld [vmem:[#allocation5 + $0x158] sm:$0xff] }
  0xae   :  { %v7283_v24 = vcombine.high %v202_v21, %v206_v22  ;;  %v210_v25 = vld [vmem:[#allocation5 + $0x180] sm:$0xff]  ;;  %v7282_v27 = vcombine.low %v202_v21, %v206_v22  ;;  %v209_v12 = vld [vmem:[#allocation5 + $0x178] sm:$0xff] }
  0xaf   :  { %976 = vmatpush1.bf16.msra.mxu0 %v7258_v13  ;;  %v214_v26 = vld [vmem:[#allocation5 + $0x1a0] sm:$0xff]  ;;  %v7289_v16 = vcombine.high %v205_v11, %v209_v12  ;;  %v217_v21 = vld [vmem:[#allocation5 + $0x1b8] sm:$0xff] }
  0xb0   :  { %977 = vmatprep.subr.bf16.mxu0 %v7267_v14  ;;  %v7291_v28 = vcombine.high %v210_v25, %v214_v26  ;;  %v218_v29 = vld [vmem:[#allocation5 + $0x1c0] sm:$0xff]  ;;  %v7290_v31 = vcombine.low %v210_v25, %v214_v26  ;;  %1099 = vmatpush1.bf16.msra.mxu1 %v7264_v58  ;;  %v253_v56 = vld [vmem:[#allocation5 + $0x2d8] sm:$0xff] }
  0xb1   :  { %v222_v30 = vld [vmem:[#allocation5 + $0x1e0] sm:$0xff]  ;;  %1100 = vmatprep.subr.bf16.mxu1 %v7273_v0  ;;  %v257_v60 = vld [vmem:[#allocation5 + $0x2f8] sm:$0xff] }
  0xb2   :  { %v7299_v32 = vcombine.high %v218_v29, %v222_v30  ;;  %v226_v33 = vld [vmem:[#allocation5 + $0x200] sm:$0xff]  ;;  %v7298_v37 = vcombine.low %v218_v29, %v222_v30  ;;  %v225_v29 = vld [vmem:[#allocation5 + $0x1f8] sm:$0xff]  ;;  %v7336_v3 = vcombine.low %v253_v56, %v257_v60 }
  0xb3   :  { %978 = vmatpush1.bf16.msra.mxu0 %v7266_v19  ;;  %v230_v34 = vld [vmem:[#allocation5 + $0x220] sm:$0xff]  ;;  %v7288_v19 = vcombine.low %v205_v11, %v209_v12  ;;  %v265_v0 = vld [vmem:[#allocation5 + $0x338] sm:$0xff] }
  0xb4   :  { %979 = vmatprep.subr.bf16.mxu0 %v7275_v20  ;;  %v234_v38 = vld [vmem:[#allocation5 + $0x240] sm:$0xff]  ;;  %v7307_v41 = vcombine.high %v226_v33, %v230_v34  ;;  %v7306_v45 = vcombine.low %v226_v33, %v230_v34  ;;  %1101 = vmatpush1.bf16.msra.mxu1 %v7272_v2  ;;  %v213_v20 = vld [vmem:[#allocation5 + $0x198] sm:$0xff]  ;;  %v191_v2 = vld [vmem:[#allocation5 + $0xe8] sm:$0xff] }
  0xb5   :  { %v238_v39 = vld [vmem:[#allocation5 + $0x260] sm:$0xff]  ;;  %1102 = vmatprep.subr.bf16.mxu1 %v7281_v8  ;;  %v7297_v25 = vcombine.high %v213_v20, %v217_v21  ;;  %v273_v8 = vld [vmem:[#allocation5 + $0x378] sm:$0xff] }
  0xb6   :  { %v242_v46 = vld [vmem:[#allocation5 + $0x280] sm:$0xff]  ;;  %v7315_v49 = vcombine.high %v234_v38, %v238_v39  ;;  %v7314_v53 = vcombine.low %v234_v38, %v238_v39  ;;  %v233_v38 = vld [vmem:[#allocation5 + $0x238] sm:$0xff] }
  0xb7   :  { %980 = vmatpush1.bf16.msra.mxu0 %v7274_v23  ;;  %v246_v47 = vld [vmem:[#allocation5 + $0x2a0] sm:$0xff] }
  0xb8   :  { %981 = vmatprep.subr.bf16.mxu0 %v7283_v24  ;;  %v250_v54 = vld [vmem:[#allocation5 + $0x2c0] sm:$0xff]  ;;  %v7323_v57 = vcombine.high %v242_v46, %v246_v47  ;;  %v7322_v61 = vcombine.low %v242_v46, %v246_v47  ;;  %1103 = vmatpush1.bf16.msra.mxu1 %v7280_v10  ;;  %v237_v46 = vld [vmem:[#allocation5 + $0x258] sm:$0xff]  ;;  %v199_v10 = vld [vmem:[#allocation5 + $0x128] sm:$0xff] }
  0xb9   :  { %v254_v55 = vld [vmem:[#allocation5 + $0x2e0] sm:$0xff]  ;;  %1104 = vmatprep.subr.bf16.mxu1 %v7289_v16  ;;  %v241_v47 = vld [vmem:[#allocation5 + $0x278] sm:$0xff] }
  0xba   :  { %v258_v62 = vld [vmem:[#allocation5 + $0x300] sm:$0xff]  ;;  %v7331_v1 = vcombine.high %v250_v54, %v254_v55  ;;  %v7330_v5 = vcombine.low %v250_v54, %v254_v55  ;;  %v7321_v51 = vcombine.high %v237_v46, %v241_v47  ;;  %v245_v54 = vld [vmem:[#allocation5 + $0x298] sm:$0xff] }
  0xbb   :  { %982 = vmatpush1.bf16.msra.mxu0 %v7282_v27  ;;  %v262_v63 = vld [vmem:[#allocation5 + $0x320] sm:$0xff]  ;;  %v7296_v27 = vcombine.low %v213_v20, %v217_v21  ;;  %v249_v55 = vld [vmem:[#allocation5 + $0x2b8] sm:$0xff] }
  0xbc   :  { %983 = vmatprep.subr.bf16.mxu0 %v7291_v28  ;;  %v266_v6 = vld [vmem:[#allocation5 + $0x340] sm:$0xff]  ;;  %v7339_v9 = vcombine.high %v258_v62, %v262_v63  ;;  %v7338_v13 = vcombine.low %v258_v62, %v262_v63  ;;  %1105 = vmatpush1.bf16.msra.mxu1 %v7288_v19  ;;  %v221_v28 = vld [vmem:[#allocation5 + $0x1d8] sm:$0xff]  ;;  %v7329_v58 = vcombine.high %v245_v54, %v249_v55 }
  0xbd   :  { %v270_v7 = vld [vmem:[#allocation5 + $0x360] sm:$0xff]  ;;  %1106 = vmatprep.subr.bf16.mxu1 %v7297_v25  ;;  %v7305_v33 = vcombine.high %v221_v28, %v225_v29  ;;  %v7304_v35 = vcombine.low %v221_v28, %v225_v29  ;;  %v7328_v59 = vcombine.low %v245_v54, %v249_v55  ;;  %v7337_v62 = vcombine.high %v253_v56, %v257_v60  ;;  %v261_v63 = vld [vmem:[#allocation5 + $0x318] sm:$0xff]  ;;  %v251_v55 = vld [vmem:[#allocation5 + $0x2c8] sm:$0xff] }
  0xbe   :  { %v274_v14 = vld [vmem:[#allocation5 + $0x380] sm:$0xff]  ;;  %v7347_v17 = vcombine.high %v266_v6, %v270_v7  ;;  %v7346_v22 = vcombine.low %v266_v6, %v270_v7  ;;  %v269_v7 = vld [vmem:[#allocation5 + $0x358] sm:$0xff]  ;;  %v7344_v11 = vcombine.low %v261_v63, %v265_v0 }
  0xbf   :  { %984 = vmatpush1.bf16.msra.mxu0 %v7290_v31  ;;  %v278_v15 = vld [vmem:[#allocation5 + $0x3a0] sm:$0xff]  ;;  %v163_v31 = vld [vmem:[#allocation5 + $0x8] sm:$0xff]  ;;  %v281_v19 = vld [vmem:[#allocation5 + $0x3b8] sm:$0xff]  ;;  %v7352_v20 = vcombine.low %v269_v7, %v273_v8 }
  0xc0   :  { %985 = vmatprep.subr.bf16.mxu0 %v7299_v32  ;;  %v282_v23 = vld [vmem:[#allocation5 + $0x3c0] sm:$0xff]  ;;  %v7355_v26 = vcombine.high %v274_v14, %v278_v15  ;;  %1107 = vmatpush1.bf16.msra.mxu1 %v7296_v27  ;;  %v7354_v30 = vcombine.low %v274_v14, %v278_v15  ;;  %v167_v32 = vld [vmem:[#allocation5 + $0x28] sm:$0xff]  ;;  %v7353_v15 = vcombine.high %v269_v7, %v273_v8  ;;  %v289_v27 = vld [vmem:[#allocation5 + $0x3f8] sm:$0xff] }
  0xc1   :  { %v286_v24 = vld [vmem:[#allocation5 + $0x3e0] sm:$0xff]  ;;  %1108 = vmatprep.subr.bf16.mxu1 %v7305_v33  ;;  %v7245_v43 = vcombine.high %v163_v31, %v167_v32  ;;  %v7244_v48 = vcombine.low %v163_v31, %v167_v32  ;;  %v207_v14 = vld [vmem:[#allocation5 + $0x168] sm:$0xff] }
  0xc2   :  { %v7363_v34 = vcombine.high %v282_v23, %v286_v24  ;;  %v7362_v39 = vcombine.low %v282_v23, %v286_v24  ;;  %v215_v23 = vld [vmem:[#allocation5 + $0x1a8] sm:$0xff] }
  0xc3   :  { %986 = vmatpush1.bf16.msra.mxu0 %v7298_v37  ;;  %v229_v37 = vld [vmem:[#allocation5 + $0x218] sm:$0xff]  ;;  %v219_v32 = vld [vmem:[#allocation5 + $0x1c8] sm:$0xff] }
  0xc4   :  { %987 = vmatprep.subr.bf16.mxu0 %v7307_v41  ;;  %1109 = vmatpush1.bf16.msra.mxu1 %v7304_v35  ;;  %v175_v41 = vld [vmem:[#allocation5 + $0x68] sm:$0xff]  ;;  %v7313_v42 = vcombine.high %v229_v37, %v233_v38  ;;  %v7312_v44 = vcombine.low %v229_v37, %v233_v38 }
  0xc5   :  { %v7253_v52 = vcombine.high %v171_v40, %v175_v41  ;;  %v223_v33 = vld [vmem:[#allocation5 + $0x1e8] sm:$0xff] }
  0xc6   :  { %1110 = vmatprep.subr.bf16.mxu1 %v7313_v42  ;;  %v8289_v37 = vld [vmem:[#allocation7 + $0xc] ss:$16 sps:$4 sm:$0xff]   ;;  %v7301_v38 = vcombine.high %v219_v32, %v223_v33  ;;  %v8317_v7 = vld [vmem:[#allocation7 + $0xa8] ss:$16 sps:$4 sm:$0xff]  }
  0xc7   :  { %988 = vmatpush1.bf16.msra.mxu0 %v7306_v45  ;;  %v9549_v45 = vpack.c.bf16 %v157_v36, %v157_v36  ;;  %v227_v36 = vld [vmem:[#allocation5 + $0x208] sm:$0xff] }
  0xc8   :  { %989 = vmatprep.subr.bf16.mxu0 %v7315_v49  ;;  %1111 = vmatpush1.bf16.msra.mxu1 %v7312_v44  ;;  %v179_v49 = vld [vmem:[#allocation5 + $0x88] sm:$0xff] }
  0xc9   :  { %1112 = vmatprep.subr.bf16.mxu1 %v7321_v51  ;;  %v7260_v4 = vcombine.low %v179_v49, %v183_v50  ;;  %v235_v42 = vld [vmem:[#allocation5 + $0x248] sm:$0xff] }
  0xca   :  { %v8307_v56 = vld [vmem:[#allocation7 + $0x6c] ss:$16 sps:$4 sm:$0xff]  }
  0xcb   :  { %990 = vmatpush1.bf16.msra.mxu0 %v7314_v53  ;;  %v7320_v53 = vcombine.low %v237_v46, %v241_v47  ;;  %v239_v46 = vld [vmem:[#allocation5 + $0x268] sm:$0xff] }
  0xcc   :  { %991 = vmatprep.subr.bf16.mxu0 %v7323_v57  ;;  %v7252_v57 = vcombine.low %v171_v40, %v175_v41  ;;  %v8287_v40 = vld [vmem:[#allocation7 + $0x8] ss:$16 sps:$4 sm:$0xff]   ;;  %v7300_v41 = vcombine.low %v219_v32, %v223_v33  ;;  %v7317_v51 = vcombine.high %v235_v42, %v239_v46  ;;  %v7316_v54 = vcombine.low %v235_v42, %v239_v46  ;;  %v8349_v33 = vld [vmem:[#allocation7 + $0x14c] ss:$16 sps:$4 sm:$0xff]   ;;  %v192_v42 = vld [vmem:[#allocation5 + $0xf0] sm:$0xff] }
  0xcd   :  { %1113 = vmatpush1.bf16.msra.mxu1 %v7320_v53  ;;  %v8293_v47 = vld [vmem:[#allocation7 + $0x28] ss:$16 sps:$4 sm:$0xff]   ;;  %v8361_v46 = vld [vmem:[#allocation7 + $0x18c] ss:$16 sps:$4 sm:$0xff]  }
  0xce   :  { %1114 = vmatprep.subr.bf16.mxu1 %v7329_v58  ;;  %v8299_v53 = vld [vmem:[#allocation7 + $0x48] ss:$16 sps:$4 sm:$0xff]  }
  0xcf   :  { %992 = vmatpush1.bf16.msra.mxu0 %v7322_v61  ;;  %v7261_v61 = vcombine.high %v179_v49, %v183_v50  ;;  %v243_v49 = vld [vmem:[#allocation5 + $0x288] sm:$0xff] }
  0xd0   :  { %993 = vmatprep.subr.bf16.mxu0 %v7331_v1  ;;  %v187_v1 = vld [vmem:[#allocation5 + $0xc8] sm:$0xff] }
  0xd1   :  { %1115 = vmatpush1.bf16.msra.mxu1 %v7328_v59  ;;  %v7269_v6 = vcombine.high %v187_v1, %v191_v2  ;;  %v7268_v12 = vcombine.low %v187_v1, %v191_v2  ;;  %v8301_v50 = vld [vmem:[#allocation7 + $0x4c] ss:$16 sps:$4 sm:$0xff]   ;;  %v8305_v59 = vld [vmem:[#allocation7 + $0x68] ss:$16 sps:$4 sm:$0xff]  }
  0xd2   :  { %1116 = vmatprep.subr.bf16.mxu1 %v7337_v62  ;;  %v255_v58 = vld [vmem:[#allocation5 + $0x2e8] sm:$0xff] }
  0xd3   :  { %994 = vmatpush1.bf16.msra.mxu0 %v7330_v5  ;;  %v7345_v5 = vcombine.high %v261_v63, %v265_v0  ;;  %v8313_v62 = vld [vmem:[#allocation7 + $0x8c] ss:$16 sps:$4 sm:$0xff]   ;;  %v7333_v63 = vcombine.high %v251_v55, %v255_v58  ;;  %v8311_v1 = vld [vmem:[#allocation7 + $0x88] ss:$16 sps:$4 sm:$0xff]   ;;  %v7332_v2 = vcombine.low %v251_v55, %v255_v58  ;;  %v212_v58 = vld [vmem:[#allocation5 + $0x190] sm:$0xff] }
  0xd4   :  { %995 = vmatprep.subr.bf16.mxu0 %v7339_v9  ;;  %v195_v9 = vld [vmem:[#allocation5 + $0x108] sm:$0xff] }
  0xd5   :  { %1117 = vmatpush1.bf16.msra.mxu1 %v7336_v3  ;;  %v7277_v16 = vcombine.high %v195_v9, %v199_v10  ;;  %v7276_v21 = vcombine.low %v195_v9, %v199_v10  ;;  %v263_v0 = vld [vmem:[#allocation5 + $0x328] sm:$0xff] }
  0xd6   :  { %1118 = vmatprep.subr.bf16.mxu1 %v7345_v5  ;;  %v267_v3 = vld [vmem:[#allocation5 + $0x348] sm:$0xff] }
  0xd7   :  { %996 = vmatpush1.bf16.msra.mxu0 %v7338_v13  ;;  %v203_v13 = vld [vmem:[#allocation5 + $0x148] sm:$0xff] }
  0xd8   :  { %997 = vmatprep.subr.bf16.mxu0 %v7347_v17  ;;  %v277_v17 = vld [vmem:[#allocation5 + $0x398] sm:$0xff]  ;;  %v7285_v25 = vcombine.high %v203_v13, %v207_v14  ;;  %v7284_v29 = vcombine.low %v203_v13, %v207_v14  ;;  %v275_v9 = vld [vmem:[#allocation5 + $0x388] sm:$0xff] }
  0xd9   :  { %1119 = vmatpush1.bf16.msra.mxu1 %v7344_v11  ;;  %v7361_v24 = vcombine.high %v277_v17, %v281_v19  ;;  %v7360_v28 = vcombine.low %v277_v17, %v281_v19  ;;  %v8325_v10 = vld [vmem:[#allocation7 + $0xcc] ss:$16 sps:$4 sm:$0xff]   ;;  %v8323_v13 = vld [vmem:[#allocation7 + $0xc8] ss:$16 sps:$4 sm:$0xff]  }
  0xda   :  { %1120 = vmatprep.subr.bf16.mxu1 %v7353_v15  ;;  %v283_v15 = vld [vmem:[#allocation5 + $0x3c8] sm:$0xff] }
  0xdb   :  { %998 = vmatpush1.bf16.msra.mxu0 %v7346_v22  ;;  %v211_v22 = vld [vmem:[#allocation5 + $0x188] sm:$0xff] }
  0xdc   :  { %999 = vmatprep.subr.bf16.mxu0 %v7355_v26  ;;  %v285_v26 = vld [vmem:[#allocation5 + $0x3d8] sm:$0xff]  ;;  %v7293_v31 = vcombine.high %v211_v22, %v215_v23  ;;  %v7292_v35 = vcombine.low %v211_v22, %v215_v23  ;;  %v287_v19 = vld [vmem:[#allocation5 + $0x3e8] sm:$0xff]  ;;  %v164_v22 = vld [vmem:[#allocation5 + $0x10] sm:$0xff] }
  0xdd   :  { %1121 = vmatpush1.bf16.msra.mxu1 %v7352_v20  ;;  %v8329_v20 = vld [vmem:[#allocation7 + $0xe8] ss:$16 sps:$4 sm:$0xff]   ;;  %v168_v23 = vld [vmem:[#allocation5 + $0x30] sm:$0xff] }
  0xde   :  { %1122 = vmatprep.subr.bf16.mxu1 %v7361_v24  ;;  %v8337_v24 = vld [vmem:[#allocation7 + $0x10c] ss:$16 sps:$4 sm:$0xff]   ;;  %v8341_v32 = vld [vmem:[#allocation7 + $0x128] ss:$16 sps:$4 sm:$0xff]  }
  0xdf   :  { %1000 = vmatpush1.bf16.msra.mxu0 %v7354_v30  ;;  %v7369_v30 = vcombine.high %v285_v26, %v289_v27 }
  0xe0   :  { %1001 = vmatprep.subr.bf16.mxu0 %v7363_v34  ;;  %v7368_v34 = vcombine.low %v285_v26, %v289_v27  ;;  %v8335_v26 = vld [vmem:[#allocation7 + $0x108] ss:$16 sps:$4 sm:$0xff]   ;;  %v8343_v27 = vld [vmem:[#allocation7 + $0x12c] ss:$16 sps:$4 sm:$0xff]  }
  0xe1   :  { %1123 = vmatpush1.bf16.msra.mxu1 %v7360_v28  ;;  %v7364_v28 = vcombine.low %v283_v15, %v287_v19 }
  0xe2   :  { %1124 = vmatprep.subr.bf16.mxu1 %v7369_v30  ;;  %v176_v30 = vld [vmem:[#allocation5 + $0x70] sm:$0xff] }
  0xe3   :  { %1002 = vmatpush1.bf16.msra.mxu0 %v7362_v39  ;;  %v231_v39 = vld [vmem:[#allocation5 + $0x228] sm:$0xff] }
  0xe4   :  { %1012 = vmatprep.subr.bf16.mxu0 %v7245_v43  ;;  %v8295_v43 = vld [vmem:[#allocation7 + $0x2c] ss:$16 sps:$4 sm:$0xff]   ;;  %v7309_v44 = vcombine.high %v227_v36, %v231_v39 }
  0xe5   :  { %1125 = vmatpush1.bf16.msra.mxu1 %v7368_v34  ;;  %v7246_v34 = vcombine.low %v164_v22, %v168_v23 }
  0xe6   :  { %1004 = vmatmul.mubr.bf16.vlgmr.msra.gmra.mrb[0].mxu0 %v9549_v45  ;;  %2873 = vmatprep.subr.bf16.mxu1 %v8289_v37 }
  0xe7   :  { %1013 = vmatpush1.bf16.msra.mxu0 %v7244_v48  ;;  %1044 = vmatprep.mubr.bf16.mxu0 %v9545_v18  ;;  %v7308_v48 = vcombine.low %v227_v36, %v231_v39  ;;  %v184_v36 = vld [vmem:[#allocation5 + $0xb0] sm:$0xff]  ;;  %v8355_v39 = vld [vmem:[#allocation7 + $0x16c] ss:$16 sps:$4 sm:$0xff]  }
  0xe8   :  { %1014 = vmatprep.subr.bf16.mxu0 %v7253_v52  ;;  %1127 = vmatmul.mubr.bf16.vlgmr.msra.gmra.mrb[0].mxu1 %v9549_v45  ;;  %v247_v52 = vld [vmem:[#allocation5 + $0x2a8] sm:$0xff] }
  0xe9   :  { %2874 = vmatpush1.bf16.msra.mxu1 %v8287_v40  ;;  %v7324_v60 = vcombine.low %v243_v49, %v247_v52 }
  0xea   :  { %2875 = vmatprep.subr.bf16.mxu1 %v8295_v43 }
  0xeb   :  { %1015 = vmatpush1.bf16.msra.mxu0 %v7252_v57  ;;  %v7325_v57 = vcombine.high %v243_v49, %v247_v52  ;;  %v200_v49 = vld [vmem:[#allocation5 + $0x130] sm:$0xff]  ;;  %v8367_v52 = vld [vmem:[#allocation7 + $0x1ac] ss:$16 sps:$4 sm:$0xff]  }
  0xec   :  { %1016 = vmatprep.subr.bf16.mxu0 %v7261_v61  ;;  %v259_v61 = vld [vmem:[#allocation5 + $0x308] sm:$0xff] }
  0xed   :  { %2876 = vmatpush1.bf16.msra.mxu1 %v8293_v47  ;;  %v7341_v5 = vcombine.high %v259_v61, %v263_v0  ;;  %v7340_v8 = vcombine.low %v259_v61, %v263_v0 }
  0xee   :  { %2877 = vmatprep.subr.bf16.mxu1 %v8301_v50 }
  0xef   :  { %1017 = vmatpush1.bf16.msra.mxu0 %v7260_v4  ;;  %v8319_v4 = vld [vmem:[#allocation7 + $0xac] ss:$16 sps:$4 sm:$0xff]  }
  0xf0   :  { %1018 = vmatprep.subr.bf16.mxu0 %v7269_v6  ;;  %v271_v6 = vld [vmem:[#allocation5 + $0x368] sm:$0xff] }
  0xf1   :  { %2878 = vmatpush1.bf16.msra.mxu1 %v8299_v53  ;;  %v7349_v11 = vcombine.high %v267_v3, %v271_v6  ;;  %v7348_v14 = vcombine.low %v267_v3, %v271_v6 }
  0xf2   :  { %2879 = vmatprep.subr.bf16.mxu1 %v8307_v56  ;;  %v8365_v56 = vld [vmem:[#allocation7 + $0x1a8] ss:$16 sps:$4 sm:$0xff]  }
  0xf3   :  { %1019 = vmatpush1.bf16.msra.mxu0 %v7268_v12  ;;  %v279_v12 = vld [vmem:[#allocation5 + $0x3a8] sm:$0xff] }
  0xf4   :  { %1020 = vmatprep.subr.bf16.mxu0 %v7277_v16  ;;  %v8331_v16 = vld [vmem:[#allocation7 + $0xec] ss:$16 sps:$4 sm:$0xff]   ;;  %v7357_v17 = vcombine.high %v275_v9, %v279_v12 }
  0xf5   :  { %2880 = vmatpush1.bf16.msra.mxu1 %v8305_v59  ;;  %v216_v59 = vld [vmem:[#allocation5 + $0x1b0] sm:$0xff] }
  0xf6   :  { %2881 = vmatprep.subr.bf16.mxu1 %v8313_v62  ;;  %v220_v62 = vld [vmem:[#allocation5 + $0x1d0] sm:$0xff]  ;;  %v7295_v0 = vcombine.high %v212_v58, %v216_v59  ;;  %v7294_v3 = vcombine.low %v212_v58, %v216_v59 }
  0xf7   :  { %1021 = vmatpush1.bf16.msra.mxu0 %v7276_v21  ;;  %v7356_v21 = vcombine.low %v275_v9, %v279_v12  ;;  %v236_v12 = vld [vmem:[#allocation5 + $0x250] sm:$0xff] }
  0xf8   :  { %1022 = vmatprep.subr.bf16.mxu0 %v7285_v25  ;;  %v7365_v25 = vcombine.high %v283_v15, %v287_v19  ;;  %v8332_v58 = vld [vmem:[#allocation7 + $0x100] ss:$16 sps:$4 sm:$0xff]   ;;  %v8340_v59 = vld [vmem:[#allocation7 + $0x124] ss:$16 sps:$4 sm:$0xff]  }
  0xf9   :  { %2882 = vmatpush1.bf16.msra.mxu1 %v8311_v1  ;;  %v224_v1 = vld [vmem:[#allocation5 + $0x1f0] sm:$0xff] }
  0xfa   :  { %2883 = vmatprep.subr.bf16.mxu1 %v8319_v4  ;;  %v228_v4 = vld [vmem:[#allocation5 + $0x210] sm:$0xff]  ;;  %v7303_v6 = vcombine.high %v220_v62, %v224_v1  ;;  %v7302_v9 = vcombine.low %v220_v62, %v224_v1 }
  0xfb   :  { %1023 = vmatpush1.bf16.msra.mxu0 %v7284_v29  ;;  %v172_v29 = vld [vmem:[#allocation5 + $0x50] sm:$0xff] }
  0xfc   :  { %1024 = vmatprep.subr.bf16.mxu0 %v7293_v31  ;;  %v7247_v31 = vcombine.high %v164_v22, %v168_v23  ;;  %v7255_v37 = vcombine.high %v172_v29, %v176_v30  ;;  %v7254_v40 = vcombine.low %v172_v29, %v176_v30  ;;  %v256_v22 = vld [vmem:[#allocation5 + $0x2f0] sm:$0xff] }
  0xfd   :  { %2884 = vmatpush1.bf16.msra.mxu1 %v8317_v7  ;;  %v232_v7 = vld [vmem:[#allocation5 + $0x230] sm:$0xff] }
  0xfe   :  { %2885 = vmatprep.subr.bf16.mxu1 %v8325_v10  ;;  %v8385_v10 = vld [vmem:[#allocation7 + $0x20c] ss:$16 sps:$4 sm:$0xff]   ;;  %v268_v29 = vld [vmem:[#allocation5 + $0x350] sm:$0xff] }
  0xff   :  { %1025 = vmatpush1.bf16.msra.mxu0 %v7292_v35  ;;  %v180_v35 = vld [vmem:[#allocation5 + $0x90] sm:$0xff] }
 0x100   :  { %1026 = vmatprep.subr.bf16.mxu0 %v7301_v38  ;;  %v8347_v38 = vld [vmem:[#allocation7 + $0x148] ss:$16 sps:$4 sm:$0xff]   ;;  %v7263_v43 = vcombine.high %v180_v35, %v184_v36  ;;  %v7262_v47 = vcombine.low %v180_v35, %v184_v36  ;;  %v272_v30 = vld [vmem:[#allocation5 + $0x370] sm:$0xff] }
 0x101   :  { %2886 = vmatpush1.bf16.msra.mxu1 %v8323_v13  ;;  %v240_v13 = vld [vmem:[#allocation5 + $0x270] sm:$0xff]  ;;  %v7350_v35 = vcombine.low %v268_v29, %v272_v30 }
 0x102   :  { %2887 = vmatprep.subr.bf16.mxu1 %v8331_v16  ;;  %v7319_v15 = vcombine.high %v236_v12, %v240_v13  ;;  %v244_v16 = vld [vmem:[#allocation5 + $0x290] sm:$0xff]  ;;  %v7318_v19 = vcombine.low %v236_v12, %v240_v13 }
 0x103   :  { %1027 = vmatpush1.bf16.msra.mxu0 %v7300_v41  ;;  %v188_v41 = vld [vmem:[#allocation5 + $0xd0] sm:$0xff] }
 0x104   :  { %1028 = vmatprep.subr.bf16.mxu0 %v7309_v44  ;;  %v8353_v44 = vld [vmem:[#allocation7 + $0x168] ss:$16 sps:$4 sm:$0xff]   ;;  %v7271_v50 = vcombine.high %v188_v41, %v192_v42  ;;  %v7270_v53 = vcombine.low %v188_v41, %v192_v42  ;;  %v8286_v42 = vld [vmem:[#allocation7 + $0x4] ss:$16 sps:$4 sm:$0xff]   ;;  %v8344_v62 = vld [vmem:[#allocation7 + $0x140] ss:$16 sps:$4 sm:$0xff]  }
 0x105   :  { %2888 = vmatpush1.bf16.msra.mxu1 %v8329_v20  ;;  %v8358_v1 = vld [vmem:[#allocation7 + $0x184] ss:$16 sps:$4 sm:$0xff]  }
 0x106   :  { %2889 = vmatprep.subr.bf16.mxu1 %v8337_v24  ;;  %v9565_v13 = vld [vmem:[%s9732_s9] sm:$0xff] }
 0x107   :  { %1029 = vmatpush1.bf16.msra.mxu0 %v7308_v48  ;;  %v196_v48 = vld [vmem:[#allocation5 + $0x110] sm:$0xff] }
 0x108   :  { %1030 = vmatprep.subr.bf16.mxu0 %v7317_v51  ;;  %v8359_v51 = vld [vmem:[#allocation7 + $0x188] ss:$16 sps:$4 sm:$0xff]   ;;  %v7279_v55 = vcombine.high %v196_v48, %v200_v49 }
 0x109   :  { %2890 = vmatpush1.bf16.msra.mxu1 %v8335_v26  ;;  %v264_v26 = vld [vmem:[#allocation5 + $0x330] sm:$0xff] }
 0x10a   :  { %2891 = vmatprep.subr.bf16.mxu1 %v8343_v27 }
 0x10b   :  { %1031 = vmatpush1.bf16.msra.mxu0 %v7316_v54  ;;  %v204_v54 = vld [vmem:[#allocation5 + $0x150] sm:$0xff] }
 0x10c   :  { %1032 = vmatprep.subr.bf16.mxu0 %v7325_v57  ;;  %v7278_v57 = vcombine.low %v196_v48, %v200_v49  ;;  %v8296_v48 = vld [vmem:[#allocation7 + $0x40] ss:$16 sps:$4 sm:$0xff]   ;;  %v8304_v49 = vld [vmem:[#allocation7 + $0x64] ss:$16 sps:$4 sm:$0xff]  }
 0x10d   :  { %2892 = vmatpush1.bf16.msra.mxu1 %v8341_v32  ;;  %v7351_v32 = vcombine.high %v268_v29, %v272_v30  ;;  %v8388_v30 = vld [vmem:[#allocation7 + $0x224] ss:$16 sps:$4 sm:$0xff]  }
 0x10e   :  { %2893 = vmatprep.subr.bf16.mxu1 %v8349_v33  ;;  %v276_v33 = vld [vmem:[#allocation5 + $0x390] sm:$0xff] }
 0x10f   :  { %1033 = vmatpush1.bf16.msra.mxu0 %v7324_v60 }
 0x110   :  { %1034 = vmatprep.subr.bf16.mxu0 %v7333_v63  ;;  %v8373_v63 = vld [vmem:[#allocation7 + $0x1cc] ss:$16 sps:$4 sm:$0xff]  }
 0x111   :  { %2894 = vmatpush1.bf16.msra.mxu1 %v8347_v38  ;;  %v288_v38 = vld [vmem:[#allocation5 + $0x3f0] sm:$0xff] }
 0x112   :  { %2895 = vmatprep.subr.bf16.mxu1 %v8355_v39 }
 0x113   :  { %1035 = vmatpush1.bf16.msra.mxu0 %v7332_v2  ;;  %v8371_v2 = vld [vmem:[#allocation7 + $0x1c8] ss:$16 sps:$4 sm:$0xff]  }
 0x114   :  { %1036 = vmatprep.subr.bf16.mxu0 %v7341_v5  ;;  %v8379_v5 = vld [vmem:[#allocation7 + $0x1ec] ss:$16 sps:$4 sm:$0xff]  }
 0x115   :  { %2896 = vmatpush1.bf16.msra.mxu1 %v8353_v44  ;;  %v8292_v44 = vld [vmem:[#allocation7 + $0x24] ss:$16 sps:$4 sm:$0xff]  }
 0x116   :  { %2897 = vmatprep.subr.bf16.mxu1 %v8361_v46  ;;  %v8290_v46 = vld [vmem:[#allocation7 + $0x20] ss:$16 sps:$4 sm:$0xff]  }
 0x117   :  { %1037 = vmatpush1.bf16.msra.mxu0 %v7340_v8  ;;  %v8377_v8 = vld [vmem:[#allocation7 + $0x1e8] ss:$16 sps:$4 sm:$0xff]  }
 0x118   :  { %1038 = vmatprep.subr.bf16.mxu0 %v7349_v11  ;;  %v7311_v11 = vcombine.high %v228_v4, %v232_v7 }
 0x119   :  { %2898 = vmatpush1.bf16.msra.mxu1 %v8359_v51  ;;  %v8310_v51 = vld [vmem:[#allocation7 + $0x84] ss:$16 sps:$4 sm:$0xff]  }
 0x11a   :  { %2899 = vmatprep.subr.bf16.mxu1 %v8367_v52  ;;  %v8308_v52 = vld [vmem:[#allocation7 + $0x80] ss:$16 sps:$4 sm:$0xff]  }
 0x11b   :  { %1039 = vmatpush1.bf16.msra.mxu0 %v7348_v14  ;;  %v7310_v14 = vcombine.low %v228_v4, %v232_v7  ;;  %v8362_v4 = vld [vmem:[#allocation7 + $0x1a0] ss:$16 sps:$4 sm:$0xff]   ;;  %v8376_v7 = vld [vmem:[#allocation7 + $0x1e4] ss:$16 sps:$4 sm:$0xff]  }
 0x11c   :  { %1040 = vmatprep.subr.bf16.mxu0 %v7357_v17  ;;  %v248_v17 = vld [vmem:[#allocation5 + $0x2b0] sm:$0xff] }
 0x11d   :  { %2900 = vmatpush1.bf16.msra.mxu1 %v8365_v56  ;;  %v7327_v20 = vcombine.high %v244_v16, %v248_v17  ;;  %v7326_v23 = vcombine.low %v244_v16, %v248_v17  ;;  %v8326_v56 = vld [vmem:[#allocation7 + $0xe0] ss:$16 sps:$4 sm:$0xff]  }
 0x11e   :  { %2901 = vmatprep.subr.bf16.mxu1 %v8373_v63  ;;  %v8352_v63 = vld [vmem:[#allocation7 + $0x164] ss:$16 sps:$4 sm:$0xff]  }
 0x11f   :  { %1041 = vmatpush1.bf16.msra.mxu0 %v7356_v21  ;;  %v252_v21 = vld [vmem:[#allocation5 + $0x2d0] sm:$0xff] }
 0x120   :  { %1042 = vmatprep.subr.bf16.mxu0 %v7365_v25  ;;  %v7335_v24 = vcombine.high %v252_v21, %v256_v22  ;;  %v260_v25 = vld [vmem:[#allocation5 + $0x310] sm:$0xff]  ;;  %v7334_v27 = vcombine.low %v252_v21, %v256_v22 }
 0x121   :  { %2902 = vmatpush1.bf16.msra.mxu1 %v8371_v2  ;;  %v8356_v2 = vld [vmem:[#allocation7 + $0x180] ss:$16 sps:$4 sm:$0xff]  }
 0x122   :  { %2903 = vmatprep.subr.bf16.mxu1 %v8379_v5  ;;  %v8370_v5 = vld [vmem:[#allocation7 + $0x1c4] ss:$16 sps:$4 sm:$0xff]  }
 0x123   :  { %1043 = vmatpush1.bf16.msra.mxu0 %v7364_v28  ;;  %v7343_v28 = vcombine.high %v260_v25, %v264_v26 }
 0x124   :  { %1053 = vmatprep.subr.bf16.mxu0 %v7247_v31  ;;  %v7342_v31 = vcombine.low %v260_v25, %v264_v26  ;;  %v8380_v26 = vld [vmem:[#allocation7 + $0x200] ss:$16 sps:$4 sm:$0xff]  }
 0x125   :  { %2904 = vmatpush1.bf16.msra.mxu1 %v8377_v8  ;;  %v8374_v8 = vld [vmem:[#allocation7 + $0x1e0] ss:$16 sps:$4 sm:$0xff]  }
 0x126   :  { %1045 = vmatmul.mubr.bf16.vlgmr.msra.gmra.mrb[4].mxu0 %v9549_v45  ;;  %2914 = vmatprep.subr.bf16.mxu1 %v8385_v10  ;;  %v291_v10 = vlaneseq }
 0x127   :  { %1054 = vmatpush1.bf16.msra.mxu0 %v7246_v34  ;;  %1085 = vmatprep.mubr.bf16.mxu0 %v9545_v18  ;;  %v208_v18 = vld [vmem:[#allocation5 + $0x170] sm:$0xff] }
 0x128   :  { %1055 = vmatprep.subr.bf16.mxu0 %v7255_v37  ;;  %v7287_v60 = vcombine.high %v204_v54, %v208_v18  ;;  %v7286_v61 = vcombine.low %v204_v54, %v208_v18  ;;  %v280_v34 = vld [vmem:[#allocation5 + $0x3b0] sm:$0xff] }
 0x129   :  { %v7359_v36 = vcombine.high %v276_v33, %v280_v34  ;;  %v284_v37 = vld [vmem:[#allocation5 + $0x3d0] sm:$0xff]  ;;  %v7358_v39 = vcombine.low %v276_v33, %v280_v34  ;;  %v8389_v33 = vld [vmem:[#allocation7 + $0x228] ss:$16 sps:$4 sm:$0xff]  }
 0x12a   :  { %v7366_v41 = vcombine.low %v284_v37, %v288_v38  ;;  %v8314_v54 = vld [vmem:[#allocation7 + $0xa0] ss:$16 sps:$4 sm:$0xff]   ;;  %v8394_v34 = vld [vmem:[#allocation7 + $0x244] ss:$16 sps:$4 sm:$0xff]  }
 0x12b   :  { %1056 = vmatpush1.bf16.msra.mxu0 %v7254_v40  ;;  %v7367_v40 = vcombine.high %v284_v37, %v288_v38  ;;  %v8320_v18 = vld [vmem:[#allocation7 + $0xc0] ss:$16 sps:$4 sm:$0xff]   ;;  %v8395_v37 = vld [vmem:[#allocation7 + $0x248] ss:$16 sps:$4 sm:$0xff]   ;;  %v8400_v38 = vld [vmem:[#allocation7 + $0x264] ss:$16 sps:$4 sm:$0xff]  }
 0x12c   :  { %1057 = vmatprep.subr.bf16.mxu0 %v7263_v43  ;;  %v8284_v43 = vld [vmem:[#allocation7] ss:$16 sps:$4 sm:$0xff]  }
 0x12f   :  { %1058 = vmatpush1.bf16.msra.mxu0 %v7262_v47  ;;  %v8298_v47 = vld [vmem:[#allocation7 + $0x44] ss:$16 sps:$4 sm:$0xff]  }
 0x130   :  { %1059 = vmatprep.subr.bf16.mxu0 %v7271_v50  ;;  %v8302_v50 = vld [vmem:[#allocation7 + $0x60] ss:$16 sps:$4 sm:$0xff]  }
 0x133   :  { %1060 = vmatpush1.bf16.msra.mxu0 %v7270_v53  ;;  %v8316_v53 = vld [vmem:[#allocation7 + $0xa4] ss:$16 sps:$4 sm:$0xff]  }
 0x134   :  { %1061 = vmatprep.subr.bf16.mxu0 %v7279_v55  ;;  %v8328_v55 = vld [vmem:[#allocation7 + $0xe4] ss:$16 sps:$4 sm:$0xff]  }
 0x137   :  { %1062 = vmatpush1.bf16.msra.mxu0 %v7278_v57  ;;  %v8334_v57 = vld [vmem:[#allocation7 + $0x104] ss:$16 sps:$4 sm:$0xff]  }
 0x138   :  { %1063 = vmatprep.subr.bf16.mxu0 %v7287_v60  ;;  %v8338_v60 = vld [vmem:[#allocation7 + $0x120] ss:$16 sps:$4 sm:$0xff]  }
 0x13b   :  { %1064 = vmatpush1.bf16.msra.mxu0 %v7286_v61  ;;  %v8346_v61 = vld [vmem:[#allocation7 + $0x144] ss:$16 sps:$4 sm:$0xff]  }
 0x13c   :  { %1065 = vmatprep.subr.bf16.mxu0 %v7295_v0  ;;  %v8350_v0 = vld [vmem:[#allocation7 + $0x160] ss:$16 sps:$4 sm:$0xff]  }
 0x13f   :  { %1066 = vmatpush1.bf16.msra.mxu0 %v7294_v3  ;;  %v8364_v3 = vld [vmem:[#allocation7 + $0x1a4] ss:$16 sps:$4 sm:$0xff]  }
 0x140   :  { %1067 = vmatprep.subr.bf16.mxu0 %v7303_v6  ;;  %v8368_v6 = vld [vmem:[#allocation7 + $0x1c0] ss:$16 sps:$4 sm:$0xff]  }
 0x143   :  { %1068 = vmatpush1.bf16.msra.mxu0 %v7302_v9  ;;  %v8382_v9 = vld [vmem:[#allocation7 + $0x204] ss:$16 sps:$4 sm:$0xff]  }
 0x144   :  { %1069 = vmatprep.subr.bf16.mxu0 %v7311_v11  ;;  %v9557_v11 = vshrl.u32 %v291_v10, 7  ;;  %v8457_v10 = vld [vmem:[#allocation7 + $0x38c] ss:$16 sps:$4 sm:$0xff]  }
 0x146   :  { %v9560_v12 = vsub.s32 0, %v9557_v11 }
 0x147   :  { %1070 = vmatpush1.bf16.msra.mxu0 %v7310_v14  ;;  %v9568_v14 = vsub.s32 1, %v9557_v11 }
 0x148   :  { %1071 = vmatprep.subr.bf16.mxu0 %v7319_v15  ;;  %v294_v15 = vrot.slane %v9565_v13, %v9560_v12 }
 0x149   :  { %v298_v16 = vrot.slane %v9565_v13, %v9568_v14 }
 0x14b   :  { %1072 = vmatpush1.bf16.msra.mxu0 %v7318_v19 }
 0x14c   :  { %1073 = vmatprep.subr.bf16.mxu0 %v7327_v20 }
 0x14f   :  { %1074 = vmatpush1.bf16.msra.mxu0 %v7326_v23 }
 0x150   :  { %1075 = vmatprep.subr.bf16.mxu0 %v7335_v24 }
 0x153   :  { %1076 = vmatpush1.bf16.msra.mxu0 %v7334_v27  ;;  %v8383_v27 = vld [vmem:[#allocation7 + $0x208] ss:$16 sps:$4 sm:$0xff]  }
 0x154   :  { %1077 = vmatprep.subr.bf16.mxu0 %v7343_v28 }
 0x157   :  { %1078 = vmatpush1.bf16.msra.mxu0 %v7342_v31  ;;  %v8391_v31 = vld [vmem:[#allocation7 + $0x22c] ss:$16 sps:$4 sm:$0xff]  }
 0x158   :  { %1079 = vmatprep.subr.bf16.mxu0 %v7351_v32  ;;  %v8386_v32 = vld [vmem:[#allocation7 + $0x220] ss:$16 sps:$4 sm:$0xff]  }
 0x15b   :  { %1080 = vmatpush1.bf16.msra.mxu0 %v7350_v35  ;;  %v8397_v35 = vld [vmem:[#allocation7 + $0x24c] ss:$16 sps:$4 sm:$0xff]  }
 0x15c   :  { %1081 = vmatprep.subr.bf16.mxu0 %v7359_v36  ;;  %v8392_v36 = vld [vmem:[#allocation7 + $0x240] ss:$16 sps:$4 sm:$0xff]  }
 0x15f   :  { %1082 = vmatpush1.bf16.msra.mxu0 %v7358_v39  ;;  %v8403_v39 = vld [vmem:[#allocation7 + $0x26c] ss:$16 sps:$4 sm:$0xff]  }
 0x160   :  { %1083 = vmatprep.subr.bf16.mxu0 %v7367_v40  ;;  %v8398_v40 = vld [vmem:[#allocation7 + $0x260] ss:$16 sps:$4 sm:$0xff]  }
 0x163   :  { %1084 = vmatpush1.bf16.msra.mxu0 %v7366_v41  ;;  %v8401_v41 = vld [vmem:[#allocation7 + $0x268] ss:$16 sps:$4 sm:$0xff]  }
 0x164   :  { %2709 = vmatprep.subr.bf16.mxu0 %v8286_v42  ;;  %v8406_v42 = vld [vmem:[#allocation7 + $0x284] ss:$16 sps:$4 sm:$0xff]  }
 0x166   :  { %1086 = vmatmul.mubr.bf16.vlgmr.msra.gmra.mrb[8].mxu0 %v9549_v45  ;;  %v8322_v45 = vld [vmem:[#allocation7 + $0xc4] ss:$16 sps:$4 sm:$0xff]  }
 0x167   :  { %2710 = vmatpush1.bf16.msra.mxu0 %v8284_v43  ;;  %v8409_v43 = vld [vmem:[#allocation7 + $0x28c] ss:$16 sps:$4 sm:$0xff]  }
 0x168   :  { %2711 = vmatprep.subr.bf16.mxu0 %v8292_v44  ;;  %v8404_v44 = vld [vmem:[#allocation7 + $0x280] ss:$16 sps:$4 sm:$0xff]  }
 0x16b   :  { %2712 = vmatpush1.bf16.msra.mxu0 %v8290_v46  ;;  %v8407_v46 = vld [vmem:[#allocation7 + $0x288] ss:$16 sps:$4 sm:$0xff]  }
 0x16c   :  { %2713 = vmatprep.subr.bf16.mxu0 %v8298_v47  ;;  %v8412_v47 = vld [vmem:[#allocation7 + $0x2a4] ss:$16 sps:$4 sm:$0xff]  }
 0x16f   :  { %2714 = vmatpush1.bf16.msra.mxu0 %v8296_v48  ;;  %v8415_v48 = vld [vmem:[#allocation7 + $0x2ac] ss:$16 sps:$4 sm:$0xff]  }
 0x170   :  { %2715 = vmatprep.subr.bf16.mxu0 %v8304_v49  ;;  %v8410_v49 = vld [vmem:[#allocation7 + $0x2a0] ss:$16 sps:$4 sm:$0xff]  }
 0x173   :  { %2716 = vmatpush1.bf16.msra.mxu0 %v8302_v50  ;;  %v8413_v50 = vld [vmem:[#allocation7 + $0x2a8] ss:$16 sps:$4 sm:$0xff]  }
 0x174   :  { %2717 = vmatprep.subr.bf16.mxu0 %v8310_v51  ;;  %v8418_v51 = vld [vmem:[#allocation7 + $0x2c4] ss:$16 sps:$4 sm:$0xff]  }
 0x177   :  { %2718 = vmatpush1.bf16.msra.mxu0 %v8308_v52  ;;  %v8421_v52 = vld [vmem:[#allocation7 + $0x2cc] ss:$16 sps:$4 sm:$0xff]  }
 0x178   :  { %2719 = vmatprep.subr.bf16.mxu0 %v8316_v53  ;;  %v8416_v53 = vld [vmem:[#allocation7 + $0x2c0] ss:$16 sps:$4 sm:$0xff]  }
 0x17b   :  { %2720 = vmatpush1.bf16.msra.mxu0 %v8314_v54  ;;  %v8419_v54 = vld [vmem:[#allocation7 + $0x2c8] ss:$16 sps:$4 sm:$0xff]  }
 0x17c   :  { %2721 = vmatprep.subr.bf16.mxu0 %v8322_v45  ;;  %v8424_v45 = vld [vmem:[#allocation7 + $0x2e4] ss:$16 sps:$4 sm:$0xff]  }
 0x17f   :  { %2722 = vmatpush1.bf16.msra.mxu0 %v8320_v18  ;;  %v8427_v18 = vld [vmem:[#allocation7 + $0x2ec] ss:$16 sps:$4 sm:$0xff]  }
 0x180   :  { %2723 = vmatprep.subr.bf16.mxu0 %v8328_v55  ;;  %v8422_v55 = vld [vmem:[#allocation7 + $0x2e0] ss:$16 sps:$4 sm:$0xff]  }
 0x183   :  { %2724 = vmatpush1.bf16.msra.mxu0 %v8326_v56  ;;  %v8425_v56 = vld [vmem:[#allocation7 + $0x2e8] ss:$16 sps:$4 sm:$0xff]  }
 0x184   :  { %2725 = vmatprep.subr.bf16.mxu0 %v8334_v57  ;;  %v8430_v57 = vld [vmem:[#allocation7 + $0x304] ss:$16 sps:$4 sm:$0xff]  }
 0x187   :  { %2726 = vmatpush1.bf16.msra.mxu0 %v8332_v58  ;;  %v8433_v58 = vld [vmem:[#allocation7 + $0x30c] ss:$16 sps:$4 sm:$0xff]  }
 0x188   :  { %2727 = vmatprep.subr.bf16.mxu0 %v8340_v59  ;;  %v8428_v59 = vld [vmem:[#allocation7 + $0x300] ss:$16 sps:$4 sm:$0xff]  }
 0x18b   :  { %2728 = vmatpush1.bf16.msra.mxu0 %v8338_v60  ;;  %v8431_v60 = vld [vmem:[#allocation7 + $0x308] ss:$16 sps:$4 sm:$0xff]  }
 0x18c   :  { %2729 = vmatprep.subr.bf16.mxu0 %v8346_v61  ;;  %v8436_v61 = vld [vmem:[#allocation7 + $0x324] ss:$16 sps:$4 sm:$0xff]  }
 0x18f   :  { %2730 = vmatpush1.bf16.msra.mxu0 %v8344_v62  ;;  %v8439_v62 = vld [vmem:[#allocation7 + $0x32c] ss:$16 sps:$4 sm:$0xff]  }
 0x190   :  { %2731 = vmatprep.subr.bf16.mxu0 %v8352_v63  ;;  %v8434_v63 = vld [vmem:[#allocation7 + $0x320] ss:$16 sps:$4 sm:$0xff]  }
 0x193   :  { %2732 = vmatpush1.bf16.msra.mxu0 %v8350_v0  ;;  %v8437_v0 = vld [vmem:[#allocation7 + $0x328] ss:$16 sps:$4 sm:$0xff]  }
 0x194   :  { %2733 = vmatprep.subr.bf16.mxu0 %v8358_v1  ;;  %v8442_v1 = vld [vmem:[#allocation7 + $0x344] ss:$16 sps:$4 sm:$0xff]  }
 0x197   :  { %2734 = vmatpush1.bf16.msra.mxu0 %v8356_v2  ;;  %v8445_v2 = vld [vmem:[#allocation7 + $0x34c] ss:$16 sps:$4 sm:$0xff]  }
 0x198   :  { %2735 = vmatprep.subr.bf16.mxu0 %v8364_v3  ;;  %v8440_v3 = vld [vmem:[#allocation7 + $0x340] ss:$16 sps:$4 sm:$0xff]  }
 0x19b   :  { %2736 = vmatpush1.bf16.msra.mxu0 %v8362_v4  ;;  %v8443_v4 = vld [vmem:[#allocation7 + $0x348] ss:$16 sps:$4 sm:$0xff]  }
 0x19c   :  { %2737 = vmatprep.subr.bf16.mxu0 %v8370_v5  ;;  %v8448_v5 = vld [vmem:[#allocation7 + $0x364] ss:$16 sps:$4 sm:$0xff]  }
 0x19f   :  { %2738 = vmatpush1.bf16.msra.mxu0 %v8368_v6  ;;  %v8451_v6 = vld [vmem:[#allocation7 + $0x36c] ss:$16 sps:$4 sm:$0xff]  }
 0x1a0   :  { %2739 = vmatprep.subr.bf16.mxu0 %v8376_v7  ;;  %v8446_v7 = vld [vmem:[#allocation7 + $0x360] ss:$16 sps:$4 sm:$0xff]  }
 0x1a3   :  { %2740 = vmatpush1.bf16.msra.mxu0 %v8374_v8  ;;  %v8449_v8 = vld [vmem:[#allocation7 + $0x368] ss:$16 sps:$4 sm:$0xff]  }
 0x1a4   :  { %2750 = vmatprep.subr.bf16.mxu0 %v8382_v9  ;;  %v8454_v9 = vld [vmem:[#allocation7 + $0x384] ss:$16 sps:$4 sm:$0xff]  }
 0x1b9   :  { %v1005_v17 = vpop.f32.mrb[0].mxu0 }
 0x1ba   :  { %v1006_v19 = vadd.f32 %v1005_v17, %v294_v15  ;;  %v1007_v20 = vpop.f32.mrb[1].mxu0  ;;  %v8452_v15 = vld [vmem:[#allocation7 + $0x380] ss:$16 sps:$4 sm:$0xff]   ;;  %v8460_v17 = vld [vmem:[#allocation7 + $0x3a4] ss:$16 sps:$4 sm:$0xff]  }
 0x1bb   :  { %v1008_v21 = vadd.f32 %v1007_v20, %v298_v16  ;;  %v1009_v22 = vpop.f32.mrb[2].mxu0  ;;  %v8455_v16 = vld [vmem:[#allocation7 + $0x388] ss:$16 sps:$4 sm:$0xff]   ;;  %v9575_v20 = vsub.s32 2, %v9557_v11 }
 0x1bc   :  { %v1135_v23 = vmax.f32 %v1006_v19, 0.0  ;;  %v1010_v24 = vpop.f32.mrb[3].mxu0  ;;  %v8463_v19 = vld [vmem:[#allocation7 + $0x3ac] ss:$16 sps:$4 sm:$0xff]   ;;  %v8461_v22 = vld [vmem:[#allocation7 + $0x3a8] ss:$16 sps:$4 sm:$0xff]  }
 0x1bd   :  { %v1136_v25 = vmax.f32 %v1008_v21, 0.0  ;;  %v8458_v21 = vld [vmem:[#allocation7 + $0x3a0] ss:$16 sps:$4 sm:$0xff]   ;;  %v9580_v24 = vpop.f32.mrb[0].mxu1 }
 0x1be   :  { %v1144_v29 = vpack.c.bf16 %v1135_v23, %v1135_v23  ;;  %v9578_v23 = vsub.s32 3, %v9557_v11 }
 0x1bf   :  { %v1145_v28 = vpack.c.bf16 %v1136_v25, %v1136_v25  ;;  %v8466_v25 = vld [vmem:[#allocation7 + $0x3c4] ss:$16 sps:$4 sm:$0xff]  }
 0x1c1   :  { %2741 = vmatprep.mubr.bf16.mxu0 %v1145_v28  ;;  %2905 = vmatprep.mubr.bf16.mxu1 %v1145_v28 }
 0x1c2   :  { %2742 = vmatmul.mubr.bf16.vlgmr.msra.gmra.mrb[12].mxu0 %v1144_v29  ;;  %2906 = vmatmul.mubr.bf16.vlgmr.msra.gmra.mrb[4].mxu1 %v1144_v29  ;;  %v302_v29 = vrot.slane %v9565_v13, %v9575_v20 }
 0x1c3   :  { %2751 = vmatpush1.bf16.msra.mxu0 %v8380_v26  ;;  %2915 = vmatpush1.bf16.msra.mxu1 %v8383_v27  ;;  %v8469_v26 = vld [vmem:[#allocation7 + $0x3cc] ss:$16 sps:$4 sm:$0xff]   ;;  %v9582_v27 = vpop.f32.mrb[1].mxu1 }
 0x1c4   :  { %2752 = vmatprep.subr.bf16.mxu0 %v8388_v30  ;;  %2916 = vmatprep.subr.bf16.mxu1 %v8391_v31  ;;  %v1132_v28 = vpop.f32.mrb[2].mxu1  ;;  %v8464_v31 = vld [vmem:[#allocation7 + $0x3c0] ss:$16 sps:$4 sm:$0xff]  }
 0x1c5   :  { %v1133_v30 = vpop.f32.mrb[3].mxu1  ;;  %v8532_v28 = vld [vmem:[#allocation7 + $0x524] ss:$16 sps:$4 sm:$0xff]  }
 0x1c6   :  { %v8530_v30 = vld [vmem:[#allocation7 + $0x520] ss:$16 sps:$4 sm:$0xff]  }
 0x1c7   :  { %2753 = vmatpush1.bf16.msra.mxu0 %v8386_v32  ;;  %2917 = vmatpush1.bf16.msra.mxu1 %v8389_v33  ;;  %v8467_v32 = vld [vmem:[#allocation7 + $0x3c8] ss:$16 sps:$4 sm:$0xff]   ;;  %v306_v33 = vrot.slane %v9565_v13, %v9578_v23 }
 0x1c8   :  { %2754 = vmatprep.subr.bf16.mxu0 %v8394_v34  ;;  %2918 = vmatprep.subr.bf16.mxu1 %v8397_v35  ;;  %v8472_v34 = vld [vmem:[#allocation7 + $0x3e4] ss:$16 sps:$4 sm:$0xff]   ;;  %v8475_v35 = vld [vmem:[#allocation7 + $0x3ec] ss:$16 sps:$4 sm:$0xff]  }
 0x1cb   :  { %2755 = vmatpush1.bf16.msra.mxu0 %v8392_v36  ;;  %2919 = vmatpush1.bf16.msra.mxu1 %v8395_v37 }
 0x1cc   :  { %2756 = vmatprep.subr.bf16.mxu0 %v8400_v38  ;;  %2920 = vmatprep.subr.bf16.mxu1 %v8403_v39 }
 0x1cf   :  { %2757 = vmatpush1.bf16.msra.mxu0 %v8398_v40  ;;  %2921 = vmatpush1.bf16.msra.mxu1 %v8401_v41  ;;  %v8470_v41 = vld [vmem:[#allocation7 + $0x3e0] ss:$16 sps:$4 sm:$0xff]  }
 0x1d0   :  { %2758 = vmatprep.subr.bf16.mxu0 %v8406_v42  ;;  %2922 = vmatprep.subr.bf16.mxu1 %v8409_v43  ;;  %v8473_v42 = vld [vmem:[#allocation7 + $0x3e8] ss:$16 sps:$4 sm:$0xff]  }
 0x1d3   :  { %2759 = vmatpush1.bf16.msra.mxu0 %v8404_v44  ;;  %2923 = vmatpush1.bf16.msra.mxu1 %v8407_v46  ;;  %v8478_v46 = vld [vmem:[#allocation7 + $0x404] ss:$16 sps:$4 sm:$0xff]  }
 0x1d4   :  { %2760 = vmatprep.subr.bf16.mxu0 %v8412_v47  ;;  %2924 = vmatprep.subr.bf16.mxu1 %v8415_v48  ;;  %v8481_v47 = vld [vmem:[#allocation7 + $0x40c] ss:$16 sps:$4 sm:$0xff]  }
 0x1d7   :  { %2761 = vmatpush1.bf16.msra.mxu0 %v8410_v49  ;;  %2925 = vmatpush1.bf16.msra.mxu1 %v8413_v50  ;;  %v8476_v50 = vld [vmem:[#allocation7 + $0x400] ss:$16 sps:$4 sm:$0xff]  }
 0x1d8   :  { %2762 = vmatprep.subr.bf16.mxu0 %v8418_v51  ;;  %2926 = vmatprep.subr.bf16.mxu1 %v8421_v52  ;;  %v8479_v51 = vld [vmem:[#allocation7 + $0x408] ss:$16 sps:$4 sm:$0xff]  }
 0x1db   :  { %2763 = vmatpush1.bf16.msra.mxu0 %v8416_v53  ;;  %2927 = vmatpush1.bf16.msra.mxu1 %v8419_v54  ;;  %v8484_v53 = vld [vmem:[#allocation7 + $0x424] ss:$16 sps:$4 sm:$0xff]   ;;  %v8487_v54 = vld [vmem:[#allocation7 + $0x42c] ss:$16 sps:$4 sm:$0xff]  }
 0x1dc   :  { %2764 = vmatprep.subr.bf16.mxu0 %v8424_v45  ;;  %2928 = vmatprep.subr.bf16.mxu1 %v8427_v18  ;;  %v8482_v45 = vld [vmem:[#allocation7 + $0x420] ss:$16 sps:$4 sm:$0xff]   ;;  %v8485_v18 = vld [vmem:[#allocation7 + $0x428] ss:$16 sps:$4 sm:$0xff]  }
 0x1df   :  { %2765 = vmatpush1.bf16.msra.mxu0 %v8422_v55  ;;  %2929 = vmatpush1.bf16.msra.mxu1 %v8425_v56  ;;  %v8490_v55 = vld [vmem:[#allocation7 + $0x444] ss:$16 sps:$4 sm:$0xff]   ;;  %v8493_v56 = vld [vmem:[#allocation7 + $0x44c] ss:$16 sps:$4 sm:$0xff]  }
 0x1e0   :  { %2766 = vmatprep.subr.bf16.mxu0 %v8430_v57  ;;  %2930 = vmatprep.subr.bf16.mxu1 %v8433_v58  ;;  %v8488_v57 = vld [vmem:[#allocation7 + $0x440] ss:$16 sps:$4 sm:$0xff]   ;;  %v8491_v58 = vld [vmem:[#allocation7 + $0x448] ss:$16 sps:$4 sm:$0xff]  }
 0x1e3   :  { %2767 = vmatpush1.bf16.msra.mxu0 %v8428_v59  ;;  %2931 = vmatpush1.bf16.msra.mxu1 %v8431_v60  ;;  %v8496_v59 = vld [vmem:[#allocation7 + $0x464] ss:$16 sps:$4 sm:$0xff]   ;;  %v8499_v60 = vld [vmem:[#allocation7 + $0x46c] ss:$16 sps:$4 sm:$0xff]  }
 0x1e4   :  { %2768 = vmatprep.subr.bf16.mxu0 %v8436_v61  ;;  %2932 = vmatprep.subr.bf16.mxu1 %v8439_v62  ;;  %v8494_v61 = vld [vmem:[#allocation7 + $0x460] ss:$16 sps:$4 sm:$0xff]   ;;  %v8497_v62 = vld [vmem:[#allocation7 + $0x468] ss:$16 sps:$4 sm:$0xff]  }
 0x1e7   :  { %2769 = vmatpush1.bf16.msra.mxu0 %v8434_v63  ;;  %2933 = vmatpush1.bf16.msra.mxu1 %v8437_v0  ;;  %v8502_v63 = vld [vmem:[#allocation7 + $0x484] ss:$16 sps:$4 sm:$0xff]   ;;  %v8505_v0 = vld [vmem:[#allocation7 + $0x48c] ss:$16 sps:$4 sm:$0xff]  }
 0x1e8   :  { %2770 = vmatprep.subr.bf16.mxu0 %v8442_v1  ;;  %2934 = vmatprep.subr.bf16.mxu1 %v8445_v2  ;;  %v8500_v1 = vld [vmem:[#allocation7 + $0x480] ss:$16 sps:$4 sm:$0xff]   ;;  %v8503_v2 = vld [vmem:[#allocation7 + $0x488] ss:$16 sps:$4 sm:$0xff]  }
 0x1eb   :  { %2771 = vmatpush1.bf16.msra.mxu0 %v8440_v3  ;;  %2935 = vmatpush1.bf16.msra.mxu1 %v8443_v4  ;;  %v8508_v3 = vld [vmem:[#allocation7 + $0x4a4] ss:$16 sps:$4 sm:$0xff]   ;;  %v8511_v4 = vld [vmem:[#allocation7 + $0x4ac] ss:$16 sps:$4 sm:$0xff]  }
 0x1ec   :  { %2772 = vmatprep.subr.bf16.mxu0 %v8448_v5  ;;  %2936 = vmatprep.subr.bf16.mxu1 %v8451_v6  ;;  %v8506_v5 = vld [vmem:[#allocation7 + $0x4a0] ss:$16 sps:$4 sm:$0xff]   ;;  %v8509_v6 = vld [vmem:[#allocation7 + $0x4a8] ss:$16 sps:$4 sm:$0xff]  }
 0x1ef   :  { %2773 = vmatpush1.bf16.msra.mxu0 %v8446_v7  ;;  %2937 = vmatpush1.bf16.msra.mxu1 %v8449_v8  ;;  %v8514_v7 = vld [vmem:[#allocation7 + $0x4c4] ss:$16 sps:$4 sm:$0xff]   ;;  %v8517_v8 = vld [vmem:[#allocation7 + $0x4cc] ss:$16 sps:$4 sm:$0xff]  }
 0x1f0   :  { %2774 = vmatprep.subr.bf16.mxu0 %v8454_v9  ;;  %2938 = vmatprep.subr.bf16.mxu1 %v8457_v10  ;;  %v8512_v9 = vld [vmem:[#allocation7 + $0x4c0] ss:$16 sps:$4 sm:$0xff]   ;;  %v8515_v10 = vld [vmem:[#allocation7 + $0x4c8] ss:$16 sps:$4 sm:$0xff]  }
 0x1f3   :  { %2775 = vmatpush1.bf16.msra.mxu0 %v8452_v15  ;;  %2939 = vmatpush1.bf16.msra.mxu1 %v8455_v16  ;;  %v8520_v15 = vld [vmem:[#allocation7 + $0x4e4] ss:$16 sps:$4 sm:$0xff]   ;;  %v8523_v16 = vld [vmem:[#allocation7 + $0x4ec] ss:$16 sps:$4 sm:$0xff]  }
 0x1f4   :  { %2776 = vmatprep.subr.bf16.mxu0 %v8460_v17  ;;  %2940 = vmatprep.subr.bf16.mxu1 %v8463_v19  ;;  %v8518_v17 = vld [vmem:[#allocation7 + $0x4e0] ss:$16 sps:$4 sm:$0xff]   ;;  %v8521_v19 = vld [vmem:[#allocation7 + $0x4e8] ss:$16 sps:$4 sm:$0xff]  }
 0x1f7   :  { %2777 = vmatpush1.bf16.msra.mxu0 %v8458_v21  ;;  %2941 = vmatpush1.bf16.msra.mxu1 %v8461_v22  ;;  %v8526_v21 = vld [vmem:[#allocation7 + $0x504] ss:$16 sps:$4 sm:$0xff]   ;;  %v8529_v22 = vld [vmem:[#allocation7 + $0x50c] ss:$16 sps:$4 sm:$0xff]  }
 0x1f8   :  { %2778 = vmatprep.subr.bf16.mxu0 %v8466_v25  ;;  %2942 = vmatprep.subr.bf16.mxu1 %v8469_v26  ;;  %v8524_v25 = vld [vmem:[#allocation7 + $0x500] ss:$16 sps:$4 sm:$0xff]   ;;  %v8527_v26 = vld [vmem:[#allocation7 + $0x508] ss:$16 sps:$4 sm:$0xff]  }
 0x1f9   :  { %v1046_v36 = vpop.f32.mrb[4].mxu0 }
 0x1fa   :  { %v1047_v37 = vadd.f32 %v1046_v36, %v302_v29  ;;  %v1048_v38 = vpop.f32.mrb[5].mxu0  ;;  %v8535_v29 = vld [vmem:[#allocation7 + $0x52c] ss:$16 sps:$4 sm:$0xff]   ;;  %v8544_v36 = vld [vmem:[#allocation7 + $0x564] ss:$16 sps:$4 sm:$0xff]  }
 0x1fb   :  { %v1049_v39 = vadd.f32 %v1048_v38, %v306_v33  ;;  %2779 = vmatpush1.bf16.msra.mxu0 %v8464_v31  ;;  %2943 = vmatpush1.bf16.msra.mxu1 %v8467_v32  ;;  %v1050_v40 = vpop.f32.mrb[6].mxu0  ;;  %v8533_v31 = vld [vmem:[#allocation7 + $0x528] ss:$16 sps:$4 sm:$0xff]   ;;  %v8538_v32 = vld [vmem:[#allocation7 + $0x544] ss:$16 sps:$4 sm:$0xff]  }
 0x1fc   :  { %v1137_v43 = vmax.f32 %v1047_v37, 0.0  ;;  %v1051_v44 = vpop.f32.mrb[7].mxu0  ;;  %2780 = vmatprep.subr.bf16.mxu0 %v8472_v34  ;;  %2944 = vmatprep.subr.bf16.mxu1 %v8475_v35  ;;  %v8541_v33 = vld [vmem:[#allocation7 + $0x54c] ss:$16 sps:$4 sm:$0xff]   ;;  %v8536_v34 = vld [vmem:[#allocation7 + $0x540] ss:$16 sps:$4 sm:$0xff]  }
 0x1fd   :  { %v1138_v48 = vmax.f32 %v1049_v39, 0.0  ;;  %v8539_v35 = vld [vmem:[#allocation7 + $0x548] ss:$16 sps:$4 sm:$0xff]   ;;  %v8547_v37 = vld [vmem:[#allocation7 + $0x56c] ss:$16 sps:$4 sm:$0xff]  }
 0x1fe   :  { %v1146_v52 = vpack.c.bf16 %v1137_v43, %v1137_v43  ;;  %v8542_v38 = vld [vmem:[#allocation7 + $0x560] ss:$16 sps:$4 sm:$0xff]   ;;  %v8545_v39 = vld [vmem:[#allocation7 + $0x568] ss:$16 sps:$4 sm:$0xff]   ;;  %v8550_v40 = vld [vmem:[#allocation7 + $0x584] ss:$16 sps:$4 sm:$0xff]  }
 0x1ff   :  { %v1147_v49 = vpack.c.bf16 %v1138_v48, %v1138_v48  ;;  %2781 = vmatpush1.bf16.msra.mxu0 %v8470_v41  ;;  %2945 = vmatpush1.bf16.msra.mxu1 %v8473_v42  ;;  %v8553_v41 = vld [vmem:[#allocation7 + $0x58c] ss:$16 sps:$4 sm:$0xff]   ;;  %v8548_v42 = vld [vmem:[#allocation7 + $0x580] ss:$16 sps:$4 sm:$0xff]   ;;  %v8551_v43 = vld [vmem:[#allocation7 + $0x588] ss:$16 sps:$4 sm:$0xff]  }
 0x200   :  { %2791 = vmatprep.subr.bf16.mxu0 %v8478_v46  ;;  %2955 = vmatprep.subr.bf16.mxu1 %v8481_v47  ;;  %v8556_v44 = vld [vmem:[#allocation7 + $0x5a4] ss:$16 sps:$4 sm:$0xff]   ;;  %v8559_v46 = vld [vmem:[#allocation7 + $0x5ac] ss:$16 sps:$4 sm:$0xff]   ;;  %v321_v47 = vsub.s32 7, %v9557_v11  ;;  %v309_v48 = vsub.s32 4, %v9557_v11 }
 0x201   :  { %2782 = vmatprep.mubr.bf16.mxu0 %v1147_v49  ;;  %2946 = vmatprep.mubr.bf16.mxu1 %v1147_v49  ;;  %v8554_v49 = vld [vmem:[#allocation7 + $0x5a0] ss:$16 sps:$4 sm:$0xff]  }
 0x202   :  { %2783 = vmatmul.mubr.bf16.vlgmr.msra.gmra.mrb[12].mxu0 %v1146_v52  ;;  %2947 = vmatmul.mubr.bf16.vlgmr.msra.gmra.mrb[4].mxu1 %v1146_v52  ;;  %v8562_v52 = vld [vmem:[#allocation7 + $0x5c4] ss:$16 sps:$4 sm:$0xff]  }
 0x203   :  { %2792 = vmatpush1.bf16.msra.mxu0 %v8476_v50  ;;  %2956 = vmatpush1.bf16.msra.mxu1 %v8479_v51  ;;  %v8557_v50 = vld [vmem:[#allocation7 + $0x5a8] ss:$16 sps:$4 sm:$0xff]   ;;  %v313_v51 = vsub.s32 5, %v9557_v11 }
 0x204   :  { %2793 = vmatprep.subr.bf16.mxu0 %v8484_v53  ;;  %2957 = vmatprep.subr.bf16.mxu1 %v8487_v54  ;;  %v8565_v53 = vld [vmem:[#allocation7 + $0x5cc] ss:$16 sps:$4 sm:$0xff]   ;;  %v322_v54 = vrot.slane %v9565_v13, %v321_v47 }
 0x207   :  { %2794 = vmatpush1.bf16.msra.mxu0 %v8482_v45  ;;  %2958 = vmatpush1.bf16.msra.mxu1 %v8485_v18  ;;  %v310_v45 = vrot.slane %v9565_v13, %v309_v48  ;;  %v8560_v18 = vld [vmem:[#allocation7 + $0x5c0] ss:$16 sps:$4 sm:$0xff]  }
 0x208   :  { %2795 = vmatprep.subr.bf16.mxu0 %v8490_v55  ;;  %2959 = vmatprep.subr.bf16.mxu1 %v8493_v56  ;;  %v8563_v55 = vld [vmem:[#allocation7 + $0x5c8] ss:$16 sps:$4 sm:$0xff]   ;;  %v314_v56 = vrot.slane %v9565_v13, %v313_v51 }
 0x20b   :  { %2796 = vmatpush1.bf16.msra.mxu0 %v8488_v57  ;;  %2960 = vmatpush1.bf16.msra.mxu1 %v8491_v58  ;;  %v8568_v57 = vld [vmem:[#allocation7 + $0x5e4] ss:$16 sps:$4 sm:$0xff]   ;;  %v8571_v58 = vld [vmem:[#allocation7 + $0x5ec] ss:$16 sps:$4 sm:$0xff]  }
 0x20c   :  { %2797 = vmatprep.subr.bf16.mxu0 %v8496_v59  ;;  %2961 = vmatprep.subr.bf16.mxu1 %v8499_v60  ;;  %v1131_v60 = vadd.f32 %v9582_v27, %v322_v54  ;;  %v8572_v27 = vld [vmem:[#allocation7 + $0x600] ss:$16 sps:$4 sm:$0xff]   ;;  %v8622_v54 = vld [vmem:[#allocation7 + $0x704] ss:$16 sps:$4 sm:$0xff]  }
 0x20f   :  { %2798 = vmatpush1.bf16.msra.mxu0 %v8494_v61  ;;  %2962 = vmatpush1.bf16.msra.mxu1 %v8497_v62 }
 0x210   :  { %2799 = vmatprep.subr.bf16.mxu0 %v8502_v63  ;;  %2963 = vmatprep.subr.bf16.mxu1 %v8505_v0 }
 0x213   :  { %2800 = vmatpush1.bf16.msra.mxu0 %v8500_v1  ;;  %2964 = vmatpush1.bf16.msra.mxu1 %v8503_v2  ;;  %v8566_v1 = vld [vmem:[#allocation7 + $0x5e0] ss:$16 sps:$4 sm:$0xff]   ;;  %v8569_v2 = vld [vmem:[#allocation7 + $0x5e8] ss:$16 sps:$4 sm:$0xff]  }
 0x214   :  { %2801 = vmatprep.subr.bf16.mxu0 %v8508_v3  ;;  %2965 = vmatprep.subr.bf16.mxu1 %v8511_v4 }
 0x217   :  { %2802 = vmatpush1.bf16.msra.mxu0 %v8506_v5  ;;  %2966 = vmatpush1.bf16.msra.mxu1 %v8509_v6  ;;  %v8574_v5 = vld [vmem:[#allocation7 + $0x604] ss:$16 sps:$4 sm:$0xff]   ;;  %v8577_v6 = vld [vmem:[#allocation7 + $0x60c] ss:$16 sps:$4 sm:$0xff]  }
 0x218   :  { %2803 = vmatprep.subr.bf16.mxu0 %v8514_v7  ;;  %2967 = vmatprep.subr.bf16.mxu1 %v8517_v8  ;;  %v1142_v8 = vmax.f32 %v1131_v60, 0.0  ;;  %v8634_v60 = vld [vmem:[#allocation7 + $0x744] ss:$16 sps:$4 sm:$0xff]  }
 0x21b   :  { %2804 = vmatpush1.bf16.msra.mxu0 %v8512_v9  ;;  %2968 = vmatpush1.bf16.msra.mxu1 %v8515_v10  ;;  %v8575_v10 = vld [vmem:[#allocation7 + $0x608] ss:$16 sps:$4 sm:$0xff]  }
 0x21c   :  { %2805 = vmatprep.subr.bf16.mxu0 %v8520_v15  ;;  %2969 = vmatprep.subr.bf16.mxu1 %v8523_v16  ;;  %v8580_v16 = vld [vmem:[#allocation7 + $0x624] ss:$16 sps:$4 sm:$0xff]  }
 0x21f   :  { %2806 = vmatpush1.bf16.msra.mxu0 %v8518_v17  ;;  %2970 = vmatpush1.bf16.msra.mxu1 %v8521_v19  ;;  %v8583_v17 = vld [vmem:[#allocation7 + $0x62c] ss:$16 sps:$4 sm:$0xff]   ;;  %v1151_v19 = vpack.c.bf16 %v1142_v8, %v1142_v8  ;;  %v317_v8 = vsub.s32 6, %v9557_v11 }
 0x220   :  { %2807 = vmatprep.subr.bf16.mxu0 %v8526_v21  ;;  %2971 = vmatprep.subr.bf16.mxu1 %v8529_v22  ;;  %v8578_v21 = vld [vmem:[#allocation7 + $0x620] ss:$16 sps:$4 sm:$0xff]   ;;  %v8581_v22 = vld [vmem:[#allocation7 + $0x628] ss:$16 sps:$4 sm:$0xff]   ;;  %v6267_v11 = vld [vmem:[%s9732_s9 + $0x1d] sm:$0x3] }
 0x223   :  { %2808 = vmatpush1.bf16.msra.mxu0 %v8524_v25  ;;  %2972 = vmatpush1.bf16.msra.mxu1 %v8527_v26  ;;  %v8586_v25 = vld [vmem:[#allocation7 + $0x644] ss:$16 sps:$4 sm:$0xff]   ;;  %v8589_v26 = vld [vmem:[#allocation7 + $0x64c] ss:$16 sps:$4 sm:$0xff]  }
 0x224   :  { %2809 = vmatprep.subr.bf16.mxu0 %v8532_v28  ;;  %2973 = vmatprep.subr.bf16.mxu1 %v8535_v29  ;;  %v8584_v28 = vld [vmem:[#allocation7 + $0x640] ss:$16 sps:$4 sm:$0xff]   ;;  %v8587_v29 = vld [vmem:[#allocation7 + $0x648] ss:$16 sps:$4 sm:$0xff]  }
 0x227   :  { %2810 = vmatpush1.bf16.msra.mxu0 %v8530_v30  ;;  %2974 = vmatpush1.bf16.msra.mxu1 %v8533_v31  ;;  %v8592_v30 = vld [vmem:[#allocation7 + $0x664] ss:$16 sps:$4 sm:$0xff]   ;;  %v8595_v31 = vld [vmem:[#allocation7 + $0x66c] ss:$16 sps:$4 sm:$0xff]  }
 0x228   :  { %2811 = vmatprep.subr.bf16.mxu0 %v8538_v32  ;;  %2975 = vmatprep.subr.bf16.mxu1 %v8541_v33  ;;  %v8590_v32 = vld [vmem:[#allocation7 + $0x660] ss:$16 sps:$4 sm:$0xff]   ;;  %v8593_v33 = vld [vmem:[#allocation7 + $0x668] ss:$16 sps:$4 sm:$0xff]  }
 0x22b   :  { %2812 = vmatpush1.bf16.msra.mxu0 %v8536_v34  ;;  %2976 = vmatpush1.bf16.msra.mxu1 %v8539_v35  ;;  %v8598_v34 = vld [vmem:[#allocation7 + $0x684] ss:$16 sps:$4 sm:$0xff]   ;;  %v8601_v35 = vld [vmem:[#allocation7 + $0x68c] ss:$16 sps:$4 sm:$0xff]  }
 0x22c   :  { %2813 = vmatprep.subr.bf16.mxu0 %v8544_v36  ;;  %2977 = vmatprep.subr.bf16.mxu1 %v8547_v37  ;;  %v8596_v36 = vld [vmem:[#allocation7 + $0x680] ss:$16 sps:$4 sm:$0xff]   ;;  %v8599_v37 = vld [vmem:[#allocation7 + $0x688] ss:$16 sps:$4 sm:$0xff]  }
 0x22f   :  { %2814 = vmatpush1.bf16.msra.mxu0 %v8542_v38  ;;  %2978 = vmatpush1.bf16.msra.mxu1 %v8545_v39  ;;  %v8604_v38 = vld [vmem:[#allocation7 + $0x6a4] ss:$16 sps:$4 sm:$0xff]   ;;  %v8607_v39 = vld [vmem:[#allocation7 + $0x6ac] ss:$16 sps:$4 sm:$0xff]  }
 0x230   :  { %2815 = vmatprep.subr.bf16.mxu0 %v8550_v40  ;;  %2979 = vmatprep.subr.bf16.mxu1 %v8553_v41  ;;  %v8602_v40 = vld [vmem:[#allocation7 + $0x6a0] ss:$16 sps:$4 sm:$0xff]   ;;  %v8605_v41 = vld [vmem:[#allocation7 + $0x6a8] ss:$16 sps:$4 sm:$0xff]  }
 0x233   :  { %2816 = vmatpush1.bf16.msra.mxu0 %v8548_v42  ;;  %2980 = vmatpush1.bf16.msra.mxu1 %v8551_v43  ;;  %v8610_v42 = vld [vmem:[#allocation7 + $0x6c4] ss:$16 sps:$4 sm:$0xff]   ;;  %v8613_v43 = vld [vmem:[#allocation7 + $0x6cc] ss:$16 sps:$4 sm:$0xff]  }
 0x234   :  { %2817 = vmatprep.subr.bf16.mxu0 %v8556_v44  ;;  %2981 = vmatprep.subr.bf16.mxu1 %v8559_v46  ;;  %v8608_v44 = vld [vmem:[#allocation7 + $0x6c0] ss:$16 sps:$4 sm:$0xff]   ;;  %v8611_v46 = vld [vmem:[#allocation7 + $0x6c8] ss:$16 sps:$4 sm:$0xff]  }
 0x237   :  { %2818 = vmatpush1.bf16.msra.mxu0 %v8554_v49  ;;  %2982 = vmatpush1.bf16.msra.mxu1 %v8557_v50  ;;  %v8616_v49 = vld [vmem:[#allocation7 + $0x6e4] ss:$16 sps:$4 sm:$0xff]   ;;  %v8619_v50 = vld [vmem:[#allocation7 + $0x6ec] ss:$16 sps:$4 sm:$0xff]  }
 0x238   :  { %2819 = vmatprep.subr.bf16.mxu0 %v8562_v52  ;;  %2983 = vmatprep.subr.bf16.mxu1 %v8565_v53  ;;  %v8614_v52 = vld [vmem:[#allocation7 + $0x6e0] ss:$16 sps:$4 sm:$0xff]   ;;  %v8617_v53 = vld [vmem:[#allocation7 + $0x6e8] ss:$16 sps:$4 sm:$0xff]  }
 0x239   :  { %v1087_v59 = vpop.f32.mrb[8].mxu0 }
 0x23a   :  { %v1088_v61 = vadd.f32 %v1087_v59, %v310_v45  ;;  %v1089_v62 = vpop.f32.mrb[9].mxu0  ;;  %v8625_v45 = vld [vmem:[#allocation7 + $0x70c] ss:$16 sps:$4 sm:$0xff]   ;;  %v8629_v59 = vld [vmem:[#allocation7 + $0x728] ss:$16 sps:$4 sm:$0xff]  }
 0x23b   :  { %v1090_v63 = vadd.f32 %v1089_v62, %v314_v56  ;;  %2820 = vmatpush1.bf16.msra.mxu0 %v8560_v18  ;;  %2984 = vmatpush1.bf16.msra.mxu1 %v8563_v55  ;;  %v1091_v0 = vpop.f32.mrb[10].mxu0  ;;  %v8620_v18 = vld [vmem:[#allocation7 + $0x700] ss:$16 sps:$4 sm:$0xff]   ;;  %v8623_v55 = vld [vmem:[#allocation7 + $0x708] ss:$16 sps:$4 sm:$0xff]  }
 0x23c   :  { %v1139_v3 = vmax.f32 %v1088_v61, 0.0  ;;  %v1092_v4 = vpop.f32.mrb[11].mxu0  ;;  %2821 = vmatprep.subr.bf16.mxu0 %v8568_v57  ;;  %2985 = vmatprep.subr.bf16.mxu1 %v8571_v58  ;;  %v8628_v56 = vld [vmem:[#allocation7 + $0x724] ss:$16 sps:$4 sm:$0xff]   ;;  %v8631_v57 = vld [vmem:[#allocation7 + $0x72c] ss:$16 sps:$4 sm:$0xff]  }
 0x23d   :  { %v1140_v7 = vmax.f32 %v1090_v63, 0.0  ;;  %v8626_v58 = vld [vmem:[#allocation7 + $0x720] ss:$16 sps:$4 sm:$0xff]   ;;  %v8637_v61 = vld [vmem:[#allocation7 + $0x74c] ss:$16 sps:$4 sm:$0xff]  }
 0x23e   :  { %v1148_v15 = vpack.c.bf16 %v1139_v3, %v1139_v3  ;;  %v8632_v62 = vld [vmem:[#allocation7 + $0x740] ss:$16 sps:$4 sm:$0xff]   ;;  %v8635_v63 = vld [vmem:[#allocation7 + $0x748] ss:$16 sps:$4 sm:$0xff]   ;;  %v8640_v0 = vld [vmem:[#allocation7 + $0x764] ss:$16 sps:$4 sm:$0xff]  }
 0x23f   :  { %v1149_v9 = vpack.c.bf16 %v1140_v7, %v1140_v7  ;;  %2822 = vmatpush1.bf16.msra.mxu0 %v8566_v1  ;;  %2986 = vmatpush1.bf16.msra.mxu1 %v8569_v2  ;;  %v8643_v1 = vld [vmem:[#allocation7 + $0x76c] ss:$16 sps:$4 sm:$0xff]   ;;  %v8638_v2 = vld [vmem:[#allocation7 + $0x760] ss:$16 sps:$4 sm:$0xff]   ;;  %v8641_v3 = vld [vmem:[#allocation7 + $0x768] ss:$16 sps:$4 sm:$0xff]  }
 0x240   :  { %2832 = vmatprep.subr.bf16.mxu0 %v8574_v5  ;;  %2996 = vmatprep.subr.bf16.mxu1 %v8577_v6  ;;  %v8646_v4 = vld [vmem:[#allocation7 + $0x784] ss:$16 sps:$4 sm:$0xff]   ;;  %v8649_v5 = vld [vmem:[#allocation7 + $0x78c] ss:$16 sps:$4 sm:$0xff]   ;;  %v8644_v6 = vld [vmem:[#allocation7 + $0x780] ss:$16 sps:$4 sm:$0xff]  }
 0x241   :  { %2823 = vmatprep.mubr.bf16.mxu0 %v1149_v9  ;;  %2987 = vmatprep.mubr.bf16.mxu1 %v1149_v9  ;;  %v8647_v7 = vld [vmem:[#allocation7 + $0x788] ss:$16 sps:$4 sm:$0xff]   ;;  %v8652_v9 = vld [vmem:[#allocation7 + $0x7a4] ss:$16 sps:$4 sm:$0xff]  }
 0x242   :  { %2824 = vmatmul.mubr.bf16.vlgmr.msra.gmra.mrb[12].mxu0 %v1148_v15  ;;  %2988 = vmatmul.mubr.bf16.vlgmr.msra.gmra.mrb[4].mxu1 %v1148_v15  ;;  %v8653_v15 = vld [vmem:[#allocation7 + $0x7a8] ss:$16 sps:$4 sm:$0xff]  }
 0x243   :  { %2833 = vmatpush1.bf16.msra.mxu0 %v8572_v27  ;;  %2997 = vmatpush1.bf16.msra.mxu1 %v8575_v10  ;;  %v8655_v27 = vld [vmem:[#allocation7 + $0x7ac] ss:$16 sps:$4 sm:$0xff]   ;;  %v8650_v10 = vld [vmem:[#allocation7 + $0x7a0] ss:$16 sps:$4 sm:$0xff]  }
 0x244   :  { %2834 = vmatprep.subr.bf16.mxu0 %v8580_v16  ;;  %2998 = vmatprep.subr.bf16.mxu1 %v8583_v17  ;;  %v318_v16 = vrot.slane %v9565_v13, %v317_v8  ;;  %v8658_v17 = vld [vmem:[#allocation7 + $0x7c4] ss:$16 sps:$4 sm:$0xff]  }
 0x245   :  { %2864 = vmatprep.mubr.bf16.mxu0 %v1151_v19  ;;  %3028 = vmatprep.mubr.bf16.mxu1 %v1151_v19  ;;  %v8661_v19 = vld [vmem:[#allocation7 + $0x7cc] ss:$16 sps:$4 sm:$0xff]  }
 0x246   :  { %v8670_v13 = vld [vmem:[#allocation8 + $0x4] ss:$8 sps:$4 sm:$0xff]  }
 0x247   :  { %2835 = vmatpush1.bf16.msra.mxu0 %v8578_v21  ;;  %2999 = vmatpush1.bf16.msra.mxu1 %v8581_v22  ;;  %v8656_v21 = vld [vmem:[#allocation7 + $0x7c0] ss:$16 sps:$4 sm:$0xff]   ;;  %v8659_v22 = vld [vmem:[#allocation7 + $0x7c8] ss:$16 sps:$4 sm:$0xff]  }
 0x248   :  { %2836 = vmatprep.subr.bf16.mxu0 %v8586_v25  ;;  %3000 = vmatprep.subr.bf16.mxu1 %v8589_v26  ;;  %v1129_v25 = vadd.f32 %v9580_v24, %v318_v16  ;;  %v8664_v26 = vld [vmem:[#allocation7 + $0x7e4] ss:$16 sps:$4 sm:$0xff]   ;;  %v8671_v24 = vld [vmem:[#allocation8 + $0x10] ss:$8 sps:$4 sm:$0xff]  }
 0x24b   :  { %2837 = vmatpush1.bf16.msra.mxu0 %v8584_v28  ;;  %3001 = vmatpush1.bf16.msra.mxu1 %v8587_v29  ;;  %v8667_v28 = vld [vmem:[#allocation7 + $0x7ec] ss:$16 sps:$4 sm:$0xff]   ;;  %v8662_v29 = vld [vmem:[#allocation7 + $0x7e0] ss:$16 sps:$4 sm:$0xff]  }
 0x24c   :  { %2838 = vmatprep.subr.bf16.mxu0 %v8592_v30  ;;  %3002 = vmatprep.subr.bf16.mxu1 %v8595_v31  ;;  %v8665_v30 = vld [vmem:[#allocation7 + $0x7e8] ss:$16 sps:$4 sm:$0xff]   ;;  %v1141_v31 = vmax.f32 %v1129_v25, 0.0 }
 0x24f   :  { %2839 = vmatpush1.bf16.msra.mxu0 %v8590_v32  ;;  %3003 = vmatpush1.bf16.msra.mxu1 %v8593_v33  ;;  %v8668_v32 = vld [vmem:[#allocation8] ss:$8 sps:$4 sm:$0xff]   ;;  %v1150_v33 = vpack.c.bf16 %v1141_v31, %v1141_v31 }
 0x250   :  { %2840 = vmatprep.subr.bf16.mxu0 %v8598_v34  ;;  %3004 = vmatprep.subr.bf16.mxu1 %v8601_v35  ;;  %v8673_v34 = vld [vmem:[#allocation8 + $0x14] ss:$8 sps:$4 sm:$0xff]   ;;  %v8676_v35 = vld [vmem:[#allocation8 + $0x24] ss:$8 sps:$4 sm:$0xff]  }
 0x253   :  { %2841 = vmatpush1.bf16.msra.mxu0 %v8596_v36  ;;  %3005 = vmatpush1.bf16.msra.mxu1 %v8599_v37  ;;  %v8674_v36 = vld [vmem:[#allocation8 + $0x20] ss:$8 sps:$4 sm:$0xff]   ;;  %v8679_v37 = vld [vmem:[#allocation8 + $0x34] ss:$8 sps:$4 sm:$0xff]  }
 0x254   :  { %2842 = vmatprep.subr.bf16.mxu0 %v8604_v38  ;;  %3006 = vmatprep.subr.bf16.mxu1 %v8607_v39  ;;  %v8677_v38 = vld [vmem:[#allocation8 + $0x30] ss:$8 sps:$4 sm:$0xff]   ;;  %v8682_v39 = vld [vmem:[#allocation8 + $0x44] ss:$8 sps:$4 sm:$0xff]  }
 0x257   :  { %2843 = vmatpush1.bf16.msra.mxu0 %v8602_v40  ;;  %3007 = vmatpush1.bf16.msra.mxu1 %v8605_v41  ;;  %v8680_v40 = vld [vmem:[#allocation8 + $0x40] ss:$8 sps:$4 sm:$0xff]   ;;  %v8685_v41 = vld [vmem:[#allocation8 + $0x54] ss:$8 sps:$4 sm:$0xff]  }
 0x258   :  { %2844 = vmatprep.subr.bf16.mxu0 %v8610_v42  ;;  %3008 = vmatprep.subr.bf16.mxu1 %v8613_v43  ;;  %v8683_v42 = vld [vmem:[#allocation8 + $0x50] ss:$8 sps:$4 sm:$0xff]   ;;  %v8688_v43 = vld [vmem:[#allocation8 + $0x64] ss:$8 sps:$4 sm:$0xff]  }
 0x25b   :  { %2845 = vmatpush1.bf16.msra.mxu0 %v8608_v44  ;;  %3009 = vmatpush1.bf16.msra.mxu1 %v8611_v46  ;;  %v8686_v44 = vld [vmem:[#allocation8 + $0x60] ss:$8 sps:$4 sm:$0xff]   ;;  %v8691_v46 = vld [vmem:[#allocation8 + $0x74] ss:$8 sps:$4 sm:$0xff]  }
 0x25c   :  { %2846 = vmatprep.subr.bf16.mxu0 %v8616_v49  ;;  %3010 = vmatprep.subr.bf16.mxu1 %v8619_v50  ;;  %v8689_v49 = vld [vmem:[#allocation8 + $0x70] ss:$8 sps:$4 sm:$0xff]   ;;  %v8694_v50 = vld [vmem:[#allocation8 + $0x84] ss:$8 sps:$4 sm:$0xff]  }
 0x25f   :  { %2847 = vmatpush1.bf16.msra.mxu0 %v8614_v52  ;;  %3011 = vmatpush1.bf16.msra.mxu1 %v8617_v53  ;;  %v8692_v52 = vld [vmem:[#allocation8 + $0x80] ss:$8 sps:$4 sm:$0xff]   ;;  %v8697_v53 = vld [vmem:[#allocation8 + $0x94] ss:$8 sps:$4 sm:$0xff]  }
 0x260   :  { %2848 = vmatprep.subr.bf16.mxu0 %v8622_v54  ;;  %3012 = vmatprep.subr.bf16.mxu1 %v8625_v45  ;;  %v8695_v54 = vld [vmem:[#allocation8 + $0x90] ss:$8 sps:$4 sm:$0xff]   ;;  %v8700_v45 = vld [vmem:[#allocation8 + $0xa4] ss:$8 sps:$4 sm:$0xff]  }
 0x263   :  { %2849 = vmatpush1.bf16.msra.mxu0 %v8620_v18  ;;  %3013 = vmatpush1.bf16.msra.mxu1 %v8623_v55  ;;  %v8698_v18 = vld [vmem:[#allocation8 + $0xa0] ss:$8 sps:$4 sm:$0xff]   ;;  %v8703_v55 = vld [vmem:[#allocation8 + $0xb4] ss:$8 sps:$4 sm:$0xff]  }
 0x264   :  { %2850 = vmatprep.subr.bf16.mxu0 %v8628_v56  ;;  %3014 = vmatprep.subr.bf16.mxu1 %v8631_v57  ;;  %v8701_v56 = vld [vmem:[#allocation8 + $0xb0] ss:$8 sps:$4 sm:$0xff]   ;;  %v8706_v57 = vld [vmem:[#allocation8 + $0xc4] ss:$8 sps:$4 sm:$0xff]  }
 0x267   :  { %2851 = vmatpush1.bf16.msra.mxu0 %v8626_v58  ;;  %3015 = vmatpush1.bf16.msra.mxu1 %v8629_v59  ;;  %v8704_v58 = vld [vmem:[#allocation8 + $0xc0] ss:$8 sps:$4 sm:$0xff]   ;;  %v8709_v59 = vld [vmem:[#allocation8 + $0xd4] ss:$8 sps:$4 sm:$0xff]  }
 0x268   :  { %2852 = vmatprep.subr.bf16.mxu0 %v8634_v60  ;;  %3016 = vmatprep.subr.bf16.mxu1 %v8637_v61  ;;  %v8707_v60 = vld [vmem:[#allocation8 + $0xd0] ss:$8 sps:$4 sm:$0xff]   ;;  %v8712_v61 = vld [vmem:[#allocation8 + $0xe4] ss:$8 sps:$4 sm:$0xff]  }
 0x26b   :  { %2853 = vmatpush1.bf16.msra.mxu0 %v8632_v62  ;;  %3017 = vmatpush1.bf16.msra.mxu1 %v8635_v63  ;;  %v8710_v62 = vld [vmem:[#allocation8 + $0xe0] ss:$8 sps:$4 sm:$0xff]   ;;  %v8715_v63 = vld [vmem:[#allocation8 + $0xf4] ss:$8 sps:$4 sm:$0xff]  }
 0x26c   :  { %2854 = vmatprep.subr.bf16.mxu0 %v8640_v0  ;;  %3018 = vmatprep.subr.bf16.mxu1 %v8643_v1  ;;  %v8713_v0 = vld [vmem:[#allocation8 + $0xf0] ss:$8 sps:$4 sm:$0xff]   ;;  %v8718_v1 = vld [vmem:[#allocation8 + $0x104] ss:$8 sps:$4 sm:$0xff]  }
 0x26f   :  { %2855 = vmatpush1.bf16.msra.mxu0 %v8638_v2  ;;  %3019 = vmatpush1.bf16.msra.mxu1 %v8641_v3  ;;  %v9609_v2 = vld [vmem:[%s9732_s9 + $0x8] sm:$0xf] }
 0x270   :  { %2856 = vmatprep.subr.bf16.mxu0 %v8646_v4  ;;  %3020 = vmatprep.subr.bf16.mxu1 %v8649_v5  ;;  %v1412_v3 = vrot.slane %v9609_v2, %v9560_v12  ;;  %v1416_v4 = vrot.slane %v9609_v2, %v9568_v14  ;;  %v1424_v5 = vrot.slane %v9609_v2, %v9578_v23 }
 0x273   :  { %2857 = vmatpush1.bf16.msra.mxu0 %v8644_v6  ;;  %3021 = vmatpush1.bf16.msra.mxu1 %v8647_v7 }
 0x274   :  { %2858 = vmatprep.subr.bf16.mxu0 %v8652_v9  ;;  %3022 = vmatprep.subr.bf16.mxu1 %v8655_v27 }
 0x277   :  { %2859 = vmatpush1.bf16.msra.mxu0 %v8650_v10  ;;  %3023 = vmatpush1.bf16.msra.mxu1 %v8653_v15 }
 0x278   :  { %2860 = vmatprep.subr.bf16.mxu0 %v8658_v17  ;;  %3024 = vmatprep.subr.bf16.mxu1 %v8661_v19 }
 0x27b   :  { %2861 = vmatpush1.bf16.msra.mxu0 %v8656_v21  ;;  %3025 = vmatpush1.bf16.msra.mxu1 %v8659_v22 }
 0x27c   :  { %2862 = vmatprep.subr.bf16.mxu0 %v8664_v26  ;;  %3026 = vmatprep.subr.bf16.mxu1 %v8667_v28 }
 0x27f   :  { %2863 = vmatpush1.bf16.msra.mxu0 %v8662_v29  ;;  %3027 = vmatpush1.bf16.msra.mxu1 %v8665_v30  ;;  %v8716_v30 = vld [vmem:[#allocation8 + $0x100] ss:$8 sps:$4 sm:$0xff]  }
 0x280   :  { %3441 = vmatprep.subr.bf16.mxu0 %v8670_v13  ;;  %v8721_v13 = vld [vmem:[#allocation8 + $0x114] ss:$8 sps:$4 sm:$0xff]  }
 0x282   :  { %2865 = vmatmul.mubr.bf16.vlgmr.msra.gmra.mrb[12].mxu0 %v1150_v33  ;;  %3029 = vmatmul.mubr.bf16.vlgmr.msra.gmra.mrb[4].mxu1 %v1150_v33  ;;  %v8719_v33 = vld [vmem:[#allocation8 + $0x110] ss:$8 sps:$4 sm:$0xff]  }
 0x283   :  { %3442 = vmatpush1.bf16.msra.mxu0 %v8668_v32 }
 0x284   :  { %3443 = vmatprep.subr.bf16.mxu0 %v8673_v34  ;;  %v8724_v34 = vld [vmem:[#allocation8 + $0x124] ss:$8 sps:$4 sm:$0xff]  }
 0x287   :  { %3444 = vmatpush1.bf16.msra.mxu0 %v8671_v24  ;;  %v8722_v24 = vld [vmem:[#allocation8 + $0x120] ss:$8 sps:$4 sm:$0xff]  }
 0x288   :  { %3445 = vmatprep.subr.bf16.mxu0 %v8676_v35  ;;  %v8727_v35 = vld [vmem:[#allocation8 + $0x134] ss:$8 sps:$4 sm:$0xff]  }
 0x28b   :  { %3446 = vmatpush1.bf16.msra.mxu0 %v8674_v36  ;;  %v8725_v36 = vld [vmem:[#allocation8 + $0x130] ss:$8 sps:$4 sm:$0xff]  }
 0x28c   :  { %3447 = vmatprep.subr.bf16.mxu0 %v8679_v37  ;;  %v8730_v37 = vld [vmem:[#allocation8 + $0x144] ss:$8 sps:$4 sm:$0xff]  }
 0x28f   :  { %3448 = vmatpush1.bf16.msra.mxu0 %v8677_v38  ;;  %v8728_v38 = vld [vmem:[#allocation8 + $0x140] ss:$8 sps:$4 sm:$0xff]  }
 0x290   :  { %3449 = vmatprep.subr.bf16.mxu0 %v8682_v39  ;;  %v8733_v39 = vld [vmem:[#allocation8 + $0x154] ss:$8 sps:$4 sm:$0xff]  }
 0x293   :  { %3450 = vmatpush1.bf16.msra.mxu0 %v8680_v40  ;;  %v8731_v40 = vld [vmem:[#allocation8 + $0x150] ss:$8 sps:$4 sm:$0xff]  }
 0x294   :  { %3451 = vmatprep.subr.bf16.mxu0 %v8685_v41  ;;  %v8736_v41 = vld [vmem:[#allocation8 + $0x164] ss:$8 sps:$4 sm:$0xff]  }
 0x297   :  { %3452 = vmatpush1.bf16.msra.mxu0 %v8683_v42  ;;  %v8734_v42 = vld [vmem:[#allocation8 + $0x160] ss:$8 sps:$4 sm:$0xff]  }
 0x298   :  { %3453 = vmatprep.subr.bf16.mxu0 %v8688_v43  ;;  %v8739_v43 = vld [vmem:[#allocation8 + $0x174] ss:$8 sps:$4 sm:$0xff]  }
 0x29b   :  { %3454 = vmatpush1.bf16.msra.mxu0 %v8686_v44  ;;  %v8737_v44 = vld [vmem:[#allocation8 + $0x170] ss:$8 sps:$4 sm:$0xff]  }
 0x29c   :  { %3455 = vmatprep.subr.bf16.mxu0 %v8691_v46  ;;  %v8742_v46 = vld [vmem:[#allocation8 + $0x184] ss:$8 sps:$4 sm:$0xff]  }
 0x29f   :  { %3456 = vmatpush1.bf16.msra.mxu0 %v8689_v49  ;;  %v8740_v49 = vld [vmem:[#allocation8 + $0x180] ss:$8 sps:$4 sm:$0xff]  }
 0x2a0   :  { %3457 = vmatprep.subr.bf16.mxu0 %v8694_v50  ;;  %v8745_v50 = vld [vmem:[#allocation8 + $0x194] ss:$8 sps:$4 sm:$0xff]  }
 0x2a3   :  { %3458 = vmatpush1.bf16.msra.mxu0 %v8692_v52  ;;  %v8743_v52 = vld [vmem:[#allocation8 + $0x190] ss:$8 sps:$4 sm:$0xff]  }
 0x2a4   :  { %3459 = vmatprep.subr.bf16.mxu0 %v8697_v53  ;;  %v8748_v53 = vld [vmem:[#allocation8 + $0x1a4] ss:$8 sps:$4 sm:$0xff]  }
 0x2a7   :  { %3460 = vmatpush1.bf16.msra.mxu0 %v8695_v54  ;;  %v8746_v54 = vld [vmem:[#allocation8 + $0x1a0] ss:$8 sps:$4 sm:$0xff]  }
 0x2a8   :  { %3461 = vmatprep.subr.bf16.mxu0 %v8700_v45  ;;  %v8751_v45 = vld [vmem:[#allocation8 + $0x1b4] ss:$8 sps:$4 sm:$0xff]  }
 0x2ab   :  { %3462 = vmatpush1.bf16.msra.mxu0 %v8698_v18  ;;  %v8749_v18 = vld [vmem:[#allocation8 + $0x1b0] ss:$8 sps:$4 sm:$0xff]  }
 0x2ac   :  { %3463 = vmatprep.subr.bf16.mxu0 %v8703_v55  ;;  %v8754_v55 = vld [vmem:[#allocation8 + $0x1c4] ss:$8 sps:$4 sm:$0xff]  }
 0x2af   :  { %3464 = vmatpush1.bf16.msra.mxu0 %v8701_v56  ;;  %v8752_v56 = vld [vmem:[#allocation8 + $0x1c0] ss:$8 sps:$4 sm:$0xff]  }
 0x2b0   :  { %3465 = vmatprep.subr.bf16.mxu0 %v8706_v57  ;;  %v8757_v57 = vld [vmem:[#allocation8 + $0x1d4] ss:$8 sps:$4 sm:$0xff]  }
 0x2b3   :  { %3466 = vmatpush1.bf16.msra.mxu0 %v8704_v58  ;;  %v8755_v58 = vld [vmem:[#allocation8 + $0x1d0] ss:$8 sps:$4 sm:$0xff]  }
 0x2b4   :  { %3467 = vmatprep.subr.bf16.mxu0 %v8709_v59  ;;  %v1420_v59 = vrot.slane %v9609_v2, %v9575_v20  ;;  %v8767_v2 = vld [vmem:[#allocation10 + $0x8] sm:$0xff]  }
 0x2b7   :  { %3468 = vmatpush1.bf16.msra.mxu0 %v8707_v60  ;;  %v8760_v60 = vld [vmem:[#allocation8 + $0x1e4] ss:$8 sps:$4 sm:$0xff]  }
 0x2b8   :  { %3469 = vmatprep.subr.bf16.mxu0 %v8712_v61  ;;  %v8758_v61 = vld [vmem:[#allocation8 + $0x1e0] ss:$8 sps:$4 sm:$0xff]  }
 0x2bb   :  { %3470 = vmatpush1.bf16.msra.mxu0 %v8710_v62 }
 0x2bc   :  { %3471 = vmatprep.subr.bf16.mxu0 %v8715_v63  ;;  %v8763_v63 = vld [vmem:[#allocation8 + $0x1f4] ss:$8 sps:$4 sm:$0xff]  }
 0x2bf   :  { %3472 = vmatpush1.bf16.msra.mxu0 %v8713_v0  ;;  %v8761_v0 = vld [vmem:[#allocation8 + $0x1f0] ss:$8 sps:$4 sm:$0xff]  }
 0x2c0   :  { %3482 = vmatprep.subr.bf16.mxu0 %v8718_v1 }
 0x355   :  { %v2866_v6 = vpop.f32.mrb[12].mxu0  ;;  %v9617_v7 = vpop.f32.mrb[4].mxu1 }
 0x356   :  { %v8193_v9 = vadd.f32 %v2866_v6, %v1412_v3  ;;  %v2868_v27 = vpop.f32.mrb[13].mxu0  ;;  %v3032_v10 = vpop.f32.mrb[5].mxu1  ;;  %v8195_v62 = vadd.f32 %v9617_v7, %v1420_v59  ;;  %v8764_v3 = vld [vmem:[#allocation10 + $0x40] sm:$0xff]   ;;  %v8766_v6 = vld [vmem:[#allocation10 + $0x48] sm:$0xff]   ;;  %v8770_v7 = vld [vmem:[#allocation10 + $0x58] sm:$0xff]  }
 0x357   :  { %v8194_v15 = vadd.f32 %v2868_v27, %v1416_v4  ;;  %v8196_v16 = vadd.f32 %v3032_v10, %v1424_v5  ;;  %v2870_v17 = vpop.f32.mrb[14].mxu0  ;;  %v3034_v19 = vpop.f32.mrb[6].mxu1  ;;  %v8765_v4 = vld [vmem:[#allocation10] sm:$0xff]   ;;  %v8769_v27 = vld [vmem:[#allocation10 + $0x10] sm:$0xff]   ;;  %v8771_v10 = vld [vmem:[#allocation10 + $0x18] sm:$0xff]  }
 0x358   :  { %v3037_v21 = vmax.f32 %v8193_v9, 0.0  ;;  %v2871_v22 = vpop.f32.mrb[15].mxu0  ;;  %v3035_v25 = vpop.f32.mrb[7].mxu1  ;;  %v3039_v1 = vmax.f32 %v8195_v62, 0.0  ;;  %v8768_v9 = vld [vmem:[#allocation10 + $0x50] sm:$0xff]   ;;  %v8774_v17 = vld [vmem:[#allocation10 + $0x68] sm:$0xff]  }
 0x359   :  { %v3038_v26 = vmax.f32 %v8194_v15, 0.0  ;;  %v3040_v28 = vmax.f32 %v8196_v16, 0.0  ;;  %v8772_v15 = vld [vmem:[#allocation10 + $0x60] sm:$0xff]   ;;  %v8775_v19 = vld [vmem:[#allocation10 + $0x28] sm:$0xff]   ;;  %v8777_v22 = vld [vmem:[#allocation10 + $0x30] sm:$0xff]  }
 0x35a   :  { %v3042_v31 = vpack.c.bf16 %v3037_v21, %v3037_v21  ;;  %v3044_v5 = vpack.c.bf16 %v3039_v1, %v3039_v1  ;;  %v8773_v16 = vld [vmem:[#allocation10 + $0x20] sm:$0xff]   ;;  %v8776_v21 = vld [vmem:[#allocation10 + $0x70] sm:$0xff]   ;;  %v8778_v25 = vld [vmem:[#allocation10 + $0x78] sm:$0xff]  }
 0x35b   :  { %v3043_v29 = vpack.c.bf16 %v3038_v26, %v3038_v26  ;;  %v3045_v32 = vpack.c.bf16 %v3040_v28, %v3040_v28  ;;  %v8779_v26 = vld [vmem:[#allocation10 + $0x38] sm:$0xff]   ;;  %v8780_v28 = vld [vmem:[#allocation11] ss:$8 sps:$4 sm:$0xff]  }
 0x35c   :  { %v8807_v59 = vld [vmem:[#allocation13 + $0x8] ss:$16 sps:$4 sm:$0xff]   ;;  %v8827_v1 = vld [vmem:[#allocation13 + $0x6c] ss:$16 sps:$4 sm:$0xff]  }
 0x35d   :  { %3473 = vmatprep.mubr.bf16.mxu0 %v3043_v29  ;;  %v8782_v29 = vld [vmem:[#allocation11 + $0x4] ss:$8 sps:$4 sm:$0xff]   ;;  %v8813_v62 = vld [vmem:[#allocation13 + $0x28] ss:$16 sps:$4 sm:$0xff]  }
 0x35e   :  { %3474 = vmatmul.mubr.bf16.vlgmr.msra.gmra.mrb[16].mxu0 %v3042_v31  ;;  %3812 = vmatprep.subr.bf16.mxu1 %v8782_v29  ;;  %v8783_v31 = vld [vmem:[#allocation11 + $0x10] ss:$8 sps:$4 sm:$0xff]  }
 0x35f   :  { %3483 = vmatpush1.bf16.msra.mxu0 %v8716_v30  ;;  %3514 = vmatprep.mubr.bf16.mxu0 %v3045_v32  ;;  %v8785_v30 = vld [vmem:[#allocation11 + $0x14] ss:$8 sps:$4 sm:$0xff]   ;;  %v8786_v32 = vld [vmem:[#allocation11 + $0x20] ss:$8 sps:$4 sm:$0xff]  }
 0x360   :  { %3484 = vmatprep.subr.bf16.mxu0 %v8721_v13  ;;  %3813 = vmatpush1.bf16.msra.mxu1 %v8780_v28  ;;  %v8788_v13 = vld [vmem:[#allocation11 + $0x24] ss:$8 sps:$4 sm:$0xff]   ;;  %v8879_v29 = vld [vmem:[#allocation13 + $0x188] ss:$16 sps:$4 sm:$0xff]  }
 0x361   :  { %3814 = vmatprep.subr.bf16.mxu1 %v8785_v30  ;;  %v8881_v28 = vld [vmem:[#allocation13 + $0x18c] ss:$16 sps:$4 sm:$0xff]  }
 0x362   :  { %v8887_v30 = vld [vmem:[#allocation13 + $0x1ac] ss:$16 sps:$4 sm:$0xff]  }
 0x363   :  { %3485 = vmatpush1.bf16.msra.mxu0 %v8719_v33  ;;  %v8791_v33 = vld [vmem:[#allocation11 + $0x34] ss:$8 sps:$4 sm:$0xff]  }
 0x364   :  { %3486 = vmatprep.subr.bf16.mxu0 %v8724_v34  ;;  %3815 = vmatpush1.bf16.msra.mxu1 %v8783_v31  ;;  %v8789_v34 = vld [vmem:[#allocation11 + $0x30] ss:$8 sps:$4 sm:$0xff]  }
 0x365   :  { %3816 = vmatprep.subr.bf16.mxu1 %v8788_v13  ;;  %v8885_v31 = vld [vmem:[#allocation13 + $0x1a8] ss:$16 sps:$4 sm:$0xff]  }
 0x367   :  { %3487 = vmatpush1.bf16.msra.mxu0 %v8722_v24  ;;  %v8794_v24 = vld [vmem:[#allocation11 + $0x44] ss:$8 sps:$4 sm:$0xff]  }
 0x368   :  { %3488 = vmatprep.subr.bf16.mxu0 %v8727_v35  ;;  %3817 = vmatpush1.bf16.msra.mxu1 %v8786_v32  ;;  %v8792_v35 = vld [vmem:[#allocation11 + $0x40] ss:$8 sps:$4 sm:$0xff]   ;;  %v7690_v32 = vld [vmem:[%s9732_s9 + $0xe] ss:$0 sm:$0xff] }
 0x369   :  { %3818 = vmatprep.subr.bf16.mxu1 %v8791_v33 }
 0x36b   :  { %3489 = vmatpush1.bf16.msra.mxu0 %v8725_v36  ;;  %v8797_v36 = vld [vmem:[#allocation11 + $0x54] ss:$8 sps:$4 sm:$0xff]  }
 0x36c   :  { %3490 = vmatprep.subr.bf16.mxu0 %v8730_v37  ;;  %3819 = vmatpush1.bf16.msra.mxu1 %v8789_v34  ;;  %v8795_v37 = vld [vmem:[#allocation11 + $0x50] ss:$8 sps:$4 sm:$0xff]  }
 0x36d   :  { %3820 = vmatprep.subr.bf16.mxu1 %v8794_v24 }
 0x36f   :  { %3491 = vmatpush1.bf16.msra.mxu0 %v8728_v38  ;;  %v3041_v38 = vld [vmem:[%s9732_s9 + $0xc] sm:$0x3] }
 0x370   :  { %3492 = vmatprep.subr.bf16.mxu0 %v8733_v39  ;;  %3821 = vmatpush1.bf16.msra.mxu1 %v8792_v35  ;;  %v3114_v39 = vrot.slane %v3041_v38, %v9560_v12 }
 0x371   :  { %3822 = vmatprep.subr.bf16.mxu1 %v8797_v36 }
 0x373   :  { %3493 = vmatpush1.bf16.msra.mxu0 %v8731_v40  ;;  %v3118_v40 = vrot.slane %v3041_v38, %v9568_v14  ;;  %v8804_v38 = vld [vmem:[#allocation13] ss:$16 sps:$4 sm:$0xff]  }
 0x374   :  { %3494 = vmatprep.subr.bf16.mxu0 %v8736_v41  ;;  %3823 = vmatpush1.bf16.msra.mxu1 %v8795_v37 }
 0x377   :  { %3495 = vmatpush1.bf16.msra.mxu0 %v8734_v42 }
 0x378   :  { %3496 = vmatprep.subr.bf16.mxu0 %v8739_v43 }
 0x37b   :  { %3497 = vmatpush1.bf16.msra.mxu0 %v8737_v44 }
 0x37c   :  { %3498 = vmatprep.subr.bf16.mxu0 %v8742_v46 }
 0x37f   :  { %3499 = vmatpush1.bf16.msra.mxu0 %v8740_v49 }
 0x380   :  { %3500 = vmatprep.subr.bf16.mxu0 %v8745_v50 }
 0x383   :  { %3501 = vmatpush1.bf16.msra.mxu0 %v8743_v52 }
 0x384   :  { %3502 = vmatprep.subr.bf16.mxu0 %v8748_v53 }
 0x387   :  { %3503 = vmatpush1.bf16.msra.mxu0 %v8746_v54 }
 0x388   :  { %3504 = vmatprep.subr.bf16.mxu0 %v8751_v45  ;;  %v8800_v45 = vld [vmem:[#allocation11 + $0x64] ss:$8 sps:$4 sm:$0xff]  }
 0x389   :  { %3824 = vmatprep.subr.bf16.mxu1 %v8800_v45  ;;  %v8840_v45 = vld [vmem:[#allocation13 + $0xc0] ss:$16 sps:$4 sm:$0xff]  }
 0x38b   :  { %3505 = vmatpush1.bf16.msra.mxu0 %v8749_v18  ;;  %v8798_v18 = vld [vmem:[#allocation11 + $0x60] ss:$8 sps:$4 sm:$0xff]  }
 0x38c   :  { %3506 = vmatprep.subr.bf16.mxu0 %v8754_v55  ;;  %3825 = vmatpush1.bf16.msra.mxu1 %v8798_v18  ;;  %v8803_v55 = vld [vmem:[#allocation11 + $0x74] ss:$8 sps:$4 sm:$0xff]  }
 0x38d   :  { %3826 = vmatprep.subr.bf16.mxu1 %v8803_v55  ;;  %v8848_v18 = vld [vmem:[#allocation13 + $0xe4] ss:$16 sps:$4 sm:$0xff]   ;;  %v8846_v55 = vld [vmem:[#allocation13 + $0xe0] ss:$16 sps:$4 sm:$0xff]  }
 0x38f   :  { %3507 = vmatpush1.bf16.msra.mxu0 %v8752_v56  ;;  %v8801_v56 = vld [vmem:[#allocation11 + $0x70] ss:$8 sps:$4 sm:$0xff]  }
 0x390   :  { %3508 = vmatprep.subr.bf16.mxu0 %v8757_v57  ;;  %3827 = vmatpush1.bf16.msra.mxu1 %v8801_v56  ;;  %v9345_v57 = vmov 0   ;;  %v8854_v56 = vld [vmem:[#allocation13 + $0x104] ss:$16 sps:$4 sm:$0xff]  }
 0x391   :  { %3844 = vmatprep.mubr.bf16.mxu1 %v9345_v57  ;;  %v8852_v57 = vld [vmem:[#allocation13 + $0x100] ss:$16 sps:$4 sm:$0xff]  }
 0x393   :  { %3509 = vmatpush1.bf16.msra.mxu0 %v8755_v58  ;;  %v8806_v58 = vld [vmem:[#allocation13 + $0x4] ss:$16 sps:$4 sm:$0xff]  }
 0x394   :  { %3510 = vmatprep.subr.bf16.mxu0 %v8760_v60  ;;  %v8809_v60 = vld [vmem:[#allocation13 + $0xc] ss:$16 sps:$4 sm:$0xff]   ;;  %4263 = vmatprep.subr.bf16.mxu1 %v8806_v58  ;;  %v8860_v58 = vld [vmem:[#allocation13 + $0x124] ss:$16 sps:$4 sm:$0xff]  }
 0x397   :  { %3511 = vmatpush1.bf16.msra.mxu0 %v8758_v61  ;;  %v8815_v61 = vld [vmem:[#allocation13 + $0x2c] ss:$16 sps:$4 sm:$0xff]  }
 0x398   :  { %3512 = vmatprep.subr.bf16.mxu0 %v8763_v63  ;;  %v8821_v63 = vld [vmem:[#allocation13 + $0x4c] ss:$16 sps:$4 sm:$0xff]  }
 0x39b   :  { %3513 = vmatpush1.bf16.msra.mxu0 %v8761_v0  ;;  %v8819_v0 = vld [vmem:[#allocation13 + $0x48] ss:$16 sps:$4 sm:$0xff]  }
 0x39c   :  { %8171 = vmatprep.subr.bf16.mxu0 %v8764_v3  ;;  %v8825_v3 = vld [vmem:[#allocation13 + $0x68] ss:$16 sps:$4 sm:$0xff]  }
 0x39e   :  { %3515 = vmatmul.mubr.bf16.vlgmr.msra.gmra.mrb[16].mxu0 %v3044_v5  ;;  %v8831_v5 = vld [vmem:[#allocation13 + $0x88] ss:$16 sps:$4 sm:$0xff]  }
 0x39f   :  { %8172 = vmatpush3.bf16.msra.mxu0 %v8765_v4  ;;  %v8833_v4 = vld [vmem:[#allocation13 + $0x8c] ss:$16 sps:$4 sm:$0xff]  }
 0x3a0   :  { %8173 = vmatprep.subr.bf16.mxu0 %v8766_v6  ;;  %v8839_v6 = vld [vmem:[#allocation13 + $0xac] ss:$16 sps:$4 sm:$0xff]  }
 0x3a3   :  { %8174 = vmatpush3.bf16.msra.mxu0 %v8767_v2  ;;  %v8837_v2 = vld [vmem:[#allocation13 + $0xa8] ss:$16 sps:$4 sm:$0xff]  }
 0x3a4   :  { %8175 = vmatprep.subr.bf16.mxu0 %v8768_v9  ;;  %v8845_v9 = vld [vmem:[#allocation13 + $0xcc] ss:$16 sps:$4 sm:$0xff]  }
 0x3a7   :  { %8176 = vmatpush3.bf16.msra.mxu0 %v8769_v27  ;;  %v8843_v27 = vld [vmem:[#allocation13 + $0xc8] ss:$16 sps:$4 sm:$0xff]  }
 0x3a8   :  { %8177 = vmatprep.subr.bf16.mxu0 %v8770_v7  ;;  %v8851_v7 = vld [vmem:[#allocation13 + $0xec] ss:$16 sps:$4 sm:$0xff]  }
 0x3ab   :  { %8178 = vmatpush3.bf16.msra.mxu0 %v8771_v10  ;;  %v8849_v10 = vld [vmem:[#allocation13 + $0xe8] ss:$16 sps:$4 sm:$0xff]  }
 0x3ac   :  { %8179 = vmatprep.subr.bf16.mxu0 %v8772_v15  ;;  %v8857_v15 = vld [vmem:[#allocation13 + $0x10c] ss:$16 sps:$4 sm:$0xff]  }
 0x3af   :  { %8180 = vmatpush3.bf16.msra.mxu0 %v8773_v16  ;;  %v8855_v16 = vld [vmem:[#allocation13 + $0x108] ss:$16 sps:$4 sm:$0xff]  }
 0x3b0   :  { %8181 = vmatprep.subr.bf16.mxu0 %v8774_v17  ;;  %v8863_v17 = vld [vmem:[#allocation13 + $0x12c] ss:$16 sps:$4 sm:$0xff]  }
 0x3b3   :  { %8182 = vmatpush3.bf16.msra.mxu0 %v8775_v19  ;;  %v8861_v19 = vld [vmem:[#allocation13 + $0x128] ss:$16 sps:$4 sm:$0xff]  }
 0x3b4   :  { %8183 = vmatprep.subr.bf16.mxu0 %v8776_v21  ;;  %v8869_v21 = vld [vmem:[#allocation13 + $0x14c] ss:$16 sps:$4 sm:$0xff]  }
 0x3b7   :  { %8184 = vmatpush3.bf16.msra.mxu0 %v8777_v22  ;;  %v8867_v22 = vld [vmem:[#allocation13 + $0x148] ss:$16 sps:$4 sm:$0xff]  }
 0x3b8   :  { %8185 = vmatprep.subr.bf16.mxu0 %v8778_v25  ;;  %v8875_v25 = vld [vmem:[#allocation13 + $0x16c] ss:$16 sps:$4 sm:$0xff]  }
 0x3bb   :  { %8186 = vmatpush3.bf16.msra.mxu0 %v8779_v26  ;;  %v8873_v26 = vld [vmem:[#allocation13 + $0x168] ss:$16 sps:$4 sm:$0xff]  }
 0x3bc   :  { %4304 = vmatprep.subr.bf16.mxu0 %v8809_v60  ;;  %v8866_v60 = vld [vmem:[#allocation13 + $0x144] ss:$16 sps:$4 sm:$0xff]  }
 0x471   :  { %v3516_v41 = vpop.f32.mrb[16].mxu0 }
 0x472   :  { %v8197_v42 = vadd.f32 %v3516_v41, %v3114_v39  ;;  %v3518_v43 = vpop.f32.mrb[17].mxu0  ;;  %v8810_v41 = vld [vmem:[#allocation13 + $0x20] ss:$16 sps:$4 sm:$0xff]  }
 0x473   :  { %v8198_v44 = vadd.f32 %v3518_v43, %v3118_v40  ;;  %v3520_v46 = vpop.f32.mrb[18].mxu0  ;;  %v8812_v40 = vld [vmem:[#allocation13 + $0x24] ss:$16 sps:$4 sm:$0xff]   ;;  %v8816_v43 = vld [vmem:[#allocation13 + $0x40] ss:$16 sps:$4 sm:$0xff]  }
 0x474   :  { %v3523_v49 = vmax.f32 %v8197_v42, 0.0  ;;  %v3521_v50 = vpop.f32.mrb[19].mxu0  ;;  %v8818_v42 = vld [vmem:[#allocation13 + $0x44] ss:$16 sps:$4 sm:$0xff]   ;;  %v8822_v46 = vld [vmem:[#allocation13 + $0x60] ss:$16 sps:$4 sm:$0xff]  }
 0x475   :  { %v3524_v52 = vmax.f32 %v8198_v44, 0.0  ;;  %v8824_v44 = vld [vmem:[#allocation13 + $0x64] ss:$16 sps:$4 sm:$0xff]   ;;  %v8828_v50 = vld [vmem:[#allocation13 + $0x80] ss:$16 sps:$4 sm:$0xff]  }
 0x476   :  { %v3526_v54 = vpack.c.bf16 %v3523_v49, %v3523_v49  ;;  %v8830_v49 = vld [vmem:[#allocation13 + $0x84] ss:$16 sps:$4 sm:$0xff]  }
 0x477   :  { %v3527_v53 = vpack.c.bf16 %v3524_v52, %v3524_v52  ;;  %v8836_v52 = vld [vmem:[#allocation13 + $0xa4] ss:$16 sps:$4 sm:$0xff]  }
 0x479   :  { %3694 = vmatprep.mubr.bf16.mxu0 %v3527_v53  ;;  %v8834_v53 = vld [vmem:[#allocation13 + $0xa0] ss:$16 sps:$4 sm:$0xff]  }
 0x47a   :  { %3695 = vmatmul.mubr.bf16.vlgmr.msra.gmra.mrb[20].mxu0 %v3526_v54  ;;  %v8842_v54 = vld [vmem:[#allocation13 + $0xc4] ss:$16 sps:$4 sm:$0xff]  }
 0x47b   :  { %4305 = vmatpush1.bf16.msra.mxu0 %v8807_v59  ;;  %v8858_v59 = vld [vmem:[#allocation13 + $0x120] ss:$16 sps:$4 sm:$0xff]  }
 0x47c   :  { %4306 = vmatprep.subr.bf16.mxu0 %v8815_v61  ;;  %v8864_v61 = vld [vmem:[#allocation13 + $0x140] ss:$16 sps:$4 sm:$0xff]  }
 0x47f   :  { %4307 = vmatpush1.bf16.msra.mxu0 %v8813_v62  ;;  %v8872_v62 = vld [vmem:[#allocation13 + $0x164] ss:$16 sps:$4 sm:$0xff]  }
 0x480   :  { %4308 = vmatprep.subr.bf16.mxu0 %v8821_v63  ;;  %v8870_v63 = vld [vmem:[#allocation13 + $0x160] ss:$16 sps:$4 sm:$0xff]  }
 0x483   :  { %4309 = vmatpush1.bf16.msra.mxu0 %v8819_v0  ;;  %v8878_v0 = vld [vmem:[#allocation13 + $0x184] ss:$16 sps:$4 sm:$0xff]  }
 0x484   :  { %4310 = vmatprep.subr.bf16.mxu0 %v8827_v1  ;;  %v8876_v1 = vld [vmem:[#allocation13 + $0x180] ss:$16 sps:$4 sm:$0xff]  }
 0x487   :  { %4311 = vmatpush1.bf16.msra.mxu0 %v8825_v3  ;;  %v8884_v3 = vld [vmem:[#allocation13 + $0x1a4] ss:$16 sps:$4 sm:$0xff]  }
 0x488   :  { %4312 = vmatprep.subr.bf16.mxu0 %v8833_v4  ;;  %v8882_v4 = vld [vmem:[#allocation13 + $0x1a0] ss:$16 sps:$4 sm:$0xff]  }
 0x48b   :  { %4313 = vmatpush1.bf16.msra.mxu0 %v8831_v5  ;;  %v8890_v5 = vld [vmem:[#allocation13 + $0x1c4] ss:$16 sps:$4 sm:$0xff]  }
 0x48c   :  { %4314 = vmatprep.subr.bf16.mxu0 %v8839_v6  ;;  %v8893_v6 = vld [vmem:[#allocation13 + $0x1cc] ss:$16 sps:$4 sm:$0xff]  }
 0x48f   :  { %4315 = vmatpush1.bf16.msra.mxu0 %v8837_v2  ;;  %v8888_v2 = vld [vmem:[#allocation13 + $0x1c0] ss:$16 sps:$4 sm:$0xff]  }
 0x490   :  { %4316 = vmatprep.subr.bf16.mxu0 %v8845_v9  ;;  %v8891_v9 = vld [vmem:[#allocation13 + $0x1c8] ss:$16 sps:$4 sm:$0xff]  }
 0x493   :  { %4317 = vmatpush1.bf16.msra.mxu0 %v8843_v27  ;;  %v8896_v27 = vld [vmem:[#allocation13 + $0x1e4] ss:$16 sps:$4 sm:$0xff]  }
 0x494   :  { %4318 = vmatprep.subr.bf16.mxu0 %v8851_v7  ;;  %v8899_v7 = vld [vmem:[#allocation13 + $0x1ec] ss:$16 sps:$4 sm:$0xff]  }
 0x497   :  { %4319 = vmatpush1.bf16.msra.mxu0 %v8849_v10  ;;  %v8894_v10 = vld [vmem:[#allocation13 + $0x1e0] ss:$16 sps:$4 sm:$0xff]  }
 0x498   :  { %4320 = vmatprep.subr.bf16.mxu0 %v8857_v15  ;;  %v8897_v15 = vld [vmem:[#allocation13 + $0x1e8] ss:$16 sps:$4 sm:$0xff]  }
 0x49b   :  { %4321 = vmatpush1.bf16.msra.mxu0 %v8855_v16  ;;  %v4354_v16 = vld [vmem:[#allocation14] sm:$0xff] }
 0x49c   :  { %4322 = vmatprep.subr.bf16.mxu0 %v8863_v17  ;;  %v4358_v17 = vld [vmem:[#allocation14 + $0x20] sm:$0xff] }
 0x49f   :  { %4323 = vmatpush1.bf16.msra.mxu0 %v8861_v19  ;;  %v4355_v19 = vld [vmem:[#allocation14 + $0x8] sm:$0xff] }
 0x4a0   :  { %4324 = vmatprep.subr.bf16.mxu0 %v8869_v21  ;;  %v7787_v21 = vcombine.low %v4354_v16, %v4358_v17 }
 0x4a3   :  { %4325 = vmatpush1.bf16.msra.mxu0 %v8867_v22  ;;  %v7788_v22 = vcombine.high %v4354_v16, %v4358_v17 }
 0x4a4   :  { %4326 = vmatprep.subr.bf16.mxu0 %v8875_v25  ;;  %v4359_v25 = vld [vmem:[#allocation14 + $0x28] sm:$0xff] }
 0x4a7   :  { %4327 = vmatpush1.bf16.msra.mxu0 %v8873_v26  ;;  %v7789_v26 = vcombine.low %v4355_v19, %v4359_v25 }
 0x4a8   :  { %4328 = vmatprep.subr.bf16.mxu0 %v8881_v28  ;;  %v7790_v28 = vcombine.high %v4355_v19, %v4359_v25  ;;  %v4406_v25 = vld [vmem:[#allocation14 + $0x1a0] sm:$0xff] }
 0x4ab   :  { %4329 = vmatpush1.bf16.msra.mxu0 %v8879_v29  ;;  %v3703_v29 = vld [vmem:[%s9732_s9 + $0xf] sm:$0x3] }
 0x4ac   :  { %4330 = vmatprep.subr.bf16.mxu0 %v8887_v30  ;;  %v3725_v30 = vrot.slane %v3703_v29, %v9560_v12 }
 0x4af   :  { %4331 = vmatpush1.bf16.msra.mxu0 %v8885_v31  ;;  %v3729_v31 = vrot.slane %v3703_v29, %v9568_v14 }
 0x4b0   :  { %4332 = vmatprep.subr.bf16.mxu0 %v8893_v6 }
 0x4b3   :  { %4333 = vmatpush1.bf16.msra.mxu0 %v8891_v9 }
 0x4b4   :  { %4334 = vmatprep.subr.bf16.mxu0 %v8899_v7  ;;  %v4398_v7 = vld [vmem:[#allocation14 + $0x160] sm:$0xff] }
 0x4b7   :  { %4335 = vmatpush1.bf16.msra.mxu0 %v8897_v15  ;;  %v4399_v15 = vld [vmem:[#allocation14 + $0x168] sm:$0xff] }
 0x4b8   :  { %6013 = vmatprep.subr.bf16.mxu0 %v7790_v28  ;;  %v4407_v28 = vld [vmem:[#allocation14 + $0x1a8] sm:$0xff] }
 0x54d   :  { %v8187_v13 = vpop.f32.mrb[20].mxu0 }
 0x54e   :  { %v8188_v33 = vpop.f32.mrb[21].mxu0 }
 0x54f   :  { %v8189_v34 = vadd.f32 %v8188_v33, %v8187_v13  ;;  %v8190_v24 = vpop.f32.mrb[22].mxu0 }
 0x550   :  { %v8191_v35 = vpop.f32.mrb[23].mxu0 }
 0x551   :  { %v3697_v36 = vadd.f32 %v8189_v34, %v7690_v32 }
 0x553   :  { %v3702_v37 = vmax.f32 %v3697_v36, 0.0 }
 0x555   :  { %v3704_v39 = vpack.c.bf16 %v3702_v37, %v3702_v37  ;;  %v4362_v37 = vld [vmem:[#allocation14 + $0x40] sm:$0xff] }
 0x557   :  { %3845 = vmatmul.mubr.bf16.vlgmr.msra.gmra.mrb[8].mxu1 %v3704_v39  ;;  %v4366_v39 = vld [vmem:[#allocation14 + $0x60] sm:$0xff] }
 0x558   :  { %4264 = vmatpush1.bf16.msra.mxu1 %v8804_v38 }
 0x559   :  { %4265 = vmatprep.subr.bf16.mxu1 %v8812_v40  ;;  %v4363_v40 = vld [vmem:[#allocation14 + $0x48] sm:$0xff] }
 0x55c   :  { %4266 = vmatpush1.bf16.msra.mxu1 %v8810_v41  ;;  %v4367_v41 = vld [vmem:[#allocation14 + $0x68] sm:$0xff] }
 0x55d   :  { %4267 = vmatprep.subr.bf16.mxu1 %v8818_v42 }
 0x560   :  { %4268 = vmatpush1.bf16.msra.mxu1 %v8816_v43 }
 0x561   :  { %4269 = vmatprep.subr.bf16.mxu1 %v8824_v44  ;;  %v7796_v44 = vcombine.high %v4362_v37, %v4366_v39 }
 0x564   :  { %4270 = vmatpush1.bf16.msra.mxu1 %v8822_v46  ;;  %v7798_v46 = vcombine.high %v4363_v40, %v4367_v41 }
 0x565   :  { %4271 = vmatprep.subr.bf16.mxu1 %v8830_v49  ;;  %v4370_v49 = vld [vmem:[#allocation14 + $0x80] sm:$0xff] }
 0x568   :  { %4272 = vmatpush1.bf16.msra.mxu1 %v8828_v50  ;;  %v4374_v50 = vld [vmem:[#allocation14 + $0xa0] sm:$0xff] }
 0x569   :  { %4273 = vmatprep.subr.bf16.mxu1 %v8836_v52  ;;  %v4371_v52 = vld [vmem:[#allocation14 + $0x88] sm:$0xff] }
 0x56c   :  { %4274 = vmatpush1.bf16.msra.mxu1 %v8834_v53  ;;  %v4375_v53 = vld [vmem:[#allocation14 + $0xa8] sm:$0xff] }
 0x56d   :  { %4275 = vmatprep.subr.bf16.mxu1 %v8842_v54  ;;  %v7795_v54 = vcombine.low %v4362_v37, %v4366_v39  ;;  %v4418_v39 = vld [vmem:[#allocation14 + $0x200] sm:$0xff] }
 0x570   :  { %4276 = vmatpush1.bf16.msra.mxu1 %v8840_v45  ;;  %v7797_v45 = vcombine.low %v4363_v40, %v4367_v41  ;;  %v4422_v40 = vld [vmem:[#allocation14 + $0x220] sm:$0xff]  ;;  %v4419_v41 = vld [vmem:[#allocation14 + $0x208] sm:$0xff] }
 0x571   :  { %4277 = vmatprep.subr.bf16.mxu1 %v8848_v18  ;;  %v7804_v18 = vcombine.high %v4370_v49, %v4374_v50 }
 0x574   :  { %4278 = vmatpush1.bf16.msra.mxu1 %v8846_v55  ;;  %v7806_v55 = vcombine.high %v4371_v52, %v4375_v53 }
 0x575   :  { %4279 = vmatprep.subr.bf16.mxu1 %v8854_v56  ;;  %v4378_v56 = vld [vmem:[#allocation14 + $0xc0] sm:$0xff] }
 0x578   :  { %4280 = vmatpush1.bf16.msra.mxu1 %v8852_v57  ;;  %v4382_v57 = vld [vmem:[#allocation14 + $0xe0] sm:$0xff] }
 0x579   :  { %4281 = vmatprep.subr.bf16.mxu1 %v8860_v58  ;;  %v4379_v58 = vld [vmem:[#allocation14 + $0xc8] sm:$0xff] }
 0x57c   :  { %4282 = vmatpush1.bf16.msra.mxu1 %v8858_v59  ;;  %v4383_v59 = vld [vmem:[#allocation14 + $0xe8] sm:$0xff] }
 0x57d   :  { %4283 = vmatprep.subr.bf16.mxu1 %v8866_v60  ;;  %v7803_v60 = vcombine.low %v4370_v49, %v4374_v50  ;;  %v7813_v6 = vcombine.low %v4379_v58, %v4383_v59  ;;  %v4426_v50 = vld [vmem:[#allocation14 + $0x240] sm:$0xff] }
 0x580   :  { %4284 = vmatpush1.bf16.msra.mxu1 %v8864_v61  ;;  %v7805_v61 = vcombine.low %v4371_v52, %v4375_v53  ;;  %v4430_v52 = vld [vmem:[#allocation14 + $0x260] sm:$0xff]  ;;  %v4427_v53 = vld [vmem:[#allocation14 + $0x248] sm:$0xff] }
 0x581   :  { %4285 = vmatprep.subr.bf16.mxu1 %v8872_v62  ;;  %v7812_v62 = vcombine.high %v4378_v56, %v4382_v57 }
 0x584   :  { %4286 = vmatpush1.bf16.msra.mxu1 %v8870_v63  ;;  %v7814_v63 = vcombine.high %v4379_v58, %v4383_v59  ;;  %v4438_v58 = vld [vmem:[#allocation14 + $0x2a0] sm:$0xff]  ;;  %v4435_v59 = vld [vmem:[#allocation14 + $0x288] sm:$0xff] }
 0x585   :  { %4287 = vmatprep.subr.bf16.mxu1 %v8878_v0  ;;  %v4386_v0 = vld [vmem:[#allocation14 + $0x100] sm:$0xff] }
 0x588   :  { %4288 = vmatpush1.bf16.msra.mxu1 %v8876_v1  ;;  %v4390_v1 = vld [vmem:[#allocation14 + $0x120] sm:$0xff] }
 0x589   :  { %4289 = vmatprep.subr.bf16.mxu1 %v8884_v3  ;;  %v4387_v3 = vld [vmem:[#allocation14 + $0x108] sm:$0xff]  ;;  %v7819_v16 = vcombine.low %v4386_v0, %v4390_v1 }
 0x58c   :  { %4290 = vmatpush1.bf16.msra.mxu1 %v8882_v4  ;;  %v4391_v4 = vld [vmem:[#allocation14 + $0x128] sm:$0xff] }
 0x58d   :  { %4291 = vmatprep.subr.bf16.mxu1 %v8890_v5  ;;  %v7811_v5 = vcombine.low %v4378_v56, %v4382_v57  ;;  %v7822_v9 = vcombine.high %v4387_v3, %v4391_v4  ;;  %v7821_v17 = vcombine.low %v4387_v3, %v4391_v4  ;;  %v4434_v57 = vld [vmem:[#allocation14 + $0x280] sm:$0xff]  ;;  %v4443_v4 = vld [vmem:[#allocation14 + $0x2c8] sm:$0xff] }
 0x58e   :  { %v4446_v3 = vld [vmem:[#allocation14 + $0x2e0] sm:$0xff] }
 0x590   :  { %4292 = vmatpush1.bf16.msra.mxu1 %v8888_v2  ;;  %v7820_v2 = vcombine.high %v4386_v0, %v4390_v1  ;;  %v4442_v1 = vld [vmem:[#allocation14 + $0x2c0] sm:$0xff] }
 0x591   :  { %4293 = vmatprep.subr.bf16.mxu1 %v8896_v27  ;;  %v4394_v27 = vld [vmem:[#allocation14 + $0x140] sm:$0xff] }
 0x592   :  { %v7828_v19 = vcombine.high %v4394_v27, %v4398_v7  ;;  %v7827_v29 = vcombine.low %v4394_v27, %v4398_v7  ;;  %v4450_v7 = vld [vmem:[#allocation14 + $0x300] sm:$0xff] }
 0x594   :  { %4294 = vmatpush1.bf16.msra.mxu1 %v8894_v10  ;;  %v4395_v10 = vld [vmem:[#allocation14 + $0x148] sm:$0xff] }
 0x595   :  { %5931 = vmatprep.subr.bf16.mxu1 %v7788_v22  ;;  %v4402_v22 = vld [vmem:[#allocation14 + $0x180] sm:$0xff] }
 0x62a   :  { %v3846_v13 = vpop.f32.mrb[8].mxu1 }
 0x62b   :  { %v3847_v32 = vadd.f32 %v3846_v13, %v3725_v30  ;;  %v3848_v33 = vpop.f32.mrb[9].mxu1  ;;  %v7829_v30 = vcombine.low %v4395_v10, %v4399_v15 }
 0x62c   :  { %v3849_v34 = vadd.f32 %v3848_v33, %v3729_v31  ;;  %v3850_v24 = vpop.f32.mrb[10].mxu1  ;;  %v7836_v31 = vcombine.high %v4402_v22, %v4406_v25  ;;  %v4414_v33 = vld [vmem:[#allocation14 + $0x1e0] sm:$0xff] }
 0x62d   :  { %v3853_v35 = vmax.f32 %v3847_v32, 0.0  ;;  %v3851_v36 = vpop.f32.mrb[11].mxu1  ;;  %v4410_v32 = vld [vmem:[#allocation14 + $0x1c0] sm:$0xff]  ;;  %v4415_v24 = vld [vmem:[#allocation14 + $0x1e8] sm:$0xff] }
 0x62e   :  { %v3854_v38 = vmax.f32 %v3849_v34, 0.0  ;;  %v4411_v34 = vld [vmem:[#allocation14 + $0x1c8] sm:$0xff]  ;;  %v7844_v37 = vcombine.high %v4410_v32, %v4414_v33 }
 0x62f   :  { %v3856_v43 = vpack.c.bf16 %v3853_v35, %v3853_v35  ;;  %v7835_v35 = vcombine.low %v4402_v22, %v4406_v25  ;;  %v4458_v25 = vld [vmem:[#allocation14 + $0x340] sm:$0xff] }
 0x630   :  { %v3857_v42 = vpack.c.bf16 %v3854_v38, %v3854_v38  ;;  %v7846_v38 = vcombine.high %v4411_v34, %v4415_v24 }
 0x632   :  { %4295 = vmatprep.mubr.bf16.mxu1 %v3857_v42  ;;  %4336 = vmatprep.mubr.bf16.mxu0 %v3857_v42  ;;  %v4423_v42 = vld [vmem:[#allocation14 + $0x228] sm:$0xff] }
 0x633   :  { %4296 = vmatmul.mubr.bf16.vlgmr.msra.gmra.mrb[12].mxu1 %v3856_v43  ;;  %4337 = vmatmul.mubr.bf16.vlgmr.msra.gmra.mrb[24].mxu0 %v3856_v43  ;;  %v7843_v43 = vcombine.low %v4410_v32, %v4414_v33  ;;  %v7854_v49 = vcombine.high %v4419_v41, %v4423_v42 }
 0x634   :  { %5932 = vmatpush1.bf16.msra.mxu1 %v7787_v21  ;;  %6014 = vmatpush1.bf16.msra.mxu0 %v7789_v26  ;;  %v7830_v21 = vcombine.high %v4395_v10, %v4399_v15  ;;  %v4403_v26 = vld [vmem:[#allocation14 + $0x188] sm:$0xff]  ;;  %v4454_v10 = vld [vmem:[#allocation14 + $0x320] sm:$0xff] }
 0x635   :  { %5933 = vmatprep.subr.bf16.mxu1 %v7796_v44  ;;  %6015 = vmatprep.subr.bf16.mxu0 %v7798_v46  ;;  %v7838_v13 = vcombine.high %v4403_v26, %v4407_v28  ;;  %v7837_v36 = vcombine.low %v4403_v26, %v4407_v28  ;;  %v7845_v44 = vcombine.low %v4411_v34, %v4415_v24  ;;  %v4451_v15 = vld [vmem:[#allocation14 + $0x308] sm:$0xff]  ;;  %v4462_v26 = vld [vmem:[#allocation14 + $0x360] sm:$0xff] }
 0x636   :  { %v7852_v46 = vcombine.high %v4418_v39, %v4422_v40  ;;  %v4459_v28 = vld [vmem:[#allocation14 + $0x348] sm:$0xff]  ;;  %v7891_v33 = vcombine.low %v4458_v25, %v4462_v26  ;;  %v4466_v24 = vld [vmem:[#allocation14 + $0x380] sm:$0xff] }
 0x638   :  { %5934 = vmatpush1.bf16.msra.mxu1 %v7795_v54  ;;  %6016 = vmatpush1.bf16.msra.mxu0 %v7797_v45  ;;  %v4431_v54 = vld [vmem:[#allocation14 + $0x268] sm:$0xff]  ;;  %v7851_v45 = vcombine.low %v4418_v39, %v4422_v40 }
 0x639   :  { %5935 = vmatprep.subr.bf16.mxu1 %v7804_v18  ;;  %6017 = vmatprep.subr.bf16.mxu0 %v7806_v55  ;;  %v7853_v18 = vcombine.low %v4419_v41, %v4423_v42  ;;  %v7860_v55 = vcombine.high %v4426_v50, %v4430_v52  ;;  %v7862_v56 = vcombine.high %v4427_v53, %v4431_v54  ;;  %v4474_v42 = vld [vmem:[#allocation14 + $0x3c0] sm:$0xff] }
 0x63c   :  { %5936 = vmatpush1.bf16.msra.mxu1 %v7803_v60  ;;  %6018 = vmatpush1.bf16.msra.mxu0 %v7805_v61  ;;  %v4439_v60 = vld [vmem:[#allocation14 + $0x2a8] sm:$0xff]  ;;  %v7859_v61 = vcombine.low %v4426_v50, %v4430_v52 }
 0x63d   :  { %5937 = vmatprep.subr.bf16.mxu1 %v7812_v62  ;;  %6019 = vmatprep.subr.bf16.mxu0 %v7814_v63  ;;  %v7861_v62 = vcombine.low %v4427_v53, %v4431_v54  ;;  %v7868_v63 = vcombine.high %v4434_v57, %v4438_v58  ;;  %v7870_v0 = vcombine.high %v4435_v59, %v4439_v60  ;;  %v4482_v54 = vld [vmem:[#allocation14 + $0x400] sm:$0xff] }
 0x640   :  { %5938 = vmatpush1.bf16.msra.mxu1 %v7811_v5  ;;  %6020 = vmatpush1.bf16.msra.mxu0 %v7813_v6  ;;  %v4447_v5 = vld [vmem:[#allocation14 + $0x2e8] sm:$0xff]  ;;  %v7867_v6 = vcombine.low %v4434_v57, %v4438_v58 }
 0x641   :  { %5939 = vmatprep.subr.bf16.mxu1 %v7820_v2  ;;  %6021 = vmatprep.subr.bf16.mxu0 %v7822_v9  ;;  %v7869_v2 = vcombine.low %v4435_v59, %v4439_v60  ;;  %v7876_v9 = vcombine.high %v4442_v1, %v4446_v3  ;;  %v7878_v27 = vcombine.high %v4443_v4, %v4447_v5  ;;  %v9638_v60 = vld [vmem:[%s9732_s9 + $0x11] sm:$0xf] }
 0x644   :  { %5940 = vmatpush1.bf16.msra.mxu1 %v7819_v16  ;;  %6022 = vmatpush1.bf16.msra.mxu0 %v7821_v17  ;;  %v4455_v16 = vld [vmem:[#allocation14 + $0x328] sm:$0xff]  ;;  %v7875_v17 = vcombine.low %v4442_v1, %v4446_v3 }
 0x645   :  { %5941 = vmatprep.subr.bf16.mxu1 %v7828_v19  ;;  %6023 = vmatprep.subr.bf16.mxu0 %v7830_v21  ;;  %v7877_v19 = vcombine.low %v4443_v4, %v4447_v5  ;;  %v7884_v21 = vcombine.high %v4450_v7, %v4454_v10  ;;  %v7886_v22 = vcombine.high %v4451_v15, %v4455_v16 }
 0x648   :  { %5942 = vmatpush1.bf16.msra.mxu1 %v7827_v29  ;;  %6024 = vmatpush1.bf16.msra.mxu0 %v7829_v30  ;;  %v4463_v29 = vld [vmem:[#allocation14 + $0x368] sm:$0xff]  ;;  %v7883_v30 = vcombine.low %v4450_v7, %v4454_v10 }
 0x649   :  { %5943 = vmatprep.subr.bf16.mxu1 %v7836_v31  ;;  %6025 = vmatprep.subr.bf16.mxu0 %v7838_v13  ;;  %v7885_v31 = vcombine.low %v4451_v15, %v4455_v16  ;;  %v7892_v13 = vcombine.high %v4458_v25, %v4462_v26  ;;  %v7894_v32 = vcombine.high %v4459_v28, %v4463_v29  ;;  %v4495_v25 = vld [vmem:[#allocation14 + $0x468] sm:$0xff] }
 0x64a   :  { %v7893_v34 = vcombine.low %v4459_v28, %v4463_v29  ;;  %v4498_v29 = vld [vmem:[#allocation14 + $0x480] sm:$0xff] }
 0x64c   :  { %5944 = vmatpush1.bf16.msra.mxu1 %v7835_v35  ;;  %6026 = vmatpush1.bf16.msra.mxu0 %v7837_v36  ;;  %v4470_v35 = vld [vmem:[#allocation14 + $0x3a0] sm:$0xff]  ;;  %v4467_v36 = vld [vmem:[#allocation14 + $0x388] sm:$0xff] }
 0x64d   :  { %5945 = vmatprep.subr.bf16.mxu1 %v7844_v37  ;;  %6027 = vmatprep.subr.bf16.mxu0 %v7846_v38  ;;  %v7900_v37 = vcombine.high %v4466_v24, %v4470_v35  ;;  %v4471_v38 = vld [vmem:[#allocation14 + $0x3a8] sm:$0xff]  ;;  %v7899_v39 = vcombine.low %v4466_v24, %v4470_v35 }
 0x64e   :  { %v7901_v40 = vcombine.low %v4467_v36, %v4471_v38  ;;  %v7902_v41 = vcombine.high %v4467_v36, %v4471_v38  ;;  %v4506_v38 = vld [vmem:[#allocation14 + $0x4c0] sm:$0xff] }
 0x650   :  { %5946 = vmatpush1.bf16.msra.mxu1 %v7843_v43  ;;  %6028 = vmatpush1.bf16.msra.mxu0 %v7845_v44  ;;  %v4478_v43 = vld [vmem:[#allocation14 + $0x3e0] sm:$0xff]  ;;  %v4475_v44 = vld [vmem:[#allocation14 + $0x3c8] sm:$0xff] }
 0x651   :  { %5947 = vmatprep.subr.bf16.mxu1 %v7852_v46  ;;  %6029 = vmatprep.subr.bf16.mxu0 %v7854_v49  ;;  %v7908_v46 = vcombine.high %v4474_v42, %v4478_v43  ;;  %v4479_v49 = vld [vmem:[#allocation14 + $0x3e8] sm:$0xff]  ;;  %v7907_v50 = vcombine.low %v4474_v42, %v4478_v43 }
 0x652   :  { %v7909_v52 = vcombine.low %v4475_v44, %v4479_v49  ;;  %v7910_v53 = vcombine.high %v4475_v44, %v4479_v49  ;;  %v4514_v49 = vld [vmem:[#allocation14 + $0x500] sm:$0xff] }
 0x654   :  { %5948 = vmatpush1.bf16.msra.mxu1 %v7851_v45  ;;  %6030 = vmatpush1.bf16.msra.mxu0 %v7853_v18  ;;  %v4486_v45 = vld [vmem:[#allocation14 + $0x420] sm:$0xff]  ;;  %v4483_v18 = vld [vmem:[#allocation14 + $0x408] sm:$0xff] }
 0x655   :  { %5949 = vmatprep.subr.bf16.mxu1 %v7860_v55  ;;  %6031 = vmatprep.subr.bf16.mxu0 %v7862_v56  ;;  %v7916_v55 = vcombine.high %v4482_v54, %v4486_v45  ;;  %v4487_v56 = vld [vmem:[#allocation14 + $0x428] sm:$0xff]  ;;  %v7915_v57 = vcombine.low %v4482_v54, %v4486_v45 }
 0x656   :  { %v7917_v58 = vcombine.low %v4483_v18, %v4487_v56  ;;  %v7918_v59 = vcombine.high %v4483_v18, %v4487_v56  ;;  %v4522_v56 = vld [vmem:[#allocation14 + $0x540] sm:$0xff] }
 0x658   :  { %5950 = vmatpush1.bf16.msra.mxu1 %v7859_v61  ;;  %6032 = vmatpush1.bf16.msra.mxu0 %v7861_v62  ;;  %v3926_v61 = vrot.slane %v9638_v60, %v9560_v12  ;;  %v3930_v62 = vrot.slane %v9638_v60, %v9568_v14 }
 0x659   :  { %5951 = vmatprep.subr.bf16.mxu1 %v7868_v63  ;;  %6033 = vmatprep.subr.bf16.mxu0 %v7870_v0  ;;  %v3938_v63 = vrot.slane %v9638_v60, %v9578_v23 }
 0x65c   :  { %5952 = vmatpush1.bf16.msra.mxu1 %v7867_v6  ;;  %6034 = vmatpush1.bf16.msra.mxu0 %v7869_v2 }
 0x65d   :  { %5953 = vmatprep.subr.bf16.mxu1 %v7876_v9  ;;  %6035 = vmatprep.subr.bf16.mxu0 %v7878_v27 }
 0x660   :  { %5954 = vmatpush1.bf16.msra.mxu1 %v7875_v17  ;;  %6036 = vmatpush1.bf16.msra.mxu0 %v7877_v19  ;;  %v4490_v17 = vld [vmem:[#allocation14 + $0x440] sm:$0xff] }
 0x661   :  { %5955 = vmatprep.subr.bf16.mxu1 %v7884_v21  ;;  %6037 = vmatprep.subr.bf16.mxu0 %v7886_v22  ;;  %v4494_v21 = vld [vmem:[#allocation14 + $0x460] sm:$0xff]  ;;  %v4491_v22 = vld [vmem:[#allocation14 + $0x448] sm:$0xff] }
 0x662   :  { %v7923_v24 = vcombine.low %v4490_v17, %v4494_v21  ;;  %v7925_v35 = vcombine.low %v4491_v22, %v4495_v25 }
 0x664   :  { %5956 = vmatpush1.bf16.msra.mxu1 %v7883_v30  ;;  %6038 = vmatpush1.bf16.msra.mxu0 %v7885_v31  ;;  %v7924_v30 = vcombine.high %v4490_v17, %v4494_v21  ;;  %v7926_v31 = vcombine.high %v4491_v22, %v4495_v25  ;;  %v4543_v17 = vld [vmem:[#allocation14 + $0x5e8] sm:$0xff] }
 0x665   :  { %5957 = vmatprep.subr.bf16.mxu1 %v7892_v13  ;;  %6039 = vmatprep.subr.bf16.mxu0 %v7894_v32  ;;  %v4502_v13 = vld [vmem:[#allocation14 + $0x4a0] sm:$0xff]  ;;  %v4499_v32 = vld [vmem:[#allocation14 + $0x488] sm:$0xff] }
 0x666   :  { %v7932_v36 = vcombine.high %v4498_v29, %v4502_v13  ;;  %v7931_v42 = vcombine.low %v4498_v29, %v4502_v13  ;;  %v4546_v29 = vld [vmem:[#allocation14 + $0x600] sm:$0xff]  ;;  %v4551_v13 = vld [vmem:[#allocation14 + $0x628] sm:$0xff] }
 0x668   :  { %5958 = vmatpush1.bf16.msra.mxu1 %v7891_v33  ;;  %6040 = vmatpush1.bf16.msra.mxu0 %v7893_v34  ;;  %v4503_v33 = vld [vmem:[#allocation14 + $0x4a8] sm:$0xff] }
 0x669   :  { %5959 = vmatprep.subr.bf16.mxu1 %v7900_v37  ;;  %6041 = vmatprep.subr.bf16.mxu0 %v7902_v41  ;;  %v7934_v37 = vcombine.high %v4499_v32, %v4503_v33  ;;  %v4511_v41 = vld [vmem:[#allocation14 + $0x4e8] sm:$0xff]  ;;  %v7933_v43 = vcombine.low %v4499_v32, %v4503_v33 }
 0x66c   :  { %5960 = vmatpush1.bf16.msra.mxu1 %v7899_v39  ;;  %6042 = vmatpush1.bf16.msra.mxu0 %v7901_v40  ;;  %v4510_v39 = vld [vmem:[#allocation14 + $0x4e0] sm:$0xff]  ;;  %v4507_v40 = vld [vmem:[#allocation14 + $0x4c8] sm:$0xff] }
 0x66d   :  { %5961 = vmatprep.subr.bf16.mxu1 %v7908_v46  ;;  %6043 = vmatprep.subr.bf16.mxu0 %v7910_v53  ;;  %v7940_v44 = vcombine.high %v4506_v38, %v4510_v39  ;;  %v7942_v46 = vcombine.high %v4507_v40, %v4511_v41  ;;  %v4519_v53 = vld [vmem:[#allocation14 + $0x528] sm:$0xff]  ;;  %v7939_v54 = vcombine.low %v4506_v38, %v4510_v39 }
 0x66e   :  { %v7941_v45 = vcombine.low %v4507_v40, %v4511_v41  ;;  %v4555_v38 = vld [vmem:[#allocation14 + $0x648] sm:$0xff] }
 0x66f   :  { %v4559_v39 = vld [vmem:[#allocation14 + $0x668] sm:$0xff] }
 0x670   :  { %5962 = vmatpush1.bf16.msra.mxu1 %v7907_v50  ;;  %6044 = vmatpush1.bf16.msra.mxu0 %v7909_v52  ;;  %v4518_v50 = vld [vmem:[#allocation14 + $0x520] sm:$0xff]  ;;  %v4515_v52 = vld [vmem:[#allocation14 + $0x508] sm:$0xff] }
 0x671   :  { %5972 = vmatprep.subr.bf16.mxu1 %v7916_v55  ;;  %6054 = vmatprep.subr.bf16.mxu0 %v7918_v59  ;;  %v7948_v18 = vcombine.high %v4514_v49, %v4518_v50  ;;  %v7950_v55 = vcombine.high %v4515_v52, %v4519_v53  ;;  %v4527_v59 = vld [vmem:[#allocation14 + $0x568] sm:$0xff] }
 0x706   :  { %v4297_v0 = vpop.f32.mrb[12].mxu1  ;;  %v9646_v1 = vpop.f32.mrb[24].mxu0 }
 0x707   :  { %v4298_v3 = vadd.f32 %v4297_v0, %v3926_v61  ;;  %v4299_v4 = vpop.f32.mrb[13].mxu1  ;;  %v4340_v5 = vpop.f32.mrb[25].mxu0  ;;  %v7947_v61 = vcombine.low %v4514_v49, %v4518_v50  ;;  %v4563_v49 = vld [vmem:[#allocation14 + $0x688] sm:$0xff] }
 0x708   :  { %v4300_v6 = vadd.f32 %v4299_v4, %v3930_v62  ;;  %v4341_v2 = vadd.f32 %v4340_v5, %v3938_v63  ;;  %v4301_v9 = vpop.f32.mrb[14].mxu1  ;;  %v4342_v27 = vpop.f32.mrb[26].mxu0  ;;  %v7949_v62 = vcombine.low %v4515_v52, %v4519_v53  ;;  %v4534_v4 = vld [vmem:[#allocation14 + $0x5a0] sm:$0xff]  ;;  %v4531_v5 = vld [vmem:[#allocation14 + $0x588] sm:$0xff]  ;;  %v7989_v53 = vcombine.low %v4555_v38, %v4559_v39 }
 0x709   :  { %v4345_v7 = vmax.f32 %v4298_v3, 0.0  ;;  %v4302_v10 = vpop.f32.mrb[15].mxu1  ;;  %v4343_v15 = vpop.f32.mrb[27].mxu0  ;;  %v4530_v3 = vld [vmem:[#allocation14 + $0x580] sm:$0xff]  ;;  %v4567_v50 = vld [vmem:[#allocation14 + $0x6a8] sm:$0xff] }
 0x70a   :  { %v4346_v16 = vmax.f32 %v4300_v6, 0.0  ;;  %v4348_v19 = vmax.f32 %v4341_v2, 0.0  ;;  %v4535_v6 = vld [vmem:[#allocation14 + $0x5a8] sm:$0xff]  ;;  %v7964_v27 = vcombine.high %v4530_v3, %v4534_v4  ;;  %v4538_v10 = vld [vmem:[#allocation14 + $0x5c0] sm:$0xff] }
 0x70b   :  { %v9650_v28 = vpack.c.bf16 %v4345_v7, %v4345_v7  ;;  %v7966_v7 = vcombine.high %v4531_v5, %v4535_v6  ;;  %v4542_v15 = vld [vmem:[#allocation14 + $0x5e0] sm:$0xff]  ;;  %v7965_v21 = vcombine.low %v4531_v5, %v4535_v6 }
 0x70c   :  { %v9648_v26 = vpack.c.bf16 %v4346_v16, %v4346_v16  ;;  %v9654_v34 = vpack.c.bf16 %v4348_v19, %v4348_v19  ;;  %v4539_v16 = vld [vmem:[#allocation14 + $0x5c8] sm:$0xff]  ;;  %v7963_v19 = vcombine.low %v4530_v3, %v4534_v4  ;;  %v7972_v22 = vcombine.high %v4538_v10, %v4542_v15 }
 0x70d   :  { %v7974_v25 = vcombine.high %v4539_v16, %v4543_v17  ;;  %v7971_v32 = vcombine.low %v4538_v10, %v4542_v15  ;;  %v7973_v33 = vcombine.low %v4539_v16, %v4543_v17  ;;  %v4579_v3 = vld [vmem:[#allocation14 + $0x708] sm:$0xff] }
 0x70e   :  { %5963 = vmatprep.mubr.bf16.mxu1 %v9648_v26  ;;  %6045 = vmatprep.mubr.bf16.mxu0 %v9648_v26  ;;  %v4583_v4 = vld [vmem:[#allocation14 + $0x728] sm:$0xff] }
 0x70f   :  { %5964 = vmatmul.mubr.bf16.vlgmr.msra.gmra.mrb[16].mxu1 %v9650_v28  ;;  %6046 = vmatmul.mubr.bf16.vlgmr.msra.gmra.mrb[28].mxu0 %v9650_v28  ;;  %v4587_v10 = vld [vmem:[#allocation14 + $0x748] sm:$0xff]  ;;  %v8013_v17 = vcombine.low %v4579_v3, %v4583_v4 }
 0x710   :  { %5973 = vmatpush1.bf16.msra.mxu1 %v7915_v57  ;;  %6055 = vmatpush1.bf16.msra.mxu0 %v7917_v58  ;;  %v4526_v57 = vld [vmem:[#allocation14 + $0x560] sm:$0xff]  ;;  %v4523_v58 = vld [vmem:[#allocation14 + $0x548] sm:$0xff] }
 0x711   :  { %6004 = vmatprep.mubr.bf16.mxu1 %v9654_v34  ;;  %6086 = vmatprep.mubr.bf16.mxu0 %v9654_v34  ;;  %v7956_v63 = vcombine.high %v4522_v56, %v4526_v57  ;;  %v7958_v0 = vcombine.high %v4523_v58, %v4527_v59  ;;  %v7955_v2 = vcombine.low %v4522_v56, %v4526_v57  ;;  %v4571_v56 = vld [vmem:[#allocation14 + $0x6c8] sm:$0xff] }
 0x712   :  { %5974 = vmatprep.subr.bf16.mxu1 %v7924_v30  ;;  %6056 = vmatprep.subr.bf16.mxu0 %v7926_v31  ;;  %v7957_v9 = vcombine.low %v4523_v58, %v4527_v59  ;;  %v4550_v30 = vld [vmem:[#allocation14 + $0x620] sm:$0xff]  ;;  %v4547_v31 = vld [vmem:[#allocation14 + $0x608] sm:$0xff]  ;;  %v7997_v59 = vcombine.low %v4563_v49, %v4567_v50 }
 0x713   :  { %v7979_v40 = vcombine.low %v4546_v29, %v4550_v30  ;;  %v7981_v41 = vcombine.low %v4547_v31, %v4551_v13  ;;  %v4575_v57 = vld [vmem:[#allocation14 + $0x6e8] sm:$0xff] }
 0x714   :  { %5975 = vmatpush1.bf16.msra.mxu1 %v7923_v24  ;;  %6057 = vmatpush1.bf16.msra.mxu0 %v7925_v35  ;;  %v7980_v24 = vcombine.high %v4546_v29, %v4550_v30  ;;  %v7982_v35 = vcombine.high %v4547_v31, %v4551_v13  ;;  %v8005_v6 = vcombine.low %v4571_v56, %v4575_v57  ;;  %v4591_v15 = vld [vmem:[#allocation14 + $0x768] sm:$0xff] }
 0x715   :  { %5976 = vmatprep.subr.bf16.mxu1 %v7932_v36  ;;  %6058 = vmatprep.subr.bf16.mxu0 %v7934_v37  ;;  %v4554_v36 = vld [vmem:[#allocation14 + $0x640] sm:$0xff]  ;;  %v4595_v29 = vld [vmem:[#allocation14 + $0x788] sm:$0xff]  ;;  %v8021_v13 = vcombine.low %v4587_v10, %v4591_v15 }
 0x716   :  { %v4558_v37 = vld [vmem:[#allocation14 + $0x660] sm:$0xff]  ;;  %v4599_v30 = vld [vmem:[#allocation14 + $0x7a8] sm:$0xff] }
 0x717   :  { %v7987_v52 = vcombine.low %v4554_v36, %v4558_v37 }
 0x718   :  { %5977 = vmatpush1.bf16.msra.mxu1 %v7931_v42  ;;  %6059 = vmatpush1.bf16.msra.mxu0 %v7933_v43  ;;  %v7988_v42 = vcombine.high %v4554_v36, %v4558_v37  ;;  %v7990_v43 = vcombine.high %v4555_v38, %v4559_v39  ;;  %v4606_v36 = vld [vmem:[#allocation14 + $0x7e0] sm:$0xff]  ;;  %v4603_v37 = vld [vmem:[#allocation14 + $0x7c8] sm:$0xff] }
 0x719   :  { %5978 = vmatprep.subr.bf16.mxu1 %v7940_v44  ;;  %6060 = vmatprep.subr.bf16.mxu0 %v7942_v46  ;;  %v4562_v44 = vld [vmem:[#allocation14 + $0x680] sm:$0xff]  ;;  %v4607_v38 = vld [vmem:[#allocation14 + $0x7e8] sm:$0xff] }
 0x71a   :  { %v4566_v46 = vld [vmem:[#allocation14 + $0x6a0] sm:$0xff] }
 0x71b   :  { %v7995_v58 = vcombine.low %v4562_v44, %v4566_v46 }
 0x71c   :  { %5979 = vmatpush1.bf16.msra.mxu1 %v7939_v54  ;;  %6061 = vmatpush1.bf16.msra.mxu0 %v7941_v45  ;;  %v7996_v54 = vcombine.high %v4562_v44, %v4566_v46  ;;  %v7998_v45 = vcombine.high %v4563_v49, %v4567_v50  ;;  %v4356_v44 = vld [vmem:[#allocation14 + $0x10] sm:$0xff]  ;;  %v4357_v46 = vld [vmem:[#allocation14 + $0x18] sm:$0xff] }
 0x71d   :  { %5980 = vmatprep.subr.bf16.mxu1 %v7948_v18  ;;  %6062 = vmatprep.subr.bf16.mxu0 %v7950_v55  ;;  %v4570_v18 = vld [vmem:[#allocation14 + $0x6c0] sm:$0xff]  ;;  %v4361_v49 = vld [vmem:[#allocation14 + $0x38] sm:$0xff] }
 0x71e   :  { %v4574_v55 = vld [vmem:[#allocation14 + $0x6e0] sm:$0xff] }
 0x71f   :  { %v8003_v5 = vcombine.low %v4570_v18, %v4574_v55 }
 0x720   :  { %5981 = vmatpush1.bf16.msra.mxu1 %v7947_v61  ;;  %6063 = vmatpush1.bf16.msra.mxu0 %v7949_v62  ;;  %v8004_v61 = vcombine.high %v4570_v18, %v4574_v55  ;;  %v8006_v62 = vcombine.high %v4571_v56, %v4575_v57  ;;  %v4364_v18 = vld [vmem:[#allocation14 + $0x50] sm:$0xff]  ;;  %v4369_v56 = vld [vmem:[#allocation14 + $0x78] sm:$0xff] }
 0x721   :  { %5982 = vmatprep.subr.bf16.mxu1 %v7956_v63  ;;  %6064 = vmatprep.subr.bf16.mxu0 %v7958_v0  ;;  %v4578_v63 = vld [vmem:[#allocation14 + $0x700] sm:$0xff]  ;;  %v4368_v55 = vld [vmem:[#allocation14 + $0x70] sm:$0xff] }
 0x722   :  { %v4582_v0 = vld [vmem:[#allocation14 + $0x720] sm:$0xff] }
 0x723   :  { %v8011_v16 = vcombine.low %v4578_v63, %v4582_v0 }
 0x724   :  { %5983 = vmatpush1.bf16.msra.mxu1 %v7955_v2  ;;  %6065 = vmatpush1.bf16.msra.mxu0 %v7957_v9  ;;  %v8012_v2 = vcombine.high %v4578_v63, %v4582_v0  ;;  %v8014_v9 = vcombine.high %v4579_v3, %v4583_v4  ;;  %v4372_v63 = vld [vmem:[#allocation14 + $0x90] sm:$0xff]  ;;  %v4373_v3 = vld [vmem:[#allocation14 + $0x98] sm:$0xff] }
 0x725   :  { %5984 = vmatprep.subr.bf16.mxu1 %v7964_v27  ;;  %6066 = vmatprep.subr.bf16.mxu0 %v7966_v7  ;;  %v4586_v27 = vld [vmem:[#allocation14 + $0x740] sm:$0xff]  ;;  %v4376_v0 = vld [vmem:[#allocation14 + $0xb0] sm:$0xff]  ;;  %v4377_v4 = vld [vmem:[#allocation14 + $0xb8] sm:$0xff] }
 0x726   :  { %v4590_v7 = vld [vmem:[#allocation14 + $0x760] sm:$0xff] }
 0x727   :  { %v8019_v31 = vcombine.low %v4586_v27, %v4590_v7 }
 0x728   :  { %5985 = vmatpush1.bf16.msra.mxu1 %v7963_v19  ;;  %6067 = vmatpush1.bf16.msra.mxu0 %v7965_v21  ;;  %v8020_v19 = vcombine.high %v4586_v27, %v4590_v7  ;;  %v8022_v21 = vcombine.high %v4587_v10, %v4591_v15  ;;  %v4380_v27 = vld [vmem:[#allocation14 + $0xd0] sm:$0xff]  ;;  %v4381_v10 = vld [vmem:[#allocation14 + $0xd8] sm:$0xff] }
 0x729   :  { %5986 = vmatprep.subr.bf16.mxu1 %v7972_v22  ;;  %6068 = vmatprep.subr.bf16.mxu0 %v7974_v25  ;;  %v4594_v22 = vld [vmem:[#allocation14 + $0x780] sm:$0xff]  ;;  %v4384_v7 = vld [vmem:[#allocation14 + $0xf0] sm:$0xff]  ;;  %v4385_v15 = vld [vmem:[#allocation14 + $0xf8] sm:$0xff] }
 0x72a   :  { %v4598_v25 = vld [vmem:[#allocation14 + $0x7a0] sm:$0xff] }
 0x72b   :  { %v8027_v39 = vcombine.low %v4594_v22, %v4598_v25 }
 0x72c   :  { %5987 = vmatpush1.bf16.msra.mxu1 %v7971_v32  ;;  %6069 = vmatpush1.bf16.msra.mxu0 %v7973_v33  ;;  %v3934_v32 = vrot.slane %v9638_v60, %v9575_v20  ;;  %v8028_v33 = vcombine.high %v4594_v22, %v4598_v25  ;;  %v4360_v60 = vld [vmem:[#allocation14 + $0x30] sm:$0xff] }
 0x72d   :  { %5988 = vmatprep.subr.bf16.mxu1 %v7980_v24  ;;  %6070 = vmatprep.subr.bf16.mxu0 %v7982_v35  ;;  %v8030_v24 = vcombine.high %v4595_v29, %v4599_v30  ;;  %v4602_v35 = vld [vmem:[#allocation14 + $0x7c0] sm:$0xff]  ;;  %v7791_v57 = vcombine.low %v4356_v44, %v4360_v60  ;;  %v4388_v22 = vld [vmem:[#allocation14 + $0x110] sm:$0xff] }
 0x72e   :  { %v8035_v50 = vcombine.low %v4602_v35, %v4606_v36  ;;  %v4392_v25 = vld [vmem:[#allocation14 + $0x130] sm:$0xff] }
 0x730   :  { %5989 = vmatpush1.bf16.msra.mxu1 %v7979_v40  ;;  %6071 = vmatpush1.bf16.msra.mxu0 %v7981_v41  ;;  %v8029_v40 = vcombine.low %v4595_v29, %v4599_v30  ;;  %v4339_v41 = vadd.f32 %v9646_v1, %v3934_v32  ;;  %v4365_v1 = vld [vmem:[#allocation14 + $0x58] sm:$0xff]  ;;  %v7815_v30 = vcombine.low %v4380_v27, %v4384_v7 }
 0x731   :  { %5990 = vmatprep.subr.bf16.mxu1 %v7988_v42  ;;  %6072 = vmatprep.subr.bf16.mxu0 %v7990_v43  ;;  %v8036_v42 = vcombine.high %v4602_v35, %v4606_v36  ;;  %v8038_v43 = vcombine.high %v4603_v37, %v4607_v38  ;;  %v4393_v29 = vld [vmem:[#allocation14 + $0x138] sm:$0xff] }
 0x732   :  { %v4397_v35 = vld [vmem:[#allocation14 + $0x158] sm:$0xff] }
 0x733   :  { %v4401_v36 = vld [vmem:[#allocation14 + $0x178] sm:$0xff] }
 0x734   :  { %5991 = vmatpush1.bf16.msra.mxu1 %v7987_v52  ;;  %6073 = vmatpush1.bf16.msra.mxu0 %v7989_v53  ;;  %v8037_v52 = vcombine.low %v4603_v37, %v4607_v38  ;;  %v4347_v53 = vmax.f32 %v4339_v41, 0.0  ;;  %v7823_v37 = vcombine.low %v4388_v22, %v4392_v25  ;;  %v4404_v41 = vld [vmem:[#allocation14 + $0x190] sm:$0xff] }
 0x735   :  { %5992 = vmatprep.subr.bf16.mxu1 %v7996_v54  ;;  %6074 = vmatprep.subr.bf16.mxu0 %v7998_v45  ;;  %v7792_v54 = vcombine.high %v4356_v44, %v4360_v60  ;;  %v7794_v45 = vcombine.high %v4357_v46, %v4361_v49  ;;  %v4409_v44 = vld [vmem:[#allocation14 + $0x1b8] sm:$0xff] }
 0x738   :  { %5993 = vmatpush1.bf16.msra.mxu1 %v7995_v58  ;;  %6075 = vmatpush1.bf16.msra.mxu0 %v7997_v59  ;;  %v9663_v58 = vpack.c.bf16 %v4347_v53, %v4347_v53  ;;  %v7793_v59 = vcombine.low %v4357_v46, %v4361_v49  ;;  %v7833_v46 = vcombine.low %v4397_v35, %v4401_v36  ;;  %v4416_v53 = vld [vmem:[#allocation14 + $0x1f0] sm:$0xff] }
 0x739   :  { %5994 = vmatprep.subr.bf16.mxu1 %v8004_v61  ;;  %6076 = vmatprep.subr.bf16.mxu0 %v8006_v62  ;;  %v7800_v61 = vcombine.high %v4364_v18, %v4368_v55  ;;  %v7802_v62 = vcombine.high %v4365_v1, %v4369_v56 }
 0x73c   :  { %5995 = vmatpush1.bf16.msra.mxu1 %v8003_v5  ;;  %6077 = vmatpush1.bf16.msra.mxu0 %v8005_v6  ;;  %v7799_v5 = vcombine.low %v4364_v18, %v4368_v55  ;;  %v7801_v6 = vcombine.low %v4365_v1, %v4369_v56 }
 0x73d   :  { %5996 = vmatprep.subr.bf16.mxu1 %v8012_v2  ;;  %6078 = vmatprep.subr.bf16.mxu0 %v8014_v9  ;;  %v7808_v2 = vcombine.high %v4372_v63, %v4376_v0  ;;  %v7810_v9 = vcombine.high %v4373_v3, %v4377_v4 }
 0x740   :  { %5997 = vmatpush1.bf16.msra.mxu1 %v8011_v16  ;;  %6079 = vmatpush1.bf16.msra.mxu0 %v8013_v17  ;;  %v7807_v16 = vcombine.low %v4372_v63, %v4376_v0  ;;  %v7809_v17 = vcombine.low %v4373_v3, %v4377_v4 }
 0x741   :  { %5998 = vmatprep.subr.bf16.mxu1 %v8020_v19  ;;  %6080 = vmatprep.subr.bf16.mxu0 %v8022_v21  ;;  %v7816_v19 = vcombine.high %v4380_v27, %v4384_v7  ;;  %v7818_v21 = vcombine.high %v4381_v10, %v4385_v15 }
 0x744   :  { %5999 = vmatpush1.bf16.msra.mxu1 %v8019_v31  ;;  %6081 = vmatpush1.bf16.msra.mxu0 %v8021_v13  ;;  %v7817_v31 = vcombine.low %v4381_v10, %v4385_v15  ;;  %v7824_v13 = vcombine.high %v4388_v22, %v4392_v25 }
 0x745   :  { %6000 = vmatprep.subr.bf16.mxu1 %v8028_v33  ;;  %6082 = vmatprep.subr.bf16.mxu0 %v8030_v24  ;;  %v4396_v33 = vld [vmem:[#allocation14 + $0x150] sm:$0xff] }
 0x746   :  { %v4400_v24 = vld [vmem:[#allocation14 + $0x170] sm:$0xff] }
 0x747   :  { %v7831_v60 = vcombine.low %v4396_v33, %v4400_v24 }
 0x748   :  { %6001 = vmatpush1.bf16.msra.mxu1 %v8027_v39  ;;  %6083 = vmatpush1.bf16.msra.mxu0 %v8029_v40  ;;  %v7832_v39 = vcombine.high %v4396_v33, %v4400_v24  ;;  %v7834_v40 = vcombine.high %v4397_v35, %v4401_v36 }
 0x749   :  { %6002 = vmatprep.subr.bf16.mxu1 %v8036_v42  ;;  %6084 = vmatprep.subr.bf16.mxu0 %v8038_v43  ;;  %v4408_v42 = vld [vmem:[#allocation14 + $0x1b0] sm:$0xff]  ;;  %v4405_v43 = vld [vmem:[#allocation14 + $0x198] sm:$0xff] }
 0x74a   :  { %v7840_v49 = vcombine.high %v4404_v41, %v4408_v42  ;;  %v7839_v18 = vcombine.low %v4404_v41, %v4408_v42  ;;  %v7841_v55 = vcombine.low %v4405_v43, %v4409_v44 }
 0x74c   :  { %6003 = vmatpush1.bf16.msra.mxu1 %v8035_v50  ;;  %6085 = vmatpush1.bf16.msra.mxu0 %v8037_v52  ;;  %v7842_v50 = vcombine.high %v4405_v43, %v4409_v44  ;;  %v4412_v52 = vld [vmem:[#allocation14 + $0x1d0] sm:$0xff] }
 0x74d   :  { %6095 = vmatprep.subr.bf16.mxu1 %v7792_v54  ;;  %6177 = vmatprep.subr.bf16.mxu0 %v7794_v45  ;;  %v4413_v54 = vld [vmem:[#allocation14 + $0x1d8] sm:$0xff]  ;;  %v7848_v1 = vcombine.high %v4412_v52, %v4416_v53  ;;  %v7847_v63 = vcombine.low %v4412_v52, %v4416_v53 }
 0x74e   :  { %v4417_v45 = vld [vmem:[#allocation14 + $0x1f8] sm:$0xff] }
 0x74f   :  { %6005 = vmatmul.mubr.bf16.vlgmr.msra.gmra.mrb[16].mxu1 %v9663_v58  ;;  %6087 = vmatmul.mubr.bf16.vlgmr.msra.gmra.mrb[28].mxu0 %v9663_v58  ;;  %v7850_v56 = vcombine.high %v4413_v54, %v4417_v45  ;;  %v7849_v0 = vcombine.low %v4413_v54, %v4417_v45 }
 0x750   :  { %6096 = vmatpush1.bf16.msra.mxu1 %v7791_v57  ;;  %6127 = vmatprep.mubr.bf16.mxu1 %v9648_v26  ;;  %v4420_v57 = vld [vmem:[#allocation14 + $0x210] sm:$0xff] }
 0x751   :  { %6178 = vmatpush1.bf16.msra.mxu0 %v7793_v59  ;;  %6209 = vmatprep.mubr.bf16.mxu0 %v9648_v26  ;;  %v4389_v26 = vld [vmem:[#allocation14 + $0x118] sm:$0xff]  ;;  %v4424_v59 = vld [vmem:[#allocation14 + $0x230] sm:$0xff] }
 0x752   :  { %6097 = vmatprep.subr.bf16.mxu1 %v7800_v61  ;;  %6179 = vmatprep.subr.bf16.mxu0 %v7802_v62  ;;  %v7826_v32 = vcombine.high %v4389_v26, %v4393_v29  ;;  %v7825_v38 = vcombine.low %v4389_v26, %v4393_v29  ;;  %v4421_v61 = vld [vmem:[#allocation14 + $0x218] sm:$0xff]  ;;  %v7856_v3 = vcombine.high %v4420_v57, %v4424_v59 }
 0x753   :  { %v4425_v62 = vld [vmem:[#allocation14 + $0x238] sm:$0xff]  ;;  %v7855_v27 = vcombine.low %v4420_v57, %v4424_v59 }
 0x754   :  { %6098 = vmatpush1.bf16.msra.mxu1 %v7799_v5  ;;  %v7858_v4 = vcombine.high %v4421_v61, %v4425_v62  ;;  %v4428_v5 = vld [vmem:[#allocation14 + $0x250] sm:$0xff]  ;;  %v7857_v7 = vcombine.low %v4421_v61, %v4425_v62 }
 0x755   :  { %6180 = vmatpush1.bf16.msra.mxu0 %v7801_v6  ;;  %6099 = vmatprep.subr.bf16.mxu1 %v7808_v2  ;;  %v4432_v6 = vld [vmem:[#allocation14 + $0x270] sm:$0xff]  ;;  %v4429_v2 = vld [vmem:[#allocation14 + $0x258] sm:$0xff] }
 0x756   :  { %6181 = vmatprep.subr.bf16.mxu0 %v7810_v9  ;;  %v4433_v9 = vld [vmem:[#allocation14 + $0x278] sm:$0xff]  ;;  %v7864_v10 = vcombine.high %v4428_v5, %v4432_v6  ;;  %v7863_v22 = vcombine.low %v4428_v5, %v4432_v6 }
 0x757   :  { %v7866_v15 = vcombine.high %v4429_v2, %v4433_v9  ;;  %v7865_v25 = vcombine.low %v4429_v2, %v4433_v9 }
 0x758   :  { %6100 = vmatpush1.bf16.msra.mxu1 %v7807_v16  ;;  %v4436_v16 = vld [vmem:[#allocation14 + $0x290] sm:$0xff] }
 0x759   :  { %6182 = vmatpush1.bf16.msra.mxu0 %v7809_v17  ;;  %6101 = vmatprep.subr.bf16.mxu1 %v7816_v19  ;;  %v4440_v17 = vld [vmem:[#allocation14 + $0x2b0] sm:$0xff]  ;;  %v4437_v19 = vld [vmem:[#allocation14 + $0x298] sm:$0xff] }
 0x75a   :  { %6183 = vmatprep.subr.bf16.mxu0 %v7818_v21  ;;  %v4441_v21 = vld [vmem:[#allocation14 + $0x2b8] sm:$0xff]  ;;  %v7872_v26 = vcombine.high %v4436_v16, %v4440_v17  ;;  %v7871_v33 = vcombine.low %v4436_v16, %v4440_v17 }
 0x75b   :  { %v7874_v29 = vcombine.high %v4437_v19, %v4441_v21  ;;  %v7873_v24 = vcombine.low %v4437_v19, %v4441_v21 }
 0x75c   :  { %6102 = vmatpush1.bf16.msra.mxu1 %v7815_v30  ;;  %v4444_v30 = vld [vmem:[#allocation14 + $0x2d0] sm:$0xff] }
 0x75d   :  { %6184 = vmatpush1.bf16.msra.mxu0 %v7817_v31  ;;  %6103 = vmatprep.subr.bf16.mxu1 %v7824_v13  ;;  %v4448_v31 = vld [vmem:[#allocation14 + $0x2f0] sm:$0xff]  ;;  %v4445_v13 = vld [vmem:[#allocation14 + $0x2d8] sm:$0xff] }
 0x75e   :  { %6185 = vmatprep.subr.bf16.mxu0 %v7826_v32  ;;  %v4449_v32 = vld [vmem:[#allocation14 + $0x2f8] sm:$0xff]  ;;  %v7880_v35 = vcombine.high %v4444_v30, %v4448_v31  ;;  %v7879_v41 = vcombine.low %v4444_v30, %v4448_v31 }
 0x75f   :  { %v7882_v36 = vcombine.high %v4445_v13, %v4449_v32  ;;  %v7881_v42 = vcombine.low %v4445_v13, %v4449_v32  ;;  %v4497_v30 = vld [vmem:[#allocation14 + $0x478] sm:$0xff]  ;;  %v4500_v32 = vld [vmem:[#allocation14 + $0x490] sm:$0xff] }
 0x760   :  { %6104 = vmatpush1.bf16.msra.mxu1 %v7823_v37  ;;  %v4452_v37 = vld [vmem:[#allocation14 + $0x310] sm:$0xff] }
 0x761   :  { %6186 = vmatpush1.bf16.msra.mxu0 %v7825_v38  ;;  %6105 = vmatprep.subr.bf16.mxu1 %v7832_v39  ;;  %v4456_v38 = vld [vmem:[#allocation14 + $0x330] sm:$0xff]  ;;  %v4453_v39 = vld [vmem:[#allocation14 + $0x318] sm:$0xff] }
 0x762   :  { %6187 = vmatprep.subr.bf16.mxu0 %v7834_v40  ;;  %v4457_v40 = vld [vmem:[#allocation14 + $0x338] sm:$0xff]  ;;  %v7888_v43 = vcombine.high %v4452_v37, %v4456_v38  ;;  %v7887_v52 = vcombine.low %v4452_v37, %v4456_v38 }
 0x763   :  { %v7890_v44 = vcombine.high %v4453_v39, %v4457_v40  ;;  %v7889_v53 = vcombine.low %v4453_v39, %v4457_v40 }
 0x764   :  { %6106 = vmatpush1.bf16.msra.mxu1 %v7831_v60  ;;  %v4460_v60 = vld [vmem:[#allocation14 + $0x350] sm:$0xff] }
 0x765   :  { %6188 = vmatpush1.bf16.msra.mxu0 %v7833_v46  ;;  %6107 = vmatprep.subr.bf16.mxu1 %v7840_v49  ;;  %v4464_v46 = vld [vmem:[#allocation14 + $0x370] sm:$0xff]  ;;  %v4461_v49 = vld [vmem:[#allocation14 + $0x358] sm:$0xff] }
 0x766   :  { %6189 = vmatprep.subr.bf16.mxu0 %v7842_v50  ;;  %v4465_v50 = vld [vmem:[#allocation14 + $0x378] sm:$0xff]  ;;  %v7896_v54 = vcombine.high %v4460_v60, %v4464_v46  ;;  %v7895_v57 = vcombine.low %v4460_v60, %v4464_v46 }
 0x767   :  { %v7898_v45 = vcombine.high %v4461_v49, %v4465_v50  ;;  %v7897_v59 = vcombine.low %v4461_v49, %v4465_v50  ;;  %v4516_v50 = vld [vmem:[#allocation14 + $0x510] sm:$0xff] }
 0x768   :  { %6108 = vmatpush1.bf16.msra.mxu1 %v7839_v18  ;;  %v4468_v18 = vld [vmem:[#allocation14 + $0x390] sm:$0xff] }
 0x769   :  { %6190 = vmatpush1.bf16.msra.mxu0 %v7841_v55  ;;  %6109 = vmatprep.subr.bf16.mxu1 %v7848_v1  ;;  %v4472_v55 = vld [vmem:[#allocation14 + $0x3b0] sm:$0xff]  ;;  %v4469_v1 = vld [vmem:[#allocation14 + $0x398] sm:$0xff] }
 0x76a   :  { %6191 = vmatprep.subr.bf16.mxu0 %v7850_v56  ;;  %v4473_v56 = vld [vmem:[#allocation14 + $0x3b8] sm:$0xff]  ;;  %v7904_v61 = vcombine.high %v4468_v18, %v4472_v55  ;;  %v7903_v5 = vcombine.low %v4468_v18, %v4472_v55 }
 0x76b   :  { %v7906_v62 = vcombine.high %v4469_v1, %v4473_v56  ;;  %v7905_v6 = vcombine.low %v4469_v1, %v4473_v56  ;;  %v4524_v1 = vld [vmem:[#allocation14 + $0x550] sm:$0xff] }
 0x76c   :  { %6110 = vmatpush1.bf16.msra.mxu1 %v7847_v63  ;;  %v4476_v63 = vld [vmem:[#allocation14 + $0x3d0] sm:$0xff] }
 0x76d   :  { %6192 = vmatpush1.bf16.msra.mxu0 %v7849_v0  ;;  %6111 = vmatprep.subr.bf16.mxu1 %v7856_v3  ;;  %v4480_v0 = vld [vmem:[#allocation14 + $0x3f0] sm:$0xff]  ;;  %v4477_v3 = vld [vmem:[#allocation14 + $0x3d8] sm:$0xff] }
 0x76e   :  { %6193 = vmatprep.subr.bf16.mxu0 %v7858_v4  ;;  %v4481_v4 = vld [vmem:[#allocation14 + $0x3f8] sm:$0xff]  ;;  %v7912_v2 = vcombine.high %v4476_v63, %v4480_v0  ;;  %v7911_v16 = vcombine.low %v4476_v63, %v4480_v0  ;;  %v4528_v56 = vld [vmem:[#allocation14 + $0x570] sm:$0xff] }
 0x76f   :  { %v7914_v9 = vcombine.high %v4477_v3, %v4481_v4  ;;  %v7913_v17 = vcombine.low %v4477_v3, %v4481_v4  ;;  %v7960_v63 = vcombine.high %v4524_v1, %v4528_v56  ;;  %v4532_v3 = vld [vmem:[#allocation14 + $0x590] sm:$0xff] }
 0x770   :  { %6112 = vmatpush1.bf16.msra.mxu1 %v7855_v27  ;;  %v4484_v27 = vld [vmem:[#allocation14 + $0x410] sm:$0xff] }
 0x771   :  { %6194 = vmatpush1.bf16.msra.mxu0 %v7857_v7  ;;  %6113 = vmatprep.subr.bf16.mxu1 %v7864_v10  ;;  %v4488_v7 = vld [vmem:[#allocation14 + $0x430] sm:$0xff]  ;;  %v4485_v10 = vld [vmem:[#allocation14 + $0x418] sm:$0xff] }
 0x772   :  { %6195 = vmatprep.subr.bf16.mxu0 %v7866_v15  ;;  %v4489_v15 = vld [vmem:[#allocation14 + $0x438] sm:$0xff]  ;;  %v7920_v19 = vcombine.high %v4484_v27, %v4488_v7  ;;  %v4536_v4 = vld [vmem:[#allocation14 + $0x5b0] sm:$0xff] }
 0x773   :  { %v7922_v21 = vcombine.high %v4485_v10, %v4489_v15  ;;  %v7921_v31 = vcombine.low %v4485_v10, %v4489_v15  ;;  %v4540_v10 = vld [vmem:[#allocation14 + $0x5d0] sm:$0xff] }
 0x774   :  { %6114 = vmatpush1.bf16.msra.mxu1 %v7863_v22  ;;  %v4492_v22 = vld [vmem:[#allocation14 + $0x450] sm:$0xff] }
 0x775   :  { %6196 = vmatpush1.bf16.msra.mxu0 %v7865_v25  ;;  %6115 = vmatprep.subr.bf16.mxu1 %v7872_v26  ;;  %v4496_v25 = vld [vmem:[#allocation14 + $0x470] sm:$0xff]  ;;  %v7919_v26 = vcombine.low %v4484_v27, %v4488_v7  ;;  %v7968_v27 = vcombine.high %v4532_v3, %v4536_v4 }
 0x776   :  { %6197 = vmatprep.subr.bf16.mxu0 %v7874_v29  ;;  %v4493_v29 = vld [vmem:[#allocation14 + $0x458] sm:$0xff]  ;;  %v7928_v13 = vcombine.high %v4492_v22, %v4496_v25  ;;  %v7927_v37 = vcombine.low %v4492_v22, %v4496_v25  ;;  %v4544_v15 = vld [vmem:[#allocation14 + $0x5f0] sm:$0xff] }
 0x777   :  { %v7929_v38 = vcombine.low %v4493_v29, %v4497_v30  ;;  %v7976_v22 = vcombine.high %v4540_v10, %v4544_v15 }
 0x778   :  { %6116 = vmatpush1.bf16.msra.mxu1 %v7871_v33  ;;  %v4504_v33 = vld [vmem:[#allocation14 + $0x4b0] sm:$0xff] }
 0x779   :  { %6198 = vmatpush1.bf16.msra.mxu0 %v7873_v24  ;;  %6117 = vmatprep.subr.bf16.mxu1 %v7880_v35  ;;  %v7930_v24 = vcombine.high %v4493_v29, %v4497_v30  ;;  %v4501_v35 = vld [vmem:[#allocation14 + $0x498] sm:$0xff]  ;;  %v7936_v39 = vcombine.high %v4500_v32, %v4504_v33  ;;  %v7935_v60 = vcombine.low %v4500_v32, %v4504_v33  ;;  %v4552_v29 = vld [vmem:[#allocation14 + $0x630] sm:$0xff] }
 0x77a   :  { %6199 = vmatprep.subr.bf16.mxu0 %v7882_v36  ;;  %v4505_v36 = vld [vmem:[#allocation14 + $0x4b8] sm:$0xff] }
 0x77b   :  { %v7938_v40 = vcombine.high %v4501_v35, %v4505_v36  ;;  %v4549_v30 = vld [vmem:[#allocation14 + $0x618] sm:$0xff] }
 0x77c   :  { %6118 = vmatpush1.bf16.msra.mxu1 %v7879_v41  ;;  %v4508_v41 = vld [vmem:[#allocation14 + $0x4d0] sm:$0xff] }
 0x77d   :  { %6200 = vmatpush1.bf16.msra.mxu0 %v7881_v42  ;;  %6119 = vmatprep.subr.bf16.mxu1 %v7888_v43  ;;  %v4512_v42 = vld [vmem:[#allocation14 + $0x4f0] sm:$0xff]  ;;  %v4509_v43 = vld [vmem:[#allocation14 + $0x4d8] sm:$0xff] }
 0x77e   :  { %6201 = vmatprep.subr.bf16.mxu0 %v7890_v44  ;;  %v4513_v44 = vld [vmem:[#allocation14 + $0x4f8] sm:$0xff]  ;;  %v7944_v46 = vcombine.high %v4508_v41, %v4512_v42 }
 0x77f   :  { %v7946_v49 = vcombine.high %v4509_v43, %v4513_v44 }
 0x780   :  { %6120 = vmatpush1.bf16.msra.mxu1 %v7887_v52  ;;  %v4520_v52 = vld [vmem:[#allocation14 + $0x530] sm:$0xff] }
 0x781   :  { %6202 = vmatpush1.bf16.msra.mxu0 %v7889_v53  ;;  %6121 = vmatprep.subr.bf16.mxu1 %v7896_v54  ;;  %v4517_v53 = vld [vmem:[#allocation14 + $0x518] sm:$0xff]  ;;  %v7952_v18 = vcombine.high %v4516_v50, %v4520_v52 }
 0x782   :  { %6203 = vmatprep.subr.bf16.mxu0 %v7898_v45  ;;  %v4521_v54 = vld [vmem:[#allocation14 + $0x538] sm:$0xff]  ;;  %v7945_v45 = vcombine.low %v4509_v43, %v4513_v44  ;;  %v4564_v43 = vld [vmem:[#allocation14 + $0x690] sm:$0xff] }
 0x783   :  { %v7954_v55 = vcombine.high %v4517_v53, %v4521_v54  ;;  %v4568_v44 = vld [vmem:[#allocation14 + $0x6b0] sm:$0xff] }
 0x784   :  { %6122 = vmatpush1.bf16.msra.mxu1 %v7895_v57  ;;  %v4525_v57 = vld [vmem:[#allocation14 + $0x558] sm:$0xff] }
 0x785   :  { %6204 = vmatpush1.bf16.msra.mxu0 %v7897_v59  ;;  %6123 = vmatprep.subr.bf16.mxu1 %v7904_v61  ;;  %v4529_v59 = vld [vmem:[#allocation14 + $0x578] sm:$0xff]  ;;  %v7951_v61 = vcombine.low %v4516_v50, %v4520_v52  ;;  %v8000_v50 = vcombine.high %v4564_v43, %v4568_v44 }
 0x786   :  { %6205 = vmatprep.subr.bf16.mxu0 %v7906_v62  ;;  %v7953_v62 = vcombine.low %v4517_v53, %v4521_v54  ;;  %v7962_v0 = vcombine.high %v4525_v57, %v4529_v59  ;;  %v4572_v53 = vld [vmem:[#allocation14 + $0x6d0] sm:$0xff] }
 0x787   :  { %v4576_v54 = vld [vmem:[#allocation14 + $0x6f0] sm:$0xff] }
 0x788   :  { %6124 = vmatpush1.bf16.msra.mxu1 %v7903_v5  ;;  %v4533_v5 = vld [vmem:[#allocation14 + $0x598] sm:$0xff] }
 0x789   :  { %6206 = vmatpush1.bf16.msra.mxu0 %v7905_v6  ;;  %6125 = vmatprep.subr.bf16.mxu1 %v7912_v2  ;;  %v4537_v6 = vld [vmem:[#allocation14 + $0x5b8] sm:$0xff]  ;;  %v7959_v2 = vcombine.low %v4524_v1, %v4528_v56  ;;  %v8008_v1 = vcombine.high %v4572_v53, %v4576_v54 }
 0x78a   :  { %6207 = vmatprep.subr.bf16.mxu0 %v7914_v9  ;;  %v7961_v9 = vcombine.low %v4525_v57, %v4529_v59  ;;  %v7970_v7 = vcombine.high %v4533_v5, %v4537_v6  ;;  %v4580_v57 = vld [vmem:[#allocation14 + $0x710] sm:$0xff] }
 0x78b   :  { %v4584_v59 = vld [vmem:[#allocation14 + $0x730] sm:$0xff] }
 0x78c   :  { %6126 = vmatpush1.bf16.msra.mxu1 %v7911_v16  ;;  %v4541_v16 = vld [vmem:[#allocation14 + $0x5d8] sm:$0xff] }
 0x78d   :  { %6208 = vmatpush1.bf16.msra.mxu0 %v7913_v17  ;;  %6136 = vmatprep.subr.bf16.mxu1 %v7920_v19  ;;  %v4545_v17 = vld [vmem:[#allocation14 + $0x5f8] sm:$0xff]  ;;  %v7967_v19 = vcombine.low %v4532_v3, %v4536_v4  ;;  %v8016_v3 = vcombine.high %v4580_v57, %v4584_v59 }
 0x78e   :  { %6218 = vmatprep.subr.bf16.mxu0 %v7922_v21  ;;  %v7969_v21 = vcombine.low %v4533_v5, %v4537_v6  ;;  %v7978_v25 = vcombine.high %v4541_v16, %v4545_v17  ;;  %v7977_v32 = vcombine.low %v4541_v16, %v4545_v17  ;;  %v4588_v5 = vld [vmem:[#allocation14 + $0x750] sm:$0xff] }
 0x78f   :  { %6128 = vmatmul.mubr.bf16.vlgmr.msra.gmra.mrb[20].mxu1 %v9650_v28  ;;  %v4592_v6 = vld [vmem:[#allocation14 + $0x770] sm:$0xff] }
 0x790   :  { %6210 = vmatmul.mubr.bf16.vlgmr.msra.gmra.mrb[32].mxu0 %v9650_v28  ;;  %6137 = vmatpush1.bf16.msra.mxu1 %v7919_v26  ;;  %v7937_v28 = vcombine.low %v4501_v35, %v4505_v36  ;;  %v4548_v26 = vld [vmem:[#allocation14 + $0x610] sm:$0xff] }
 0x791   :  { %6168 = vmatprep.mubr.bf16.mxu1 %v9654_v34  ;;  %6219 = vmatpush1.bf16.msra.mxu0 %v7921_v31  ;;  %v4553_v31 = vld [vmem:[#allocation14 + $0x638] sm:$0xff]  ;;  %v7984_v33 = vcombine.high %v4548_v26, %v4552_v29  ;;  %v4556_v35 = vld [vmem:[#allocation14 + $0x650] sm:$0xff] }
 0x792   :  { %6250 = vmatprep.mubr.bf16.mxu0 %v9654_v34  ;;  %6138 = vmatprep.subr.bf16.mxu1 %v7928_v13  ;;  %v7943_v34 = vcombine.low %v4508_v41, %v4512_v42  ;;  %v7975_v13 = vcombine.low %v4540_v10, %v4544_v15  ;;  %v4560_v36 = vld [vmem:[#allocation14 + $0x670] sm:$0xff]  ;;  %v8024_v10 = vcombine.high %v4588_v5, %v4592_v6 }
 0x793   :  { %6220 = vmatprep.subr.bf16.mxu0 %v7930_v24  ;;  %v7986_v24 = vcombine.high %v4549_v30, %v4553_v31  ;;  %v7992_v41 = vcombine.high %v4556_v35, %v4560_v36  ;;  %v4596_v16 = vld [vmem:[#allocation14 + $0x790] sm:$0xff] }
 0x794   :  { %6139 = vmatpush1.bf16.msra.mxu1 %v7927_v37  ;;  %v4557_v37 = vld [vmem:[#allocation14 + $0x658] sm:$0xff]  ;;  %v4600_v17 = vld [vmem:[#allocation14 + $0x7b0] sm:$0xff] }
 0x795   :  { %6221 = vmatpush1.bf16.msra.mxu0 %v7929_v38  ;;  %6140 = vmatprep.subr.bf16.mxu1 %v7936_v39  ;;  %v4561_v38 = vld [vmem:[#allocation14 + $0x678] sm:$0xff]  ;;  %v7983_v39 = vcombine.low %v4548_v26, %v4552_v29  ;;  %v8032_v26 = vcombine.high %v4596_v16, %v4600_v17 }
 0x796   :  { %6222 = vmatprep.subr.bf16.mxu0 %v7938_v40  ;;  %v7985_v40 = vcombine.low %v4549_v30, %v4553_v31  ;;  %v7994_v42 = vcombine.high %v4557_v37, %v4561_v38  ;;  %v4604_v30 = vld [vmem:[#allocation14 + $0x7d0] sm:$0xff] }
 0x797   :  { %v4608_v31 = vld [vmem:[#allocation14 + $0x7f0] sm:$0xff] }
 0x798   :  { %6141 = vmatpush1.bf16.msra.mxu1 %v7935_v60  ;;  %v4565_v60 = vld [vmem:[#allocation14 + $0x698] sm:$0xff] }
 0x799   :  { %6223 = vmatpush1.bf16.msra.mxu0 %v7937_v28  ;;  %6142 = vmatprep.subr.bf16.mxu1 %v7944_v46  ;;  %v4569_v28 = vld [vmem:[#allocation14 + $0x6b8] sm:$0xff]  ;;  %v7991_v46 = vcombine.low %v4556_v35, %v4560_v36  ;;  %v8040_v35 = vcombine.high %v4604_v30, %v4608_v31 }
 0x79a   :  { %6224 = vmatprep.subr.bf16.mxu0 %v7946_v49  ;;  %v7993_v49 = vcombine.low %v4557_v37, %v4561_v38  ;;  %v8002_v52 = vcombine.high %v4565_v60, %v4569_v28  ;;  %v8039_v37 = vcombine.low %v4604_v30, %v4608_v31 }
 0x79c   :  { %6143 = vmatpush1.bf16.msra.mxu1 %v7943_v34  ;;  %v4573_v34 = vld [vmem:[#allocation14 + $0x6d8] sm:$0xff] }
 0x79d   :  { %6225 = vmatpush1.bf16.msra.mxu0 %v7945_v45  ;;  %6144 = vmatprep.subr.bf16.mxu1 %v7952_v18  ;;  %v4577_v45 = vld [vmem:[#allocation14 + $0x6f8] sm:$0xff]  ;;  %v7999_v18 = vcombine.low %v4564_v43, %v4568_v44  ;;  %v8908_v43 = vld [vmem:[#allocation16 + $0x24] ss:$8 sps:$4 sm:$0xff]   ;;  %v8906_v44 = vld [vmem:[#allocation16 + $0x20] ss:$8 sps:$4 sm:$0xff]  }
 0x79e   :  { %6226 = vmatprep.subr.bf16.mxu0 %v7954_v55  ;;  %v8001_v55 = vcombine.low %v4565_v60, %v4569_v28  ;;  %v8010_v56 = vcombine.high %v4573_v34, %v4577_v45  ;;  %v8911_v60 = vld [vmem:[#allocation16 + $0x34] ss:$8 sps:$4 sm:$0xff]   ;;  %v8909_v28 = vld [vmem:[#allocation16 + $0x30] ss:$8 sps:$4 sm:$0xff]  }
 0x7a0   :  { %6145 = vmatpush1.bf16.msra.mxu1 %v7951_v61  ;;  %v4581_v61 = vld [vmem:[#allocation14 + $0x718] sm:$0xff] }
 0x7a1   :  { %6227 = vmatpush1.bf16.msra.mxu0 %v7953_v62  ;;  %6146 = vmatprep.subr.bf16.mxu1 %v7960_v63  ;;  %v4585_v62 = vld [vmem:[#allocation14 + $0x738] sm:$0xff]  ;;  %v8007_v63 = vcombine.low %v4572_v53, %v4576_v54  ;;  %v8918_v53 = vld [vmem:[#allocation16 + $0x60] ss:$8 sps:$4 sm:$0xff]  }
 0x7a2   :  { %6228 = vmatprep.subr.bf16.mxu0 %v7962_v0  ;;  %v8009_v0 = vcombine.low %v4573_v34, %v4577_v45  ;;  %v8018_v4 = vcombine.high %v4581_v61, %v4585_v62  ;;  %v8923_v54 = vld [vmem:[#allocation16 + $0x74] ss:$8 sps:$4 sm:$0xff]   ;;  %v8921_v34 = vld [vmem:[#allocation16 + $0x70] ss:$8 sps:$4 sm:$0xff]   ;;  %v8926_v45 = vld [vmem:[#allocation16 + $0x84] ss:$8 sps:$4 sm:$0xff]  }
 0x7a4   :  { %6147 = vmatpush1.bf16.msra.mxu1 %v7959_v2  ;;  %v4589_v2 = vld [vmem:[#allocation14 + $0x758] sm:$0xff] }
 0x7a5   :  { %6229 = vmatpush1.bf16.msra.mxu0 %v7961_v9  ;;  %6148 = vmatprep.subr.bf16.mxu1 %v7968_v27  ;;  %v4593_v9 = vld [vmem:[#allocation14 + $0x778] sm:$0xff]  ;;  %v8015_v27 = vcombine.low %v4580_v57, %v4584_v59  ;;  %v8930_v57 = vld [vmem:[#allocation16 + $0xa0] ss:$8 sps:$4 sm:$0xff]  }
 0x7a6   :  { %6230 = vmatprep.subr.bf16.mxu0 %v7970_v7  ;;  %v8017_v7 = vcombine.low %v4581_v61, %v4585_v62  ;;  %v8026_v15 = vcombine.high %v4589_v2, %v4593_v9  ;;  %v8935_v59 = vld [vmem:[#allocation16 + $0xb4] ss:$8 sps:$4 sm:$0xff]   ;;  %v8933_v61 = vld [vmem:[#allocation16 + $0xb0] ss:$8 sps:$4 sm:$0xff]   ;;  %v8938_v62 = vld [vmem:[#allocation16 + $0xc4] ss:$8 sps:$4 sm:$0xff]  }
 0x7a8   :  { %6149 = vmatpush1.bf16.msra.mxu1 %v7967_v19  ;;  %v4597_v19 = vld [vmem:[#allocation14 + $0x798] sm:$0xff] }
 0x7a9   :  { %6231 = vmatpush1.bf16.msra.mxu0 %v7969_v21  ;;  %6150 = vmatprep.subr.bf16.mxu1 %v7976_v22  ;;  %v4601_v21 = vld [vmem:[#allocation14 + $0x7b8] sm:$0xff]  ;;  %v8023_v22 = vcombine.low %v4588_v5, %v4592_v6  ;;  %v8942_v5 = vld [vmem:[#allocation16 + $0xe0] ss:$8 sps:$4 sm:$0xff]  }
 0x7aa   :  { %6232 = vmatprep.subr.bf16.mxu0 %v7978_v25  ;;  %v8025_v25 = vcombine.low %v4589_v2, %v4593_v9  ;;  %v8034_v29 = vcombine.high %v4597_v19, %v4601_v21  ;;  %v8947_v6 = vld [vmem:[#allocation16 + $0xf4] ss:$8 sps:$4 sm:$0xff]   ;;  %v8945_v2 = vld [vmem:[#allocation16 + $0xf0] ss:$8 sps:$4 sm:$0xff]   ;;  %v8950_v9 = vld [vmem:[#allocation16 + $0x104] ss:$8 sps:$4 sm:$0xff]  }
 0x7ac   :  { %6151 = vmatpush1.bf16.msra.mxu1 %v7975_v13  ;;  %v4605_v13 = vld [vmem:[#allocation14 + $0x7d8] sm:$0xff] }
 0x7ad   :  { %6233 = vmatpush1.bf16.msra.mxu0 %v7977_v32  ;;  %6152 = vmatprep.subr.bf16.mxu1 %v7984_v33  ;;  %v4609_v32 = vld [vmem:[#allocation14 + $0x7f8] sm:$0xff]  ;;  %v8031_v33 = vcombine.low %v4596_v16, %v4600_v17 }
 0x7ae   :  { %6234 = vmatprep.subr.bf16.mxu0 %v7986_v24  ;;  %v8033_v24 = vcombine.low %v4597_v19, %v4601_v21  ;;  %v8042_v36 = vcombine.high %v4605_v13, %v4609_v32  ;;  %v8041_v38 = vcombine.low %v4605_v13, %v4609_v32 }
 0x7b0   :  { %6153 = vmatpush1.bf16.msra.mxu1 %v7983_v39  ;;  %v8902_v39 = vld [vmem:[#allocation16 + $0x4] ss:$8 sps:$4 sm:$0xff]  }
 0x7b1   :  { %6235 = vmatpush1.bf16.msra.mxu0 %v7985_v40  ;;  %6154 = vmatprep.subr.bf16.mxu1 %v7992_v41  ;;  %v8900_v40 = vld [vmem:[#allocation16] ss:$8 sps:$4 sm:$0xff]   ;;  %v8905_v41 = vld [vmem:[#allocation16 + $0x14] ss:$8 sps:$4 sm:$0xff]  }
 0x7b2   :  { %6236 = vmatprep.subr.bf16.mxu0 %v7994_v42  ;;  %v8903_v42 = vld [vmem:[#allocation16 + $0x10] ss:$8 sps:$4 sm:$0xff]  }
 0x7b4   :  { %6155 = vmatpush1.bf16.msra.mxu1 %v7991_v46  ;;  %v8914_v46 = vld [vmem:[#allocation16 + $0x44] ss:$8 sps:$4 sm:$0xff]  }
 0x7b5   :  { %6237 = vmatpush1.bf16.msra.mxu0 %v7993_v49  ;;  %6156 = vmatprep.subr.bf16.mxu1 %v8000_v50  ;;  %v8912_v49 = vld [vmem:[#allocation16 + $0x40] ss:$8 sps:$4 sm:$0xff]   ;;  %v8917_v50 = vld [vmem:[#allocation16 + $0x54] ss:$8 sps:$4 sm:$0xff]  }
 0x7b6   :  { %6238 = vmatprep.subr.bf16.mxu0 %v8002_v52  ;;  %v8915_v52 = vld [vmem:[#allocation16 + $0x50] ss:$8 sps:$4 sm:$0xff]  }
 0x7b8   :  { %6157 = vmatpush1.bf16.msra.mxu1 %v7999_v18  ;;  %v8924_v18 = vld [vmem:[#allocation16 + $0x80] ss:$8 sps:$4 sm:$0xff]  }
 0x7b9   :  { %6239 = vmatpush1.bf16.msra.mxu0 %v8001_v55  ;;  %6158 = vmatprep.subr.bf16.mxu1 %v8008_v1  ;;  %v8929_v55 = vld [vmem:[#allocation16 + $0x94] ss:$8 sps:$4 sm:$0xff]   ;;  %v8927_v1 = vld [vmem:[#allocation16 + $0x90] ss:$8 sps:$4 sm:$0xff]  }
 0x7ba   :  { %6240 = vmatprep.subr.bf16.mxu0 %v8010_v56  ;;  %v8932_v56 = vld [vmem:[#allocation16 + $0xa4] ss:$8 sps:$4 sm:$0xff]  }
 0x7bc   :  { %6159 = vmatpush1.bf16.msra.mxu1 %v8007_v63  ;;  %v8936_v63 = vld [vmem:[#allocation16 + $0xc0] ss:$8 sps:$4 sm:$0xff]  }
 0x7bd   :  { %6241 = vmatpush1.bf16.msra.mxu0 %v8009_v0  ;;  %6160 = vmatprep.subr.bf16.mxu1 %v8016_v3  ;;  %v8941_v0 = vld [vmem:[#allocation16 + $0xd4] ss:$8 sps:$4 sm:$0xff]   ;;  %v8939_v3 = vld [vmem:[#allocation16 + $0xd0] ss:$8 sps:$4 sm:$0xff]  }
 0x7be   :  { %6242 = vmatprep.subr.bf16.mxu0 %v8018_v4  ;;  %v8944_v4 = vld [vmem:[#allocation16 + $0xe4] ss:$8 sps:$4 sm:$0xff]  }
 0x7c0   :  { %6161 = vmatpush1.bf16.msra.mxu1 %v8015_v27  ;;  %v9678_v27 = vld [vmem:[%s9732_s9 + $0x15] sm:$0xff]  ;;  %s9294_s9 = scalar_lea.vmem %s7230_s3, 256 }
 0x7c1   :  { %6243 = vmatpush1.bf16.msra.mxu0 %v8017_v7  ;;  %6162 = vmatprep.subr.bf16.mxu1 %v8024_v10  ;;  %v4614_v7 = vrot.slane %v9678_v27, %v9560_v12  ;;  %v4618_v10 = vrot.slane %v9678_v27, %v9568_v14  ;;  %p9295_p2 = scmp.ne.s32.totalorder %s7230_s3, %s9294_s9  ;;  %p9300_p4 = scmp.lt.s32.totalorder %s9294_s9, %s9294_s9 }
 0x7c2   :  { %6244 = vmatprep.subr.bf16.mxu0 %v8026_v15  ;;  %v4626_v15 = vrot.slane %v9678_v27, %v9578_v23 }
 0x7c3   :  { %p9301_p5 = por %p9300_p4, %p9299_p3 }
 0x7c4   :  { %6163 = vmatpush1.bf16.msra.mxu1 %v8023_v22 }
 0x7c5   :  { %6245 = vmatpush1.bf16.msra.mxu0 %v8025_v25  ;;  %6164 = vmatprep.subr.bf16.mxu1 %v8032_v26  ;;  %p9302_p6 = pnand %p9301_p5, %p9295_p2 }
 0x7c6   :  { %6246 = vmatprep.subr.bf16.mxu0 %v8034_v29 }
 0x7c8   :  { %6165 = vmatpush1.bf16.msra.mxu1 %v8031_v33 }
 0x7c9   :  { %6247 = vmatpush1.bf16.msra.mxu0 %v8033_v24  ;;  %6166 = vmatprep.subr.bf16.mxu1 %v8040_v35 }
 0x7ca   :  { %6248 = vmatprep.subr.bf16.mxu0 %v8042_v36  ;;  %v8948_v36 = vld [vmem:[#allocation16 + $0x100] ss:$8 sps:$4 sm:$0xff]  }
 0x7cc   :  { %6167 = vmatpush1.bf16.msra.mxu1 %v8039_v37 }
 0x7cd   :  { %6249 = vmatpush1.bf16.msra.mxu0 %v8041_v38  ;;  %7055 = vmatprep.subr.bf16.mxu1 %v8902_v39  ;;  %v8953_v38 = vld [vmem:[#allocation16 + $0x114] ss:$8 sps:$4 sm:$0xff]   ;;  %v8951_v39 = vld [vmem:[#allocation16 + $0x110] ss:$8 sps:$4 sm:$0xff]  }
 0x7cf   :  { %6169 = vmatmul.mubr.bf16.vlgmr.msra.gmra.mrb[20].mxu1 %v9663_v58 }
 0x7d0   :  { %6251 = vmatmul.mubr.bf16.vlgmr.msra.gmra.mrb[32].mxu0 %v9663_v58  ;;  %7056 = vmatpush1.bf16.msra.mxu1 %v8900_v40  ;;  %v8920_v58 = vld [vmem:[#allocation16 + $0x64] ss:$8 sps:$4 sm:$0xff]  }
 0x7d1   :  { %7057 = vmatprep.subr.bf16.mxu1 %v8905_v41  ;;  %v8956_v40 = vld [vmem:[#allocation16 + $0x124] ss:$8 sps:$4 sm:$0xff]   ;;  %v8954_v41 = vld [vmem:[#allocation16 + $0x120] ss:$8 sps:$4 sm:$0xff]  }
 0x7d4   :  { %7058 = vmatpush1.bf16.msra.mxu1 %v8903_v42  ;;  %v8959_v42 = vld [vmem:[#allocation16 + $0x134] ss:$8 sps:$4 sm:$0xff]  }
 0x7d5   :  { %7059 = vmatprep.subr.bf16.mxu1 %v8908_v43  ;;  %v8957_v43 = vld [vmem:[#allocation16 + $0x130] ss:$8 sps:$4 sm:$0xff]  }
 0x7d8   :  { %7060 = vmatpush1.bf16.msra.mxu1 %v8906_v44  ;;  %v8962_v44 = vld [vmem:[#allocation16 + $0x144] ss:$8 sps:$4 sm:$0xff]  }
 0x7d9   :  { %7061 = vmatprep.subr.bf16.mxu1 %v8911_v60  ;;  %v8960_v60 = vld [vmem:[#allocation16 + $0x140] ss:$8 sps:$4 sm:$0xff]  }
 0x7dc   :  { %7062 = vmatpush1.bf16.msra.mxu1 %v8909_v28  ;;  %v8965_v28 = vld [vmem:[#allocation16 + $0x154] ss:$8 sps:$4 sm:$0xff]  }
 0x7dd   :  { %7063 = vmatprep.subr.bf16.mxu1 %v8914_v46  ;;  %v8963_v46 = vld [vmem:[#allocation16 + $0x150] ss:$8 sps:$4 sm:$0xff]  }
 0x7e0   :  { %7064 = vmatpush1.bf16.msra.mxu1 %v8912_v49  ;;  %v8968_v49 = vld [vmem:[#allocation16 + $0x164] ss:$8 sps:$4 sm:$0xff]  }
 0x7e1   :  { %7065 = vmatprep.subr.bf16.mxu1 %v8917_v50  ;;  %v8966_v50 = vld [vmem:[#allocation16 + $0x160] ss:$8 sps:$4 sm:$0xff]  }
 0x7e4   :  { %7066 = vmatpush1.bf16.msra.mxu1 %v8915_v52  ;;  %v8971_v52 = vld [vmem:[#allocation16 + $0x174] ss:$8 sps:$4 sm:$0xff]  }
 0x7e5   :  { %7067 = vmatprep.subr.bf16.mxu1 %v8920_v58  ;;  %v8969_v58 = vld [vmem:[#allocation16 + $0x170] ss:$8 sps:$4 sm:$0xff]  }
 0x7e8   :  { %7068 = vmatpush1.bf16.msra.mxu1 %v8918_v53  ;;  %v8974_v53 = vld [vmem:[#allocation16 + $0x184] ss:$8 sps:$4 sm:$0xff]  }
 0x7e9   :  { %7069 = vmatprep.subr.bf16.mxu1 %v8923_v54  ;;  %v8972_v54 = vld [vmem:[#allocation16 + $0x180] ss:$8 sps:$4 sm:$0xff]  }
 0x7ec   :  { %7070 = vmatpush1.bf16.msra.mxu1 %v8921_v34  ;;  %v8977_v34 = vld [vmem:[#allocation16 + $0x194] ss:$8 sps:$4 sm:$0xff]  }
 0x7ed   :  { %7071 = vmatprep.subr.bf16.mxu1 %v8926_v45  ;;  %v8975_v45 = vld [vmem:[#allocation16 + $0x190] ss:$8 sps:$4 sm:$0xff]  }
 0x7f0   :  { %7072 = vmatpush1.bf16.msra.mxu1 %v8924_v18  ;;  %v8980_v18 = vld [vmem:[#allocation16 + $0x1a4] ss:$8 sps:$4 sm:$0xff]  }
 0x7f1   :  { %7073 = vmatprep.subr.bf16.mxu1 %v8929_v55  ;;  %v8978_v55 = vld [vmem:[#allocation16 + $0x1a0] ss:$8 sps:$4 sm:$0xff]  }
 0x7f4   :  { %7074 = vmatpush1.bf16.msra.mxu1 %v8927_v1  ;;  %v8983_v1 = vld [vmem:[#allocation16 + $0x1b4] ss:$8 sps:$4 sm:$0xff]  }
 0x7f5   :  { %7075 = vmatprep.subr.bf16.mxu1 %v8932_v56  ;;  %v8981_v56 = vld [vmem:[#allocation16 + $0x1b0] ss:$8 sps:$4 sm:$0xff]  }
 0x7f8   :  { %7076 = vmatpush1.bf16.msra.mxu1 %v8930_v57  ;;  %v8986_v57 = vld [vmem:[#allocation16 + $0x1c4] ss:$8 sps:$4 sm:$0xff]  }
 0x7f9   :  { %7077 = vmatprep.subr.bf16.mxu1 %v8935_v59  ;;  %v8984_v59 = vld [vmem:[#allocation16 + $0x1c0] ss:$8 sps:$4 sm:$0xff]  }
 0x7fc   :  { %7078 = vmatpush1.bf16.msra.mxu1 %v8933_v61  ;;  %v8989_v61 = vld [vmem:[#allocation16 + $0x1d4] ss:$8 sps:$4 sm:$0xff]  }
 0x7fd   :  { %7079 = vmatprep.subr.bf16.mxu1 %v8938_v62  ;;  %v8987_v62 = vld [vmem:[#allocation16 + $0x1d0] ss:$8 sps:$4 sm:$0xff]  }
 0x800   :  { %7080 = vmatpush1.bf16.msra.mxu1 %v8936_v63  ;;  %v4622_v63 = vrot.slane %v9678_v27, %v9575_v20  ;;  %v8999_v20 = vld [vmem:[#allocation16 + $0x210] ss:$8 sps:$4 sm:$0xff]  }
 0x801   :  { %7081 = vmatprep.subr.bf16.mxu1 %v8941_v0  ;;  %v8992_v0 = vld [vmem:[#allocation16 + $0x1e4] ss:$8 sps:$4 sm:$0xff]  }
 0x804   :  { %7082 = vmatpush1.bf16.msra.mxu1 %v8939_v3  ;;  %v8990_v3 = vld [vmem:[#allocation16 + $0x1e0] ss:$8 sps:$4 sm:$0xff]  }
 0x805   :  { %7083 = vmatprep.subr.bf16.mxu1 %v8944_v4 }
 0x808   :  { %7084 = vmatpush1.bf16.msra.mxu1 %v8942_v5  ;;  %v8995_v5 = vld [vmem:[#allocation16 + $0x1f4] ss:$8 sps:$4 sm:$0xff]  }
 0x809   :  { %7085 = vmatprep.subr.bf16.mxu1 %v8947_v6  ;;  %v8993_v6 = vld [vmem:[#allocation16 + $0x1f0] ss:$8 sps:$4 sm:$0xff]  }
 0x80c   :  { %7086 = vmatpush1.bf16.msra.mxu1 %v8945_v2 }
 0x80d   :  { %7096 = vmatprep.subr.bf16.mxu1 %v8950_v9  ;;  %v8998_v9 = vld [vmem:[#allocation16 + $0x204] ss:$8 sps:$4 sm:$0xff]  }
 0x822   :  { %v6006_v16 = vpop.f32.mrb[16].mxu1  ;;  %v9686_v17 = vpop.f32.mrb[28].mxu0 }
 0x823   :  { %v8199_v19 = vadd.f32 %v6006_v16, %v4614_v7  ;;  %v6008_v21 = vpop.f32.mrb[17].mxu1  ;;  %v6090_v22 = vpop.f32.mrb[29].mxu0  ;;  %v8201_v4 = vadd.f32 %v9686_v17, %v4622_v63  ;;  %v8996_v7 = vld [vmem:[#allocation16 + $0x200] ss:$8 sps:$4 sm:$0xff]   ;;  %v9004_v16 = vld [vmem:[#allocation16 + $0x224] ss:$8 sps:$4 sm:$0xff]  }
 0x824   :  { %v8200_v25 = vadd.f32 %v6008_v21, %v4618_v10  ;;  %v8202_v26 = vadd.f32 %v6090_v22, %v4626_v15  ;;  %v6010_v29 = vpop.f32.mrb[18].mxu1  ;;  %v6092_v30 = vpop.f32.mrb[30].mxu0  ;;  %v9001_v15 = vld [vmem:[#allocation16 + $0x214] ss:$8 sps:$4 sm:$0xff]   ;;  %v9005_v21 = vld [vmem:[#allocation16 + $0x230] ss:$8 sps:$4 sm:$0xff]  }
 0x825   :  { %v6259_v31 = vmax.f32 %v8199_v19, 0.0  ;;  %v6011_v13 = vpop.f32.mrb[19].mxu1  ;;  %v6093_v32 = vpop.f32.mrb[31].mxu0  ;;  %v6261_v2 = vmax.f32 %v8201_v4, 0.0  ;;  %v9002_v19 = vld [vmem:[#allocation16 + $0x220] ss:$8 sps:$4 sm:$0xff]  }
 0x826   :  { %v6260_v33 = vmax.f32 %v8200_v25, 0.0  ;;  %v6262_v24 = vmax.f32 %v8202_v26, 0.0  ;;  %v9007_v17 = vld [vmem:[#allocation16 + $0x234] ss:$8 sps:$4 sm:$0xff]   ;;  %v9010_v22 = vld [vmem:[#allocation16 + $0x244] ss:$8 sps:$4 sm:$0xff]  }
 0x827   :  { %v6268_v37 = vpack.c.bf16 %v6259_v31, %v6259_v31  ;;  %v6270_v10 = vpack.c.bf16 %v6261_v2, %v6261_v2  ;;  %v9008_v25 = vld [vmem:[#allocation16 + $0x240] ss:$8 sps:$4 sm:$0xff]   ;;  %v9013_v26 = vld [vmem:[#allocation16 + $0x254] ss:$8 sps:$4 sm:$0xff]   ;;  %v9011_v29 = vld [vmem:[#allocation16 + $0x250] ss:$8 sps:$4 sm:$0xff]  }
 0x828   :  { %v6269_v35 = vpack.c.bf16 %v6260_v33, %v6260_v33  ;;  %v6271_v23 = vpack.c.bf16 %v6262_v24, %v6262_v24  ;;  %v9016_v30 = vld [vmem:[#allocation16 + $0x264] ss:$8 sps:$4 sm:$0xff]   ;;  %v9014_v31 = vld [vmem:[#allocation16 + $0x260] ss:$8 sps:$4 sm:$0xff]   ;;  %v9019_v13 = vld [vmem:[#allocation16 + $0x274] ss:$8 sps:$4 sm:$0xff]  }
 0x829   :  { %v9017_v32 = vld [vmem:[#allocation16 + $0x270] ss:$8 sps:$4 sm:$0xff]   ;;  %v9022_v33 = vld [vmem:[#allocation16 + $0x284] ss:$8 sps:$4 sm:$0xff]   ;;  %v9020_v24 = vld [vmem:[#allocation16 + $0x280] ss:$8 sps:$4 sm:$0xff]  }
 0x82a   :  { %7087 = vmatprep.mubr.bf16.mxu1 %v6269_v35  ;;  %v9025_v35 = vld [vmem:[#allocation16 + $0x294] ss:$8 sps:$4 sm:$0xff]   ;;  %v9044_v63 = vld [vmem:[#allocation16 + $0x300] ss:$8 sps:$4 sm:$0xff]  }
 0x82b   :  { %7088 = vmatmul.mubr.bf16.vlgmr.msra.gmra.mrb[24].mxu1 %v6268_v37  ;;  %v9028_v37 = vld [vmem:[#allocation16 + $0x2a4] ss:$8 sps:$4 sm:$0xff]   ;;  %v9050_v2 = vld [vmem:[#allocation16 + $0x320] ss:$8 sps:$4 sm:$0xff]  }
 0x82c   :  { %7097 = vmatpush1.bf16.msra.mxu1 %v8948_v36  ;;  %7128 = vmatprep.mubr.bf16.mxu1 %v6271_v23  ;;  %v9023_v36 = vld [vmem:[#allocation16 + $0x290] ss:$8 sps:$4 sm:$0xff]   ;;  %v9031_v23 = vld [vmem:[#allocation16 + $0x2b4] ss:$8 sps:$4 sm:$0xff]  }
 0x82d   :  { %7098 = vmatprep.subr.bf16.mxu1 %v8953_v38  ;;  %v9026_v38 = vld [vmem:[#allocation16 + $0x2a0] ss:$8 sps:$4 sm:$0xff]  }
 0x830   :  { %7099 = vmatpush1.bf16.msra.mxu1 %v8951_v39  ;;  %v9029_v39 = vld [vmem:[#allocation16 + $0x2b0] ss:$8 sps:$4 sm:$0xff]  }
 0x831   :  { %7100 = vmatprep.subr.bf16.mxu1 %v8956_v40  ;;  %v9034_v40 = vld [vmem:[#allocation16 + $0x2c4] ss:$8 sps:$4 sm:$0xff]  }
 0x834   :  { %7101 = vmatpush1.bf16.msra.mxu1 %v8954_v41  ;;  %v9032_v41 = vld [vmem:[#allocation16 + $0x2c0] ss:$8 sps:$4 sm:$0xff]  }
 0x835   :  { %7102 = vmatprep.subr.bf16.mxu1 %v8959_v42  ;;  %v9037_v42 = vld [vmem:[#allocation16 + $0x2d4] ss:$8 sps:$4 sm:$0xff]  }
 0x838   :  { %7103 = vmatpush1.bf16.msra.mxu1 %v8957_v43  ;;  %v9035_v43 = vld [vmem:[#allocation16 + $0x2d0] ss:$8 sps:$4 sm:$0xff]  }
 0x839   :  { %7104 = vmatprep.subr.bf16.mxu1 %v8962_v44  ;;  %v9040_v44 = vld [vmem:[#allocation16 + $0x2e4] ss:$8 sps:$4 sm:$0xff]  }
 0x83c   :  { %7105 = vmatpush1.bf16.msra.mxu1 %v8960_v60  ;;  %v4630_v60 = vrot.slane %v9678_v27, %v309_v48 }
 0x83d   :  { %7106 = vmatprep.subr.bf16.mxu1 %v8965_v28  ;;  %v9038_v28 = vld [vmem:[#allocation16 + $0x2e0] ss:$8 sps:$4 sm:$0xff]  }
 0x840   :  { %7107 = vmatpush1.bf16.msra.mxu1 %v8963_v46  ;;  %v4634_v46 = vrot.slane %v9678_v27, %v313_v51 }
 0x841   :  { %7108 = vmatprep.subr.bf16.mxu1 %v8968_v49  ;;  %v4642_v49 = vrot.slane %v9678_v27, %v321_v47 }
 0x844   :  { %7109 = vmatpush1.bf16.msra.mxu1 %v8966_v50  ;;  %v9043_v50 = vld [vmem:[#allocation16 + $0x2f4] ss:$8 sps:$4 sm:$0xff]  }
 0x845   :  { %7110 = vmatprep.subr.bf16.mxu1 %v8971_v52 }
 0x848   :  { %7111 = vmatpush1.bf16.msra.mxu1 %v8969_v58 }
 0x849   :  { %7112 = vmatprep.subr.bf16.mxu1 %v8974_v53 }
 0x84c   :  { %7113 = vmatpush1.bf16.msra.mxu1 %v8972_v54 }
 0x84d   :  { %7114 = vmatprep.subr.bf16.mxu1 %v8977_v34 }
 0x850   :  { %7115 = vmatpush1.bf16.msra.mxu1 %v8975_v45 }
 0x851   :  { %7116 = vmatprep.subr.bf16.mxu1 %v8980_v18  ;;  %v9041_v18 = vld [vmem:[#allocation16 + $0x2f0] ss:$8 sps:$4 sm:$0xff]  }
 0x854   :  { %7117 = vmatpush1.bf16.msra.mxu1 %v8978_v55 }
 0x855   :  { %7118 = vmatprep.subr.bf16.mxu1 %v8983_v1 }
 0x858   :  { %7119 = vmatpush1.bf16.msra.mxu1 %v8981_v56 }
 0x859   :  { %7120 = vmatprep.subr.bf16.mxu1 %v8986_v57  ;;  %v9046_v57 = vld [vmem:[#allocation16 + $0x304] ss:$8 sps:$4 sm:$0xff]  }
 0x85c   :  { %7121 = vmatpush1.bf16.msra.mxu1 %v8984_v59 }
 0x85d   :  { %7122 = vmatprep.subr.bf16.mxu1 %v8989_v61 }
 0x860   :  { %7123 = vmatpush1.bf16.msra.mxu1 %v8987_v62 }
 0x861   :  { %7124 = vmatprep.subr.bf16.mxu1 %v8992_v0 }
 0x864   :  { %7125 = vmatpush1.bf16.msra.mxu1 %v8990_v3  ;;  %v9049_v3 = vld [vmem:[#allocation16 + $0x314] ss:$8 sps:$4 sm:$0xff]  }
 0x865   :  { %7126 = vmatprep.subr.bf16.mxu1 %v8995_v5  ;;  %v9047_v5 = vld [vmem:[#allocation16 + $0x310] ss:$8 sps:$4 sm:$0xff]  }
 0x868   :  { %7127 = vmatpush1.bf16.msra.mxu1 %v8993_v6  ;;  %v9052_v6 = vld [vmem:[#allocation16 + $0x324] ss:$8 sps:$4 sm:$0xff]  }
 0x869   :  { %7137 = vmatprep.subr.bf16.mxu1 %v8998_v9  ;;  %v9055_v9 = vld [vmem:[#allocation16 + $0x334] ss:$8 sps:$4 sm:$0xff]  }
 0x86b   :  { %7129 = vmatmul.mubr.bf16.vlgmr.msra.gmra.mrb[24].mxu1 %v6270_v10  ;;  %v9058_v10 = vld [vmem:[#allocation16 + $0x344] ss:$8 sps:$4 sm:$0xff]  }
 0x86c   :  { %7138 = vmatpush1.bf16.msra.mxu1 %v8996_v7  ;;  %v9053_v7 = vld [vmem:[#allocation16 + $0x330] ss:$8 sps:$4 sm:$0xff]  }
 0x86d   :  { %7139 = vmatprep.subr.bf16.mxu1 %v9001_v15  ;;  %v9056_v15 = vld [vmem:[#allocation16 + $0x340] ss:$8 sps:$4 sm:$0xff]  }
 0x870   :  { %7140 = vmatpush1.bf16.msra.mxu1 %v8999_v20  ;;  %v9061_v20 = vld [vmem:[#allocation16 + $0x354] ss:$8 sps:$4 sm:$0xff]  }
 0x871   :  { %7141 = vmatprep.subr.bf16.mxu1 %v9004_v16  ;;  %v9059_v16 = vld [vmem:[#allocation16 + $0x350] ss:$8 sps:$4 sm:$0xff]  }
 0x874   :  { %7142 = vmatpush1.bf16.msra.mxu1 %v9002_v19  ;;  %v9064_v19 = vld [vmem:[#allocation16 + $0x364] ss:$8 sps:$4 sm:$0xff]  }
 0x875   :  { %7143 = vmatprep.subr.bf16.mxu1 %v9007_v17  ;;  %v9062_v17 = vld [vmem:[#allocation16 + $0x360] ss:$8 sps:$4 sm:$0xff]  }
 0x878   :  { %7144 = vmatpush1.bf16.msra.mxu1 %v9005_v21  ;;  %v9067_v21 = vld [vmem:[#allocation16 + $0x374] ss:$8 sps:$4 sm:$0xff]  }
 0x879   :  { %7145 = vmatprep.subr.bf16.mxu1 %v9010_v22  ;;  %v9065_v22 = vld [vmem:[#allocation16 + $0x370] ss:$8 sps:$4 sm:$0xff]  }
 0x87c   :  { %7146 = vmatpush1.bf16.msra.mxu1 %v9008_v25  ;;  %v9070_v25 = vld [vmem:[#allocation16 + $0x384] ss:$8 sps:$4 sm:$0xff]  }
 0x87d   :  { %7147 = vmatprep.subr.bf16.mxu1 %v9013_v26  ;;  %v9068_v26 = vld [vmem:[#allocation16 + $0x380] ss:$8 sps:$4 sm:$0xff]  }
 0x880   :  { %7148 = vmatpush1.bf16.msra.mxu1 %v9011_v29  ;;  %v9073_v29 = vld [vmem:[#allocation16 + $0x394] ss:$8 sps:$4 sm:$0xff]  }
 0x881   :  { %7149 = vmatprep.subr.bf16.mxu1 %v9016_v30  ;;  %v9071_v30 = vld [vmem:[#allocation16 + $0x390] ss:$8 sps:$4 sm:$0xff]  }
 0x884   :  { %7150 = vmatpush1.bf16.msra.mxu1 %v9014_v31  ;;  %v9076_v31 = vld [vmem:[#allocation16 + $0x3a4] ss:$8 sps:$4 sm:$0xff]  }
 0x885   :  { %7151 = vmatprep.subr.bf16.mxu1 %v9019_v13  ;;  %v9074_v13 = vld [vmem:[#allocation16 + $0x3a0] ss:$8 sps:$4 sm:$0xff]  }
 0x888   :  { %7152 = vmatpush1.bf16.msra.mxu1 %v9017_v32  ;;  %v9079_v32 = vld [vmem:[#allocation16 + $0x3b4] ss:$8 sps:$4 sm:$0xff]  }
 0x889   :  { %7153 = vmatprep.subr.bf16.mxu1 %v9022_v33  ;;  %v9077_v33 = vld [vmem:[#allocation16 + $0x3b0] ss:$8 sps:$4 sm:$0xff]  }
 0x88c   :  { %7154 = vmatpush1.bf16.msra.mxu1 %v9020_v24  ;;  %v9082_v24 = vld [vmem:[#allocation16 + $0x3c4] ss:$8 sps:$4 sm:$0xff]  }
 0x88d   :  { %7155 = vmatprep.subr.bf16.mxu1 %v9025_v35  ;;  %v9080_v35 = vld [vmem:[#allocation16 + $0x3c0] ss:$8 sps:$4 sm:$0xff]  }
 0x890   :  { %7156 = vmatpush1.bf16.msra.mxu1 %v9023_v36  ;;  %v9085_v36 = vld [vmem:[#allocation16 + $0x3d4] ss:$8 sps:$4 sm:$0xff]  }
 0x891   :  { %7157 = vmatprep.subr.bf16.mxu1 %v9028_v37  ;;  %v9083_v37 = vld [vmem:[#allocation16 + $0x3d0] ss:$8 sps:$4 sm:$0xff]  }
 0x894   :  { %7158 = vmatpush1.bf16.msra.mxu1 %v9026_v38  ;;  %v4638_v38 = vrot.slane %v9678_v27, %v317_v8  ;;  %v6408_v8 = vrot.slane %v6267_v11, %v9560_v12  ;;  %v6412_v27 = vrot.slane %v6267_v11, %v9568_v14 }
 0x895   :  { %7159 = vmatprep.subr.bf16.mxu1 %v9031_v23  ;;  %v9088_v23 = vld [vmem:[#allocation16 + $0x3e4] ss:$8 sps:$4 sm:$0xff]  }
 0x898   :  { %7160 = vmatpush1.bf16.msra.mxu1 %v9029_v39  ;;  %v9086_v39 = vld [vmem:[#allocation16 + $0x3e0] ss:$8 sps:$4 sm:$0xff]  }
 0x899   :  { %7161 = vmatprep.subr.bf16.mxu1 %v9034_v40 }
 0x89c   :  { %7162 = vmatpush1.bf16.msra.mxu1 %v9032_v41  ;;  %v9091_v41 = vld [vmem:[#allocation16 + $0x3f4] ss:$8 sps:$4 sm:$0xff]  }
 0x89d   :  { %7163 = vmatprep.subr.bf16.mxu1 %v9037_v42  ;;  %v9089_v42 = vld [vmem:[#allocation16 + $0x3f0] ss:$8 sps:$4 sm:$0xff]  }
 0x8a0   :  { %7164 = vmatpush1.bf16.msra.mxu1 %v9035_v43 }
 0x8a1   :  { %7165 = vmatprep.subr.bf16.mxu1 %v9040_v44 }
 0x8a2   :  { %v6170_v52 = vpop.f32.mrb[20].mxu1 }
 0x8a3   :  { %v8203_v58 = vadd.f32 %v6170_v52, %v4630_v60  ;;  %v9700_v53 = vpop.f32.mrb[32].mxu0  ;;  %v6172_v54 = vpop.f32.mrb[21].mxu1 }
 0x8a4   :  { %v8204_v34 = vadd.f32 %v6172_v54, %v4634_v46  ;;  %v6254_v45 = vpop.f32.mrb[33].mxu0  ;;  %7166 = vmatpush1.bf16.msra.mxu1 %v9038_v28  ;;  %v6174_v48 = vpop.f32.mrb[22].mxu1  ;;  %v8205_v40 = vadd.f32 %v9700_v53, %v4638_v38 }
 0x8a5   :  { %v6263_v55 = vmax.f32 %v8203_v58, 0.0  ;;  %v8206_v1 = vadd.f32 %v6254_v45, %v4642_v49  ;;  %v6256_v56 = vpop.f32.mrb[34].mxu0  ;;  %v6175_v51 = vpop.f32.mrb[23].mxu1  ;;  %7167 = vmatprep.subr.bf16.mxu1 %v9043_v50 }
 0x8a6   :  { %v6264_v59 = vmax.f32 %v8204_v34, 0.0  ;;  %v6257_v61 = vpop.f32.mrb[35].mxu0  ;;  %v6265_v43 = vmax.f32 %v8205_v40, 0.0 }
 0x8a7   :  { %v6266_v47 = vmax.f32 %v8206_v1, 0.0  ;;  %v6272_v0 = vpack.c.bf16 %v6263_v55, %v6263_v55 }
 0x8a8   :  { %v6273_v62 = vpack.c.bf16 %v6264_v59, %v6264_v59  ;;  %7168 = vmatpush1.bf16.msra.mxu1 %v9041_v18  ;;  %v6274_v44 = vpack.c.bf16 %v6265_v43, %v6265_v43 }
 0x8a9   :  { %7178 = vmatprep.subr.bf16.mxu1 %v9046_v57  ;;  %v6275_v4 = vpack.c.bf16 %v6266_v47, %v6266_v47 }
 0x8aa   :  { %7169 = vmatprep.mubr.bf16.mxu1 %v6273_v62 }
 0x8ab   :  { %7170 = vmatmul.mubr.bf16.vlgmr.msra.gmra.mrb[24].mxu1 %v6272_v0 }
 0x8ac   :  { %7179 = vmatpush1.bf16.msra.mxu1 %v9044_v63  ;;  %7210 = vmatprep.mubr.bf16.mxu1 %v6275_v4 }
 0x8ad   :  { %7180 = vmatprep.subr.bf16.mxu1 %v9049_v3 }
 0x8b0   :  { %7181 = vmatpush1.bf16.msra.mxu1 %v9047_v5 }
 0x8b1   :  { %7182 = vmatprep.subr.bf16.mxu1 %v9052_v6 }
 0x8b4   :  { %7183 = vmatpush1.bf16.msra.mxu1 %v9050_v2 }
 0x8b5   :  { %7184 = vmatprep.subr.bf16.mxu1 %v9055_v9 }
 0x8b8   :  { %7185 = vmatpush1.bf16.msra.mxu1 %v9053_v7 }
 0x8b9   :  { %7186 = vmatprep.subr.bf16.mxu1 %v9058_v10 }
 0x8bc   :  { %7187 = vmatpush1.bf16.msra.mxu1 %v9056_v15 }
 0x8bd   :  { %7188 = vmatprep.subr.bf16.mxu1 %v9061_v20 }
 0x8c0   :  { %7189 = vmatpush1.bf16.msra.mxu1 %v9059_v16 }
 0x8c1   :  { %7190 = vmatprep.subr.bf16.mxu1 %v9064_v19 }
 0x8c4   :  { %7191 = vmatpush1.bf16.msra.mxu1 %v9062_v17 }
 0x8c5   :  { %7192 = vmatprep.subr.bf16.mxu1 %v9067_v21 }
 0x8c8   :  { %7193 = vmatpush1.bf16.msra.mxu1 %v9065_v22 }
 0x8c9   :  { %7194 = vmatprep.subr.bf16.mxu1 %v9070_v25 }
 0x8cc   :  { %7195 = vmatpush1.bf16.msra.mxu1 %v9068_v26 }
 0x8cd   :  { %7196 = vmatprep.subr.bf16.mxu1 %v9073_v29 }
 0x8d0   :  { %7197 = vmatpush1.bf16.msra.mxu1 %v9071_v30 }
 0x8d1   :  { %7198 = vmatprep.subr.bf16.mxu1 %v9076_v31 }
 0x8d4   :  { %7199 = vmatpush1.bf16.msra.mxu1 %v9074_v13 }
 0x8d5   :  { %7200 = vmatprep.subr.bf16.mxu1 %v9079_v32 }
 0x8d8   :  { %7201 = vmatpush1.bf16.msra.mxu1 %v9077_v33 }
 0x8d9   :  { %7202 = vmatprep.subr.bf16.mxu1 %v9082_v24 }
 0x8dc   :  { %7203 = vmatpush1.bf16.msra.mxu1 %v9080_v35 }
 0x8dd   :  { %7204 = vmatprep.subr.bf16.mxu1 %v9085_v36 }
 0x8e0   :  { %7205 = vmatpush1.bf16.msra.mxu1 %v9083_v37 }
 0x8e1   :  { %7206 = vmatprep.subr.bf16.mxu1 %v9088_v23 }
 0x8e4   :  { %7207 = vmatpush1.bf16.msra.mxu1 %v9086_v39 }
 0x8e5   :  { %7208 = vmatprep.subr.bf16.mxu1 %v9091_v41 }
 0x8e8   :  { %7209 = vmatpush1.bf16.msra.mxu1 %v9089_v42 }
 0x8eb   :  { %7211 = vmatmul.mubr.bf16.vlgmr.msra.gmra.mrb[24].mxu1 %v6274_v44 }
 0x9be   :  { %v7212_v60 = vpop.f32.mrb[24].mxu1 }
 0x9bf   :  { %v8207_v28 = vadd.f32 %v7212_v60, %v6408_v8  ;;  %v7214_v46 = vpop.f32.mrb[25].mxu1 }
 0x9c0   :  { %v8208_v49 = vadd.f32 %v7214_v46, %v6412_v27  ;;  %v7216_v50 = vpop.f32.mrb[26].mxu1 }
 0x9c1   :  { %9092 = vtanh.f32 %v8207_v28  ;;  %v7217_v52 = vpop.f32.mrb[27].mxu1 }
 0x9c2   :  { %9094 = vtanh.f32 %v8208_v49 }
 0x9cb   :  { %v9093_v58 = vpop.eup %9092 }
 0x9cc   :  { %v9095_v53 = vpop.eup %9094  ;;  %7221 = vst [vmem:[#allocation17] sm:$0xff] %v9093_v58 }
 0x9cd   :  { %7222 = vst [vmem:[#allocation17 + $0x8] sm:$0xff] %v9095_v53 }
 0x9ce   :  { %9305 = shalt.err (!%p9302_p6)
}
 0x9cf   :  { %s9306_s18 = scalar_lea.hbm %s9733_s10, 256 }
 0x9d0   :  { %p9307_p7 = scmp.ne.s32.totalorder %s9733_s10, %s9306_s18  ;;  %p9310_p8 = scmp.lt.u32.totalorder %s9306_s18, %s9733_s10 }
 0x9d2   :  { %p9312_p9 = pnand %p9310_p8, %p9307_p7 }
 0x9d4   :  { %9315 = shalt.err (!%p9312_p9)
}
 0x9d5   :  { %7232 = dma.vmem_to_hbm [thread:$0]  %s7230_s3, 256, %s9733_s10, [#allocation4]  }
 0x9d6   :  { %9326 = dma.done.wait [#allocation4], 256  }
 0x9d7   :  { %9327 = vsyncadd [#allocation4], 4294967040 }
 0x9d8   :  { %7236 = vsyncpa [#allocation3], 1 }
 0x9d9   :  { %7237 = vsyncpa [#allocation6], 1 }
 0x9da   :  { %7238 = vsyncpa [#allocation9], 1 }
 0x9db   :  { %7239 = vsyncpa [#allocation12], 1 }
 0x9dc   :  { %7240 = vsyncpa [#allocation15], 1 }
 0x9dd   :  { %7241 = vsyncpa [#allocation4], 1 }

</bundles_post_ra>
